<compile_context>
chip_gen: v5e
topology: v5e:2x2
jax: 0.10.0
libtpu: 0.0.40
codegen_flags: <defaults>
</compile_context>

<pallas_src>
import math
import functools

import jax
import jax.numpy as jnp
from jax import lax
from jax.experimental import pallas as pl
from jax.experimental.pallas import tpu as pltpu

# ------------------------- model configuration ------------------------------
ITEM_SIZE = 64          # args.item_size
MAX_SEQ_LEN = 8         # args.max_seq_length
HIDDEN = 32             # args.hidden_size (d_model)
N_LAYERS = 2            # args.n_layers
D_STATE = 16            # default d_state
D_CONV = 4              # default d_conv
EXPAND = 2              # default expand
D_INNER = EXPAND * HIDDEN            # 64
DT_RANK = math.ceil(HIDDEN / 16)     # 2
INNER_FFN = 4 * HIDDEN               # 128
LN_EPS = 1e-12                       # nn.LayerNorm(..., eps=1e-12) in the reference
FUSED_PROJ_W = 128                   # d_inner + 2*d_state (= 96) padded to 128 lanes


# ------------------------- small math helpers (in-kernel) -------------------
def _erf(x):
    # Abramowitz & Stegun 7.1.26 rational approximation, |err| < 1.5e-7.
    # TODO(synk): stands in for exact lax.erf used by nn.GELU(approximate='none').
    p = 0.3275911
    a1, a2, a3, a4, a5 = (0.254829592, -0.284496736, 1.421413741,
                          -1.453152027, 1.061405429)
    sgn = jnp.where(x >= 0.0, 1.0, -1.0)
    ax = jnp.abs(x)
    t = 1.0 / (1.0 + p * ax)
    poly = ((((a5 * t + a4) * t + a3) * t + a2) * t + a1) * t
    return sgn * (1.0 - poly * jnp.exp(-ax * ax))


def _gelu_exact(x):
    return 0.5 * x * (1.0 + _erf(x * (1.0 / math.sqrt(2.0))))


def _silu(x):
    return x * jax.nn.sigmoid(x)


def _softplus(x):
    # numerically stable softplus (matches F.softplus to float precision)
    return jnp.maximum(x, 0.0) + jnp.log(1.0 + jnp.exp(-jnp.abs(x)))


def _layernorm(x, w, b):
    mu = jnp.mean(x, axis=-1, keepdims=True)
    var = jnp.mean(jnp.square(x - mu), axis=-1, keepdims=True)
    return (x - mu) * lax.rsqrt(var + LN_EPS) * w + b   # rsqrt -> EUP slot


def _cat(parts, axis):
    return parts[0] if len(parts) == 1 else jnp.concatenate(parts, axis=axis)


def _fold(x_rows, bt, L):
    """(bt*L, W) batch-major rows -> (L, bt*W); batch b occupies lane block b."""
    if bt == 1:
        return x_rows
    return jnp.concatenate([x_rows[b * L:(b + 1) * L, :] for b in range(bt)], axis=1)


def _unfold(x_f, bt):
    """Inverse of _fold: (L, bt*W) -> (bt*L, W) batch-major rows."""
    if bt == 1:
        return x_f
    w = x_f.shape[1] // bt
    return jnp.concatenate([x_f[:, b * w:(b + 1) * w] for b in range(bt)], axis=0)


def _lane_tile(a, bt):
    """Replicate along the lane axis once per batch element of the tile."""
    return a if bt == 1 else jnp.concatenate([a] * bt, axis=-1)


# ------------------------- fused forward kernel -----------------------------
def fused_forward_kernel(x_ref, pos_ref, emb_w_ref, emb_b_ref,
                         in_proj_wT_ref, conv_w_ref, conv_b_ref,
                         dtbc_wT_ref, dt_b_ref,
                         A_ref, D_ref, out_wT_ref,
                         ln_w_ref, ln_b_ref,
                         w1T_ref, b1_ref, w2T_ref, b2_ref,
                         ffn_ln_w_ref, ffn_ln_b_ref,
                         out_ref,
                         dA_s, dbx_s, c_s, y_s, *, bt, residual):
    f32 = jnp.float32
    L = MAX_SEQ_LEN
    S = D_STATE
    R = bt * L                    # matmul M dim: batch folded into rows
    LS = L * S                    # rows of the time-lifted scan tensors

    # ---- item-emb + pos-emb + LayerNorm (dropout = identity) ---------------
    pos = pos_ref[...]                                           # (L, H), un-tiled
    pos_full = pos if bt == 1 else jnp.concatenate([pos] * bt, axis=0)
    x = x_ref[...] + pos_full                                    # (R, H), rows = (b, t)
    x = _layernorm(x, emb_w_ref[...], emb_b_ref[...])

    # ---- layer-invariant constants, hoisted out of the layer loop ----------
    # causal-conv time masks, one per tap delay
    t_idx = lax.broadcasted_iota(jnp.int32, (bt, L, D_INNER), 1).reshape(R, D_INNER)
    conv_mask = [jnp.where(t_idx >= k, 1.0, 0.0) for k in range(1, D_CONV)]

    # time-lift selector: sel[t*S + s, t'] = 1 iff t' == t        (LS, L)
    r2 = lax.broadcasted_iota(jnp.int32, (LS, L), 0)
    t2 = lax.broadcasted_iota(jnp.int32, (LS, L), 1)
    sel = jnp.where((r2 >= t2 * S) & (r2 < (t2 + 1) * S), 1.0, 0.0)
    # state-channel spread: sprd[t*S + s, s'] = 1 iff s' == s     (LS, S)
    e_r = lax.broadcasted_iota(jnp.int32, (S, S), 0)
    e_c = lax.broadcasted_iota(jnp.int32, (S, S), 1)
    eye = jnp.where(e_r == e_c, 1.0, 0.0)
    sprd = jnp.concatenate([eye] * L, axis=0)

    for li in range(N_LAYERS):
        # ========================== Mamba block ==============================
        # in_proj (no bias), pre-transposed weight (d_model, 2*d_inner)
        xz = jnp.dot(x, in_proj_wT_ref[li], preferred_element_type=f32)  # (R, 2*DI)
        xi = xz[:, :D_INNER]
        z = xz[:, D_INNER:]

        # causal depthwise conv1d: tap with delay k reads row t-k.
        conv_w = conv_w_ref[li]                      # (D_CONV, DI), PyTorch tap order
        acc = conv_w[D_CONV - 1:D_CONV, :] * xi + conv_b_ref[li]
        for k in range(1, D_CONV):
            w_k = conv_w[D_CONV - 1 - k:D_CONV - k, :]
            acc = acc + conv_mask[k - 1] * (w_k * pltpu.roll(xi, shift=k, axis=0))
        xc = _silu(acc)                              # (R, DI)

        # fused dt / B / C projection: ONE lane-dense (R,64)x(64,128) matmul
        proj = jnp.dot(xc, dtbc_wT_ref[li], preferred_element_type=f32)  # (R, 128)
        dt = _softplus(proj[:, :D_INNER] + dt_b_ref[li])                 # (R, DI)
        bc = proj[:, D_INNER:D_INNER + 2 * S]                            # (R, 2S)

        # fold batch into the lane axis (identity when bt == 1)
        dt_f = _fold(dt, bt, L)                      # (L, bt*DI)
        xc_f = _fold(xc, bt, L)
        z_f = _fold(z, bt, L)
        dtx_f = dt_f * xc_f

        A_rep = _lane_tile(A_ref[li], bt)            # (S, bt*DI), A = -exp(A_log)
        D_rep = _lane_tile(D_ref[li], bt)            # (1, bt*DI)

        # -------- vectorized scan precompute (no per-(t,b) column slices) ----
        # Lift every quantity to (L*S, bt*DI): row t*S+s <-> (step t, state s).
        # Results are written to VMEM scratch so only one step is live in vregs.
        dt_lift = jnp.dot(sel, dt_f, preferred_element_type=f32)         # (LS, bt*DI)
        dtx_lift = jnp.dot(sel, dtx_f, preferred_element_type=f32)       # (LS, bt*DI)
        A_til = jnp.dot(sprd, A_rep, preferred_element_type=f32)         # (LS, bt*DI)
        dA_s[...] = jnp.exp(dt_lift * A_til)
        for b in range(bt):
            lanes = slice(b * D_INNER, (b + 1) * D_INNER)
            bc_lift = jnp.dot(sel, bc[b * L:(b + 1) * L, :],
                              preferred_element_type=f32)                # (LS, 2S)
            b_col = jnp.sum(bc_lift[:, :S] * sprd, axis=1, keepdims=True)   # (LS, 1)
            c_col = jnp.sum(bc_lift[:, S:] * sprd, axis=1, keepdims=True)   # (LS, 1)
            dbx_s[:, lanes] = (jnp.broadcast_to(b_col, (LS, D_INNER))
                               * dtx_lift[:, lanes])
            c_s[:, lanes] = jnp.broadcast_to(c_col, (LS, D_INNER))

        # -------- serial selective scan: only an FMA sits on the h-chain -----
        h = jnp.zeros((S, bt * D_INNER), f32)
        for t in range(L):
            rs = slice(t * S, (t + 1) * S)
            h = dA_s[rs, :] * h + dbx_s[rs, :]
            y_t = (jnp.sum(h * c_s[rs, :], axis=0, keepdims=True)
                   + D_rep * xc_f[t:t + 1, :])
            # SiLU(z) gate fused here (folded layout) so the unfold runs once
            y_s[t:t + 1, :] = y_t * _silu(z_f[t:t + 1, :])

        y = _unfold(y_s[...], bt)                    # (R, DI) batch-major, gated
        m_out = jnp.dot(y, out_wT_ref[li], preferred_element_type=f32)   # (R, H)

        # ========= MambaLayer: dropout(identity) + residual + LayerNorm ======
        res = m_out + x if residual else m_out
        h1 = _layernorm(res, ln_w_ref[li], ln_b_ref[li])

        # ================= FeedForward + LayerNorm ============================
        ff = jnp.dot(h1, w1T_ref[li], preferred_element_type=f32) + b1_ref[li]
        ff = _gelu_exact(ff)
        ff = jnp.dot(ff, w2T_ref[li], preferred_element_type=f32) + b2_ref[li]
        x = _layernorm(ff + h1, ffn_ln_w_ref[li], ffn_ln_b_ref[li])

    # ---- lane-dense output store: pack each batch row's (L, H) into one -----
    # ---- 256-lane row via lane concats; the wrapper reshapes back. ----------
    for b in range(bt):
        segs = [x[b * L + t:b * L + t + 1, :] for t in range(L)]
        out_ref[b] = _cat(segs, axis=1)              # (1, L*H) dense store


# ------------------------- pallas_call wrapper -------------------------------
def _full_spec(shape):
    zeros = (0,) * len(shape)
    return pl.BlockSpec(shape, lambda *_: zeros)


def _choose_bt(batch, seq_len):
    """Batch-tile size: target ~512 rows in the matmul M dim (amortizes the
    ~0.35us/grid-step overhead, fills MXU/VPU), but keep >= 2 grid steps so the
    'parallel' batch axis can be sharded across both v7x TensorCores."""
    cap = max(1, 512 // seq_len)
    bt = min(batch, cap)
    if batch >= 2:
        bt = min(bt, batch // 2)
    bt = max(bt, 1)
    while batch % bt:
        bt -= 1
    return bt


def mamba4rec_fused_call(seq_emb_flat, pos_emb, emb_w, emb_b, lp, A_T, D_row,
                         *, bt, residual):
    rt, H = seq_emb_flat.shape
    L = MAX_SEQ_LEN
    B = rt // L
    kernel = functools.partial(fused_forward_kernel, bt=bt, residual=residual)
    inputs = [seq_emb_flat, pos_emb, emb_w, emb_b,
              lp["in_proj_wT"], lp["conv_w"], lp["conv_b"],
              lp["dtbc_wT"], lp["dt_b"],
              A_T, D_row, lp["out_wT"],
              lp["ln_w"], lp["ln_b"],
              lp["w1T"], lp["b1"], lp["w2T"], lp["b2"],
              lp["ffn_ln_w"], lp["ffn_ln_b"]]
    in_specs = [pl.BlockSpec((bt * L, H), lambda i: (i, 0))] + \
               [_full_spec(a.shape) for a in inputs[1:]]
    return pl.pallas_call(
        kernel,
        out_shape=jax.ShapeDtypeStruct((B, 1, L * H), jnp.float32),
        grid_spec=pltpu.PrefetchScalarGridSpec(
            num_scalar_prefetch=0,
            grid=(B // bt,),
            in_specs=in_specs,
            out_specs=pl.BlockSpec((bt, 1, L * H), lambda i: (i, 0, 0)),
            scratch_shapes=[
                pltpu.VMEM((L * D_STATE, bt * D_INNER), jnp.float32),   # lifted dA
                pltpu.VMEM((L * D_STATE, bt * D_INNER), jnp.float32),   # lifted dB*x
                pltpu.VMEM((L * D_STATE, bt * D_INNER), jnp.float32),   # lifted C
                pltpu.VMEM((L, bt * D_INNER), jnp.float32),             # gated y
            ]),
        compiler_params=pltpu.CompilerParams(
            # v7x: shard the batch-tile axis across both TensorCores
            dimension_semantics=("parallel",)),
    )(*inputs)


# ------------------------- parameters (deterministic, synthetic) -------------
def init_params(key):
    ks = iter(jax.random.split(key, 12))

    def nrm(shape):
        return 0.02 * jax.random.normal(next(ks), shape, jnp.float32)

    NL = N_LAYERS
    # fold x_proj(dt part) @ dt_proj into one (DI, DI) rank-DT_RANK weight
    # (exact because x_proj has no bias; dt_proj bias applied separately).
    wdt_T = nrm((NL, D_INNER, DT_RANK))
    dt_wT = nrm((NL, DT_RANK, D_INNER))
    dt_W = jnp.einsum("lir,lrj->lij", wdt_T, dt_wT)                   # (NL, DI, DI)

    # fuse dt / B / C projections into ONE lane-dense weight, padded to 128
    wbc = nrm((NL, 2 * D_STATE, D_INNER))                             # x_proj B,C rows
    wbc_T = jnp.transpose(wbc, (0, 2, 1))                             # (NL, DI, 2S)
    pad = jnp.zeros((NL, D_INNER, FUSED_PROJ_W - D_INNER - 2 * D_STATE), jnp.float32)
    dtbc_wT = jnp.concatenate([dt_W, wbc_T, pad], axis=2)             # (NL, DI, 128)

    # S4D-real init for A_log (Mamba default); A = -exp(A_log) precomputed.
    a_logT = jnp.log(jnp.arange(1, D_STATE + 1, dtype=jnp.float32))[:, None] \
             * jnp.ones((1, D_INNER), jnp.float32)                    # (d_state, d_inner)
    A_T = jnp.broadcast_to(-jnp.exp(a_logT), (NL, D_STATE, D_INNER))

    layers = {
        # Mamba block (weights pre-transposed for row-major activations)
        "in_proj_wT": nrm((NL, HIDDEN, 2 * D_INNER)),   # Linear, no bias
        "conv_w": nrm((NL, D_CONV, D_INNER)),           # depthwise taps (PyTorch order)
        "conv_b": jnp.zeros((NL, 1, D_INNER), jnp.float32),
        "dtbc_wT": dtbc_wT,                             # fused dt/B/C projection
        "dt_b": jnp.zeros((NL, 1, D_INNER), jnp.float32),  # dt_proj bias (zeroed)
        "out_wT": nrm((NL, D_INNER, HIDDEN)),
        # MambaLayer LayerNorm
        "ln_w": jnp.ones((NL, 1, HIDDEN), jnp.float32),
        "ln_b": jnp.zeros((NL, 1, HIDDEN), jnp.float32),
        # FeedForward
        "w1T": nrm((NL, HIDDEN, INNER_FFN)),
        "b1": jnp.zeros((NL, 1, INNER_FFN), jnp.float32),
        "w2T": nrm((NL, INNER_FFN, HIDDEN)),
        "b2": jnp.zeros((NL, 1, HIDDEN), jnp.float32),
        "ffn_ln_w": jnp.ones((NL, 1, HIDDEN), jnp.float32),
        "ffn_ln_b": jnp.zeros((NL, 1, HIDDEN), jnp.float32),
    }
    return {
        "item_emb": nrm((ITEM_SIZE, HIDDEN)),
        "pos_emb": nrm((MAX_SEQ_LEN, HIDDEN)),
        "emb_ln_w": jnp.ones((1, HIDDEN), jnp.float32),
        "emb_ln_b": jnp.zeros((1, HIDDEN), jnp.float32),
        "A_T": A_T,                                     # (NL, d_state, d_inner), un-tiled
        "D_row": jnp.ones((NL, 1, D_INNER), jnp.float32),
        "layers": layers,
    }


# ------------------------- full forward --------------------------------------
@jax.jit
def mamba4rec_forward(input_ids, params):
    B, L = input_ids.shape
    bt = _choose_bt(B, L)
    # embedding gather stays in plain JAX glue; kernel input is lane-dense (B*L, H)
    seq_emb = jnp.take(params["item_emb"], input_ids, axis=0)        # (B, L, H)
    out = mamba4rec_fused_call(
        seq_emb.reshape(B * L, HIDDEN), params["pos_emb"][:L],
        params["emb_ln_w"], params["emb_ln_b"],
        params["layers"], params["A_T"], params["D_row"],
        bt=bt, residual=(N_LAYERS != 1))
    return out.reshape(B, L, HIDDEN)


# ------------------------- main ----------------------------------------------
if __name__ == "__main__":
    key = jax.random.PRNGKey(0)
    pkey, dkey = jax.random.split(key)
    params = init_params(pkey)

    B = 2
    input_ids = jax.random.randint(dkey, (B, MAX_SEQ_LEN), 1, ITEM_SIZE,
                                   dtype=jnp.int32)

    out = mamba4rec_forward(input_ids, params)
    jax.block_until_ready(out)
    assert out.shape == (B, MAX_SEQ_LEN, HIDDEN)
    assert bool(jnp.all(jnp.isfinite(out)))
    print("KERNEL_OK")
</pallas_src>

<mosaic_0001>
module attributes {stable_mosaic.version = 11 : i64} {
  func.func @fused_forward_kernel(%arg0: i32, %arg1: memref<8x32xf32, #tpu.memory_space<vmem>>, %arg2: memref<8x32xf32, #tpu.memory_space<vmem>>, %arg3: memref<1x32xf32, #tpu.memory_space<vmem>>, %arg4: memref<1x32xf32, #tpu.memory_space<vmem>>, %arg5: memref<2x32x128xf32, #tpu.memory_space<vmem>>, %arg6: memref<2x4x64xf32, #tpu.memory_space<vmem>>, %arg7: memref<2x1x64xf32, #tpu.memory_space<vmem>>, %arg8: memref<2x64x128xf32, #tpu.memory_space<vmem>>, %arg9: memref<2x1x64xf32, #tpu.memory_space<vmem>>, %arg10: memref<2x16x64xf32, #tpu.memory_space<vmem>>, %arg11: memref<2x1x64xf32, #tpu.memory_space<vmem>>, %arg12: memref<2x64x32xf32, #tpu.memory_space<vmem>>, %arg13: memref<2x1x32xf32, #tpu.memory_space<vmem>>, %arg14: memref<2x1x32xf32, #tpu.memory_space<vmem>>, %arg15: memref<2x32x128xf32, #tpu.memory_space<vmem>>, %arg16: memref<2x1x128xf32, #tpu.memory_space<vmem>>, %arg17: memref<2x128x32xf32, #tpu.memory_space<vmem>>, %arg18: memref<2x1x32xf32, #tpu.memory_space<vmem>>, %arg19: memref<2x1x32xf32, #tpu.memory_space<vmem>>, %arg20: memref<2x1x32xf32, #tpu.memory_space<vmem>>, %arg21: memref<1x1x256xf32, #tpu.memory_space<vmem>>, %arg22: memref<128x64xf32, #tpu.memory_space<vmem>>, %arg23: memref<128x64xf32, #tpu.memory_space<vmem>>, %arg24: memref<128x64xf32, #tpu.memory_space<vmem>>, %arg25: memref<8x64xf32, #tpu.memory_space<vmem>>) attributes {dimension_semantics = [#tpu.dimension_semantics<parallel>], iteration_bounds = array<i64: 2>, scalar_prefetch = 0 : i64, scratch_operands = 4 : i64, tpu.core_type = #tpu.core_type<tc>, window_params = [{transform_indices = @transform_0, window_bounds = array<i64: 8, 32>}, {pipeline_mode = #tpu.pipeline_mode<synchronous>, transform_indices = @transform_1, window_bounds = array<i64: 8, 32>}, {pipeline_mode = #tpu.pipeline_mode<synchronous>, transform_indices = @transform_2, window_bounds = array<i64: 1, 32>}, {pipeline_mode = #tpu.pipeline_mode<synchronous>, transform_indices = @transform_3, window_bounds = array<i64: 1, 32>}, {pipeline_mode = #tpu.pipeline_mode<synchronous>, transform_indices = @transform_4, window_bounds = array<i64: 2, 32, 128>}, {pipeline_mode = #tpu.pipeline_mode<synchronous>, transform_indices = @transform_5, window_bounds = array<i64: 2, 4, 64>}, {pipeline_mode = #tpu.pipeline_mode<synchronous>, transform_indices = @transform_6, window_bounds = array<i64: 2, 1, 64>}, {pipeline_mode = #tpu.pipeline_mode<synchronous>, transform_indices = @transform_7, window_bounds = array<i64: 2, 64, 128>}, {pipeline_mode = #tpu.pipeline_mode<synchronous>, transform_indices = @transform_8, window_bounds = array<i64: 2, 1, 64>}, {pipeline_mode = #tpu.pipeline_mode<synchronous>, transform_indices = @transform_9, window_bounds = array<i64: 2, 16, 64>}, {pipeline_mode = #tpu.pipeline_mode<synchronous>, transform_indices = @transform_10, window_bounds = array<i64: 2, 1, 64>}, {pipeline_mode = #tpu.pipeline_mode<synchronous>, transform_indices = @transform_11, window_bounds = array<i64: 2, 64, 32>}, {pipeline_mode = #tpu.pipeline_mode<synchronous>, transform_indices = @transform_12, window_bounds = array<i64: 2, 1, 32>}, {pipeline_mode = #tpu.pipeline_mode<synchronous>, transform_indices = @transform_13, window_bounds = array<i64: 2, 1, 32>}, {pipeline_mode = #tpu.pipeline_mode<synchronous>, transform_indices = @transform_14, window_bounds = array<i64: 2, 32, 128>}, {pipeline_mode = #tpu.pipeline_mode<synchronous>, transform_indices = @transform_15, window_bounds = array<i64: 2, 1, 128>}, {pipeline_mode = #tpu.pipeline_mode<synchronous>, transform_indices = @transform_16, window_bounds = array<i64: 2, 128, 32>}, {pipeline_mode = #tpu.pipeline_mode<synchronous>, transform_indices = @transform_17, window_bounds = array<i64: 2, 1, 32>}, {pipeline_mode = #tpu.pipeline_mode<synchronous>, transform_indices = @transform_18, window_bounds = array<i64: 2, 1, 32>}, {pipeline_mode = #tpu.pipeline_mode<synchronous>, transform_indices = @transform_19, window_bounds = array<i64: 2, 1, 32>}, {transform_indices = @transform_20, window_bounds = array<i64: 1, 1, 256>}]} {
    %c0 = arith.constant 0 : index
    %c0_0 = arith.constant 0 : index
    %0 = vector.load %arg2[%c0, %c0_0] : memref<8x32xf32, #tpu.memory_space<vmem>>, vector<8x32xf32>
    %c0_1 = arith.constant 0 : index
    %c0_2 = arith.constant 0 : index
    %1 = vector.load %arg1[%c0_1, %c0_2] : memref<8x32xf32, #tpu.memory_space<vmem>>, vector<8x32xf32>
    %2 = arith.addf %1, %0 : vector<8x32xf32>
    %c0_3 = arith.constant 0 : index
    %c0_4 = arith.constant 0 : index
    %3 = vector.load %arg3[%c0_3, %c0_4] : memref<1x32xf32, #tpu.memory_space<vmem>>, vector<1x32xf32>
    %c0_5 = arith.constant 0 : index
    %c0_6 = arith.constant 0 : index
    %4 = vector.load %arg4[%c0_5, %c0_6] : memref<1x32xf32, #tpu.memory_space<vmem>>, vector<1x32xf32>
    %cst = arith.constant dense<0.000000e+00> : vector<8xf32>
    %5 = vector.multi_reduction <add>, %2, %cst [1] : vector<8x32xf32> to vector<8xf32>
    %6 = vector.shape_cast %5 : vector<8xf32> to vector<8x1xf32>
    %cst_7 = arith.constant 3.200000e+01 : f32
    %7 = vector.broadcast %cst_7 : f32 to vector<8x1xf32>
    %8 = arith.divf %6, %7 : vector<8x1xf32>
    %9 = vector.broadcast %8 : vector<8x1xf32> to vector<8x32xf32>
    %10 = arith.subf %2, %9 : vector<8x32xf32>
    %11 = arith.mulf %10, %10 : vector<8x32xf32>
    %cst_8 = arith.constant dense<0.000000e+00> : vector<8xf32>
    %12 = vector.multi_reduction <add>, %11, %cst_8 [1] : vector<8x32xf32> to vector<8xf32>
    %13 = vector.shape_cast %12 : vector<8xf32> to vector<8x1xf32>
    %cst_9 = arith.constant 3.200000e+01 : f32
    %14 = vector.broadcast %cst_9 : f32 to vector<8x1xf32>
    %15 = arith.divf %13, %14 : vector<8x1xf32>
    %16 = vector.broadcast %8 : vector<8x1xf32> to vector<8x32xf32>
    %17 = arith.subf %2, %16 : vector<8x32xf32>
    %cst_10 = arith.constant 9.99999996E-13 : f32
    %18 = vector.broadcast %cst_10 : f32 to vector<8x1xf32>
    %19 = arith.addf %15, %18 : vector<8x1xf32>
    %20 = math.rsqrt %19 : vector<8x1xf32>
    %21 = vector.broadcast %20 : vector<8x1xf32> to vector<8x32xf32>
    %22 = arith.mulf %17, %21 : vector<8x32xf32>
    %23 = vector.broadcast %3 : vector<1x32xf32> to vector<8x32xf32>
    %24 = arith.mulf %22, %23 : vector<8x32xf32>
    %25 = vector.broadcast %4 : vector<1x32xf32> to vector<8x32xf32>
    %26 = arith.addf %24, %25 : vector<8x32xf32>
    %27 = tpu.iota {dimensions = array<i32: 1>} : vector<1x8x64xi32>
    %28 = vector.shape_cast %27 : vector<1x8x64xi32> to vector<8x64xi32>
    %c1_i32 = arith.constant 1 : i32
    %29 = vector.broadcast %c1_i32 : i32 to vector<8x64xi32>
    %30 = arith.cmpi sge, %28, %29 : vector<8x64xi32>
    %cst_11 = arith.constant 1.000000e+00 : f32
    %cst_12 = arith.constant 0.000000e+00 : f32
    %31 = vector.broadcast %cst_11 : f32 to vector<8x64xf32>
    %32 = vector.broadcast %cst_12 : f32 to vector<8x64xf32>
    %33 = arith.select %30, %31, %32 : vector<8x64xi1>, vector<8x64xf32>
    %c2_i32 = arith.constant 2 : i32
    %34 = vector.broadcast %c2_i32 : i32 to vector<8x64xi32>
    %35 = arith.cmpi sge, %28, %34 : vector<8x64xi32>
    %cst_13 = arith.constant 1.000000e+00 : f32
    %cst_14 = arith.constant 0.000000e+00 : f32
    %36 = vector.broadcast %cst_13 : f32 to vector<8x64xf32>
    %37 = vector.broadcast %cst_14 : f32 to vector<8x64xf32>
    %38 = arith.select %35, %36, %37 : vector<8x64xi1>, vector<8x64xf32>
    %c3_i32 = arith.constant 3 : i32
    %39 = vector.broadcast %c3_i32 : i32 to vector<8x64xi32>
    %40 = arith.cmpi sge, %28, %39 : vector<8x64xi32>
    %cst_15 = arith.constant 1.000000e+00 : f32
    %cst_16 = arith.constant 0.000000e+00 : f32
    %41 = vector.broadcast %cst_15 : f32 to vector<8x64xf32>
    %42 = vector.broadcast %cst_16 : f32 to vector<8x64xf32>
    %43 = arith.select %40, %41, %42 : vector<8x64xi1>, vector<8x64xf32>
    %44 = tpu.iota {dimensions = array<i32: 0>} : vector<128x8xi32>
    %45 = tpu.iota {dimensions = array<i32: 1>} : vector<128x8xi32>
    %c16_i32 = arith.constant 16 : i32
    %46 = vector.broadcast %c16_i32 : i32 to vector<128x8xi32>
    %47 = arith.muli %45, %46 : vector<128x8xi32>
    %48 = arith.cmpi sge, %44, %47 : vector<128x8xi32>
    %c1_i32_17 = arith.constant 1 : i32
    %49 = vector.broadcast %c1_i32_17 : i32 to vector<128x8xi32>
    %50 = arith.addi %45, %49 : vector<128x8xi32>
    %c16_i32_18 = arith.constant 16 : i32
    %51 = vector.broadcast %c16_i32_18 : i32 to vector<128x8xi32>
    %52 = arith.muli %50, %51 : vector<128x8xi32>
    %53 = arith.cmpi slt, %44, %52 : vector<128x8xi32>
    %54 = arith.andi %48, %53 : vector<128x8xi1>
    %cst_19 = arith.constant 1.000000e+00 : f32
    %cst_20 = arith.constant 0.000000e+00 : f32
    %55 = vector.broadcast %cst_19 : f32 to vector<128x8xf32>
    %56 = vector.broadcast %cst_20 : f32 to vector<128x8xf32>
    %57 = arith.select %54, %55, %56 : vector<128x8xi1>, vector<128x8xf32>
    %58 = tpu.iota {dimensions = array<i32: 0>} : vector<16x16xi32>
    %59 = tpu.iota {dimensions = array<i32: 1>} : vector<16x16xi32>
    %60 = arith.cmpi eq, %58, %59 : vector<16x16xi32>
    %cst_21 = arith.constant 1.000000e+00 : f32
    %cst_22 = arith.constant 0.000000e+00 : f32
    %61 = vector.broadcast %cst_21 : f32 to vector<16x16xf32>
    %62 = vector.broadcast %cst_22 : f32 to vector<16x16xf32>
    %63 = arith.select %60, %61, %62 : vector<16x16xi1>, vector<16x16xf32>
    %64 = tpu.concatenate %63, %63, %63, %63, %63, %63, %63, %63 in 0 : vector<16x16xf32>, vector<16x16xf32>, vector<16x16xf32>, vector<16x16xf32>, vector<16x16xf32>, vector<16x16xf32>, vector<16x16xf32>, vector<16x16xf32> -> vector<128x16xf32>
    %c0_23 = arith.constant 0 : index
    %c0_24 = arith.constant 0 : index
    %c0_25 = arith.constant 0 : index
    %65 = vector.load %arg5[%c0_23, %c0_24, %c0_25] : memref<2x32x128xf32, #tpu.memory_space<vmem>>, vector<1x32x128xf32>
    %66 = vector.shape_cast %65 : vector<1x32x128xf32> to vector<32x128xf32>
    %cst_26 = arith.constant dense<0.000000e+00> : vector<8x128xf32>
    %67 = tpu.matmul %26, %66, %cst_26 {dimension_numbers = #tpu.dot_dimension_numbers<[1], [0], [0], [1], [0, 0, 1, 1], [], []>} : vector<8x32xf32>, vector<32x128xf32>, vector<8x128xf32> -> vector<8x128xf32>
    %68 = vector.extract_strided_slice %67 {offsets = [0, 0], sizes = [8, 64], strides = [1, 1]} : vector<8x128xf32> to vector<8x64xf32>
    %69 = vector.extract_strided_slice %67 {offsets = [0, 64], sizes = [8, 64], strides = [1, 1]} : vector<8x128xf32> to vector<8x64xf32>
    %c0_27 = arith.constant 0 : index
    %c0_28 = arith.constant 0 : index
    %c0_29 = arith.constant 0 : index
    %70 = vector.load %arg6[%c0_27, %c0_28, %c0_29] : memref<2x4x64xf32, #tpu.memory_space<vmem>>, vector<1x4x64xf32>
    %71 = vector.shape_cast %70 : vector<1x4x64xf32> to vector<4x64xf32>
    %72 = vector.extract_strided_slice %71 {offsets = [3, 0], sizes = [1, 64], strides = [1, 1]} : vector<4x64xf32> to vector<1x64xf32>
    %73 = vector.broadcast %72 : vector<1x64xf32> to vector<8x64xf32>
    %74 = arith.mulf %73, %68 : vector<8x64xf32>
    %c0_30 = arith.constant 0 : index
    %c0_31 = arith.constant 0 : index
    %c0_32 = arith.constant 0 : index
    %75 = vector.load %arg7[%c0_30, %c0_31, %c0_32] : memref<2x1x64xf32, #tpu.memory_space<vmem>>, vector<1x1x64xf32>
    %76 = vector.shape_cast %75 : vector<1x1x64xf32> to vector<1x64xf32>
    %77 = vector.broadcast %76 : vector<1x64xf32> to vector<8x64xf32>
    %78 = arith.addf %74, %77 : vector<8x64xf32>
    %79 = vector.extract_strided_slice %71 {offsets = [2, 0], sizes = [1, 64], strides = [1, 1]} : vector<4x64xf32> to vector<1x64xf32>
    %c1_i32_33 = arith.constant 1 : i32
    %80 = tpu.dynamic_rotate %68 by %c1_i32_33 dim 0 : vector<8x64xf32>, i32 -> vector<8x64xf32>
    %81 = vector.broadcast %79 : vector<1x64xf32> to vector<8x64xf32>
    %82 = arith.mulf %81, %80 : vector<8x64xf32>
    %83 = arith.mulf %33, %82 : vector<8x64xf32>
    %84 = arith.addf %78, %83 : vector<8x64xf32>
    %85 = vector.extract_strided_slice %71 {offsets = [1, 0], sizes = [1, 64], strides = [1, 1]} : vector<4x64xf32> to vector<1x64xf32>
    %c2_i32_34 = arith.constant 2 : i32
    %86 = tpu.dynamic_rotate %68 by %c2_i32_34 dim 0 : vector<8x64xf32>, i32 -> vector<8x64xf32>
    %87 = vector.broadcast %85 : vector<1x64xf32> to vector<8x64xf32>
    %88 = arith.mulf %87, %86 : vector<8x64xf32>
    %89 = arith.mulf %38, %88 : vector<8x64xf32>
    %90 = arith.addf %84, %89 : vector<8x64xf32>
    %91 = vector.extract_strided_slice %71 {offsets = [0, 0], sizes = [1, 64], strides = [1, 1]} : vector<4x64xf32> to vector<1x64xf32>
    %c3_i32_35 = arith.constant 3 : i32
    %92 = tpu.dynamic_rotate %68 by %c3_i32_35 dim 0 : vector<8x64xf32>, i32 -> vector<8x64xf32>
    %93 = vector.broadcast %91 : vector<1x64xf32> to vector<8x64xf32>
    %94 = arith.mulf %93, %92 : vector<8x64xf32>
    %95 = arith.mulf %43, %94 : vector<8x64xf32>
    %96 = arith.addf %90, %95 : vector<8x64xf32>
    %97 = arith.negf %96 : vector<8x64xf32>
    %98 = math.exp %97 : vector<8x64xf32>
    %cst_36 = arith.constant 1.000000e+00 : f32
    %99 = vector.broadcast %cst_36 : f32 to vector<8x64xf32>
    %100 = arith.addf %99, %98 : vector<8x64xf32>
    %101 = arith.divf %99, %100 : vector<8x64xf32>
    %102 = arith.mulf %96, %101 : vector<8x64xf32>
    %c0_37 = arith.constant 0 : index
    %c0_38 = arith.constant 0 : index
    %c0_39 = arith.constant 0 : index
    %103 = vector.load %arg8[%c0_37, %c0_38, %c0_39] : memref<2x64x128xf32, #tpu.memory_space<vmem>>, vector<1x64x128xf32>
    %104 = vector.shape_cast %103 : vector<1x64x128xf32> to vector<64x128xf32>
    %cst_40 = arith.constant dense<0.000000e+00> : vector<8x128xf32>
    %105 = tpu.matmul %102, %104, %cst_40 {dimension_numbers = #tpu.dot_dimension_numbers<[1], [0], [0], [1], [0, 0, 1, 1], [], []>} : vector<8x64xf32>, vector<64x128xf32>, vector<8x128xf32> -> vector<8x128xf32>
    %106 = vector.extract_strided_slice %105 {offsets = [0, 0], sizes = [8, 64], strides = [1, 1]} : vector<8x128xf32> to vector<8x64xf32>
    %c0_41 = arith.constant 0 : index
    %c0_42 = arith.constant 0 : index
    %c0_43 = arith.constant 0 : index
    %107 = vector.load %arg9[%c0_41, %c0_42, %c0_43] : memref<2x1x64xf32, #tpu.memory_space<vmem>>, vector<1x1x64xf32>
    %108 = vector.shape_cast %107 : vector<1x1x64xf32> to vector<1x64xf32>
    %109 = vector.broadcast %108 : vector<1x64xf32> to vector<8x64xf32>
    %110 = arith.addf %106, %109 : vector<8x64xf32>
    %cst_44 = arith.constant 0.000000e+00 : f32
    %111 = vector.broadcast %cst_44 : f32 to vector<8x64xf32>
    %112 = arith.maximumf %110, %111 : vector<8x64xf32>
    %113 = math.absf %110 : vector<8x64xf32>
    %cst_45 = arith.constant 0.000000e+00 : f32
    %114 = vector.broadcast %cst_45 : f32 to vector<8x64xf32>
    %115 = arith.subf %114, %113 : vector<8x64xf32>
    %116 = math.exp %115 : vector<8x64xf32>
    %cst_46 = arith.constant 1.000000e+00 : f32
    %117 = vector.broadcast %cst_46 : f32 to vector<8x64xf32>
    %118 = arith.addf %117, %116 : vector<8x64xf32>
    %119 = math.log %118 : vector<8x64xf32>
    %120 = arith.addf %112, %119 : vector<8x64xf32>
    %121 = vector.extract_strided_slice %105 {offsets = [0, 64], sizes = [8, 32], strides = [1, 1]} : vector<8x128xf32> to vector<8x32xf32>
    %122 = arith.mulf %120, %102 : vector<8x64xf32>
    %c0_47 = arith.constant 0 : index
    %c0_48 = arith.constant 0 : index
    %c0_49 = arith.constant 0 : index
    %123 = vector.load %arg10[%c0_47, %c0_48, %c0_49] : memref<2x16x64xf32, #tpu.memory_space<vmem>>, vector<1x16x64xf32>
    %124 = vector.shape_cast %123 : vector<1x16x64xf32> to vector<16x64xf32>
    %c0_50 = arith.constant 0 : index
    %c0_51 = arith.constant 0 : index
    %c0_52 = arith.constant 0 : index
    %125 = vector.load %arg11[%c0_50, %c0_51, %c0_52] : memref<2x1x64xf32, #tpu.memory_space<vmem>>, vector<1x1x64xf32>
    %126 = vector.shape_cast %125 : vector<1x1x64xf32> to vector<1x64xf32>
    %cst_53 = arith.constant dense<0.000000e+00> : vector<128x64xf32>
    %127 = tpu.matmul %57, %120, %cst_53 {dimension_numbers = #tpu.dot_dimension_numbers<[1], [0], [0], [1], [0, 0, 1, 1], [], []>} : vector<128x8xf32>, vector<8x64xf32>, vector<128x64xf32> -> vector<128x64xf32>
    %cst_54 = arith.constant dense<0.000000e+00> : vector<128x64xf32>
    %128 = tpu.matmul %57, %122, %cst_54 {dimension_numbers = #tpu.dot_dimension_numbers<[1], [0], [0], [1], [0, 0, 1, 1], [], []>} : vector<128x8xf32>, vector<8x64xf32>, vector<128x64xf32> -> vector<128x64xf32>
    %cst_55 = arith.constant dense<0.000000e+00> : vector<128x64xf32>
    %129 = tpu.matmul %64, %124, %cst_55 {dimension_numbers = #tpu.dot_dimension_numbers<[1], [0], [0], [1], [0, 0, 1, 1], [], []>} : vector<128x16xf32>, vector<16x64xf32>, vector<128x64xf32> -> vector<128x64xf32>
    %130 = arith.mulf %127, %129 : vector<128x64xf32>
    %131 = math.exp %130 : vector<128x64xf32>
    %c0_56 = arith.constant 0 : index
    %c0_57 = arith.constant 0 : index
    %132 = vector.load %arg22[%c0_56, %c0_57] : memref<128x64xf32, #tpu.memory_space<vmem>>, vector<128x64xf32>
    tpu.vector_store %arg22[%c0_56, %c0_57], %131 {strides = array<i32>} : memref<128x64xf32, #tpu.memory_space<vmem>>, vector<128x64xf32>,
    %cst_58 = arith.constant dense<0.000000e+00> : vector<128x32xf32>
    %133 = tpu.matmul %57, %121, %cst_58 {dimension_numbers = #tpu.dot_dimension_numbers<[1], [0], [0], [1], [0, 0, 1, 1], [], []>} : vector<128x8xf32>, vector<8x32xf32>, vector<128x32xf32> -> vector<128x32xf32>
    %134 = vector.extract_strided_slice %133 {offsets = [0, 0], sizes = [128, 16], strides = [1, 1]} : vector<128x32xf32> to vector<128x16xf32>
    %135 = arith.mulf %134, %64 : vector<128x16xf32>
    %cst_59 = arith.constant dense<0.000000e+00> : vector<128xf32>
    %136 = vector.multi_reduction <add>, %135, %cst_59 [1] : vector<128x16xf32> to vector<128xf32>
    %137 = vector.shape_cast %136 : vector<128xf32> to vector<128x1xf32>
    %138 = vector.extract_strided_slice %133 {offsets = [0, 16], sizes = [128, 16], strides = [1, 1]} : vector<128x32xf32> to vector<128x16xf32>
    %139 = arith.mulf %138, %64 : vector<128x16xf32>
    %cst_60 = arith.constant dense<0.000000e+00> : vector<128xf32>
    %140 = vector.multi_reduction <add>, %139, %cst_60 [1] : vector<128x16xf32> to vector<128xf32>
    %141 = vector.shape_cast %140 : vector<128xf32> to vector<128x1xf32>
    %142 = vector.shape_cast %137 : vector<128x1xf32> to vector<128x1xf32>
    %143 = vector.broadcast %142 : vector<128x1xf32> to vector<128x64xf32>
    %144 = arith.mulf %143, %128 : vector<128x64xf32>
    %c0_61 = arith.constant 0 : index
    %c0_62 = arith.constant 0 : index
    %145 = vector.load %arg23[%c0_61, %c0_62] : memref<128x64xf32, #tpu.memory_space<vmem>>, vector<128x64xf32>
    tpu.vector_store %arg23[%c0_61, %c0_62], %144 {strides = array<i32>} : memref<128x64xf32, #tpu.memory_space<vmem>>, vector<128x64xf32>,
    %146 = vector.shape_cast %141 : vector<128x1xf32> to vector<128x1xf32>
    %147 = vector.broadcast %146 : vector<128x1xf32> to vector<128x64xf32>
    %c0_63 = arith.constant 0 : index
    %c0_64 = arith.constant 0 : index
    %148 = vector.load %arg24[%c0_63, %c0_64] : memref<128x64xf32, #tpu.memory_space<vmem>>, vector<128x64xf32>
    tpu.vector_store %arg24[%c0_63, %c0_64], %147 {strides = array<i32>} : memref<128x64xf32, #tpu.memory_space<vmem>>, vector<128x64xf32>,
    %cst_65 = arith.constant 0.000000e+00 : f32
    %149 = vector.broadcast %cst_65 : f32 to vector<16x64xf32>
    %c0_66 = arith.constant 0 : index
    %c0_67 = arith.constant 0 : index
    %150 = vector.load %arg22[%c0_66, %c0_67] : memref<128x64xf32, #tpu.memory_space<vmem>>, vector<16x64xf32>
    %151 = arith.mulf %150, %149 : vector<16x64xf32>
    %c0_68 = arith.constant 0 : index
    %c0_69 = arith.constant 0 : index
    %152 = vector.load %arg23[%c0_68, %c0_69] : memref<128x64xf32, #tpu.memory_space<vmem>>, vector<16x64xf32>
    %153 = arith.addf %151, %152 : vector<16x64xf32>
    %c0_70 = arith.constant 0 : index
    %c0_71 = arith.constant 0 : index
    %154 = vector.load %arg24[%c0_70, %c0_71] : memref<128x64xf32, #tpu.memory_space<vmem>>, vector<16x64xf32>
    %155 = arith.mulf %153, %154 : vector<16x64xf32>
    %cst_72 = arith.constant dense<0.000000e+00> : vector<64xf32>
    %156 = vector.multi_reduction <add>, %155, %cst_72 [0] : vector<16x64xf32> to vector<64xf32>
    %157 = vector.shape_cast %156 : vector<64xf32> to vector<1x64xf32>
    %158 = vector.extract_strided_slice %102 {offsets = [0, 0], sizes = [1, 64], strides = [1, 1]} : vector<8x64xf32> to vector<1x64xf32>
    %159 = arith.mulf %126, %158 : vector<1x64xf32>
    %160 = arith.addf %157, %159 : vector<1x64xf32>
    %161 = vector.extract_strided_slice %69 {offsets = [0, 0], sizes = [1, 64], strides = [1, 1]} : vector<8x64xf32> to vector<1x64xf32>
    %162 = arith.negf %161 : vector<1x64xf32>
    %163 = math.exp %162 : vector<1x64xf32>
    %cst_73 = arith.constant 1.000000e+00 : f32
    %164 = vector.broadcast %cst_73 : f32 to vector<1x64xf32>
    %165 = arith.addf %164, %163 : vector<1x64xf32>
    %166 = arith.divf %164, %165 : vector<1x64xf32>
    %167 = arith.mulf %161, %166 : vector<1x64xf32>
    %168 = arith.mulf %160, %167 : vector<1x64xf32>
    %c0_74 = arith.constant 0 : index
    %c0_75 = arith.constant 0 : index
    %169 = vector.load %arg25[%c0_74, %c0_75] : memref<8x64xf32, #tpu.memory_space<vmem>>, vector<1x64xf32>
    tpu.vector_store %arg25[%c0_74, %c0_75], %168 {strides = array<i32>} : memref<8x64xf32, #tpu.memory_space<vmem>>, vector<1x64xf32>,
    %c16 = arith.constant 16 : index
    %c0_76 = arith.constant 0 : index
    %170 = vector.load %arg22[%c16, %c0_76] : memref<128x64xf32, #tpu.memory_space<vmem>>, vector<16x64xf32>
    %171 = arith.mulf %170, %153 : vector<16x64xf32>
    %c16_77 = arith.constant 16 : index
    %c0_78 = arith.constant 0 : index
    %172 = vector.load %arg23[%c16_77, %c0_78] : memref<128x64xf32, #tpu.memory_space<vmem>>, vector<16x64xf32>
    %173 = arith.addf %171, %172 : vector<16x64xf32>
    %c16_79 = arith.constant 16 : index
    %c0_80 = arith.constant 0 : index
    %174 = vector.load %arg24[%c16_79, %c0_80] : memref<128x64xf32, #tpu.memory_space<vmem>>, vector<16x64xf32>
    %175 = arith.mulf %173, %174 : vector<16x64xf32>
    %cst_81 = arith.constant dense<0.000000e+00> : vector<64xf32>
    %176 = vector.multi_reduction <add>, %175, %cst_81 [0] : vector<16x64xf32> to vector<64xf32>
    %177 = vector.shape_cast %176 : vector<64xf32> to vector<1x64xf32>
    %178 = vector.extract_strided_slice %102 {offsets = [1, 0], sizes = [1, 64], strides = [1, 1]} : vector<8x64xf32> to vector<1x64xf32>
    %179 = arith.mulf %126, %178 : vector<1x64xf32>
    %180 = arith.addf %177, %179 : vector<1x64xf32>
    %181 = vector.extract_strided_slice %69 {offsets = [1, 0], sizes = [1, 64], strides = [1, 1]} : vector<8x64xf32> to vector<1x64xf32>
    %182 = arith.negf %181 : vector<1x64xf32>
    %183 = math.exp %182 : vector<1x64xf32>
    %cst_82 = arith.constant 1.000000e+00 : f32
    %184 = vector.broadcast %cst_82 : f32 to vector<1x64xf32>
    %185 = arith.addf %184, %183 : vector<1x64xf32>
    %186 = arith.divf %184, %185 : vector<1x64xf32>
    %187 = arith.mulf %181, %186 : vector<1x64xf32>
    %188 = arith.mulf %180, %187 : vector<1x64xf32>
    %c1 = arith.constant 1 : index
    %c0_83 = arith.constant 0 : index
    %189 = vector.load %arg25[%c1, %c0_83] : memref<8x64xf32, #tpu.memory_space<vmem>>, vector<1x64xf32>
    tpu.vector_store %arg25[%c1, %c0_83], %188 {strides = array<i32>} : memref<8x64xf32, #tpu.memory_space<vmem>>, vector<1x64xf32>,
    %c32 = arith.constant 32 : index
    %c0_84 = arith.constant 0 : index
    %190 = vector.load %arg22[%c32, %c0_84] : memref<128x64xf32, #tpu.memory_space<vmem>>, vector<16x64xf32>
    %191 = arith.mulf %190, %173 : vector<16x64xf32>
    %c32_85 = arith.constant 32 : index
    %c0_86 = arith.constant 0 : index
    %192 = vector.load %arg23[%c32_85, %c0_86] : memref<128x64xf32, #tpu.memory_space<vmem>>, vector<16x64xf32>
    %193 = arith.addf %191, %192 : vector<16x64xf32>
    %c32_87 = arith.constant 32 : index
    %c0_88 = arith.constant 0 : index
    %194 = vector.load %arg24[%c32_87, %c0_88] : memref<128x64xf32, #tpu.memory_space<vmem>>, vector<16x64xf32>
    %195 = arith.mulf %193, %194 : vector<16x64xf32>
    %cst_89 = arith.constant dense<0.000000e+00> : vector<64xf32>
    %196 = vector.multi_reduction <add>, %195, %cst_89 [0] : vector<16x64xf32> to vector<64xf32>
    %197 = vector.shape_cast %196 : vector<64xf32> to vector<1x64xf32>
    %198 = vector.extract_strided_slice %102 {offsets = [2, 0], sizes = [1, 64], strides = [1, 1]} : vector<8x64xf32> to vector<1x64xf32>
    %199 = arith.mulf %126, %198 : vector<1x64xf32>
    %200 = arith.addf %197, %199 : vector<1x64xf32>
    %201 = vector.extract_strided_slice %69 {offsets = [2, 0], sizes = [1, 64], strides = [1, 1]} : vector<8x64xf32> to vector<1x64xf32>
    %202 = arith.negf %201 : vector<1x64xf32>
    %203 = math.exp %202 : vector<1x64xf32>
    %cst_90 = arith.constant 1.000000e+00 : f32
    %204 = vector.broadcast %cst_90 : f32 to vector<1x64xf32>
    %205 = arith.addf %204, %203 : vector<1x64xf32>
    %206 = arith.divf %204, %205 : vector<1x64xf32>
    %207 = arith.mulf %201, %206 : vector<1x64xf32>
    %208 = arith.mulf %200, %207 : vector<1x64xf32>
    %c2 = arith.constant 2 : index
    %c0_91 = arith.constant 0 : index
    %209 = vector.load %arg25[%c2, %c0_91] : memref<8x64xf32, #tpu.memory_space<vmem>>, vector<1x64xf32>
    tpu.vector_store %arg25[%c2, %c0_91], %208 {strides = array<i32>} : memref<8x64xf32, #tpu.memory_space<vmem>>, vector<1x64xf32>,
    %c48 = arith.constant 48 : index
    %c0_92 = arith.constant 0 : index
    %210 = vector.load %arg22[%c48, %c0_92] : memref<128x64xf32, #tpu.memory_space<vmem>>, vector<16x64xf32>
    %211 = arith.mulf %210, %193 : vector<16x64xf32>
    %c48_93 = arith.constant 48 : index
    %c0_94 = arith.constant 0 : index
    %212 = vector.load %arg23[%c48_93, %c0_94] : memref<128x64xf32, #tpu.memory_space<vmem>>, vector<16x64xf32>
    %213 = arith.addf %211, %212 : vector<16x64xf32>
    %c48_95 = arith.constant 48 : index
    %c0_96 = arith.constant 0 : index
    %214 = vector.load %arg24[%c48_95, %c0_96] : memref<128x64xf32, #tpu.memory_space<vmem>>, vector<16x64xf32>
    %215 = arith.mulf %213, %214 : vector<16x64xf32>
    %cst_97 = arith.constant dense<0.000000e+00> : vector<64xf32>
    %216 = vector.multi_reduction <add>, %215, %cst_97 [0] : vector<16x64xf32> to vector<64xf32>
    %217 = vector.shape_cast %216 : vector<64xf32> to vector<1x64xf32>
    %218 = vector.extract_strided_slice %102 {offsets = [3, 0], sizes = [1, 64], strides = [1, 1]} : vector<8x64xf32> to vector<1x64xf32>
    %219 = arith.mulf %126, %218 : vector<1x64xf32>
    %220 = arith.addf %217, %219 : vector<1x64xf32>
    %221 = vector.extract_strided_slice %69 {offsets = [3, 0], sizes = [1, 64], strides = [1, 1]} : vector<8x64xf32> to vector<1x64xf32>
    %222 = arith.negf %221 : vector<1x64xf32>
    %223 = math.exp %222 : vector<1x64xf32>
    %cst_98 = arith.constant 1.000000e+00 : f32
    %224 = vector.broadcast %cst_98 : f32 to vector<1x64xf32>
    %225 = arith.addf %224, %223 : vector<1x64xf32>
    %226 = arith.divf %224, %225 : vector<1x64xf32>
    %227 = arith.mulf %221, %226 : vector<1x64xf32>
    %228 = arith.mulf %220, %227 : vector<1x64xf32>
    %c3 = arith.constant 3 : index
    %c0_99 = arith.constant 0 : index
    %229 = vector.load %arg25[%c3, %c0_99] : memref<8x64xf32, #tpu.memory_space<vmem>>, vector<1x64xf32>
    tpu.vector_store %arg25[%c3, %c0_99], %228 {strides = array<i32>} : memref<8x64xf32, #tpu.memory_space<vmem>>, vector<1x64xf32>,
    %c64 = arith.constant 64 : index
    %c0_100 = arith.constant 0 : index
    %230 = vector.load %arg22[%c64, %c0_100] : memref<128x64xf32, #tpu.memory_space<vmem>>, vector<16x64xf32>
    %231 = arith.mulf %230, %213 : vector<16x64xf32>
    %c64_101 = arith.constant 64 : index
    %c0_102 = arith.constant 0 : index
    %232 = vector.load %arg23[%c64_101, %c0_102] : memref<128x64xf32, #tpu.memory_space<vmem>>, vector<16x64xf32>
    %233 = arith.addf %231, %232 : vector<16x64xf32>
    %c64_103 = arith.constant 64 : index
    %c0_104 = arith.constant 0 : index
    %234 = vector.load %arg24[%c64_103, %c0_104] : memref<128x64xf32, #tpu.memory_space<vmem>>, vector<16x64xf32>
    %235 = arith.mulf %233, %234 : vector<16x64xf32>
    %cst_105 = arith.constant dense<0.000000e+00> : vector<64xf32>
    %236 = vector.multi_reduction <add>, %235, %cst_105 [0] : vector<16x64xf32> to vector<64xf32>
    %237 = vector.shape_cast %236 : vector<64xf32> to vector<1x64xf32>
    %238 = vector.extract_strided_slice %102 {offsets = [4, 0], sizes = [1, 64], strides = [1, 1]} : vector<8x64xf32> to vector<1x64xf32>
    %239 = arith.mulf %126, %238 : vector<1x64xf32>
    %240 = arith.addf %237, %239 : vector<1x64xf32>
    %241 = vector.extract_strided_slice %69 {offsets = [4, 0], sizes = [1, 64], strides = [1, 1]} : vector<8x64xf32> to vector<1x64xf32>
    %242 = arith.negf %241 : vector<1x64xf32>
    %243 = math.exp %242 : vector<1x64xf32>
    %cst_106 = arith.constant 1.000000e+00 : f32
    %244 = vector.broadcast %cst_106 : f32 to vector<1x64xf32>
    %245 = arith.addf %244, %243 : vector<1x64xf32>
    %246 = arith.divf %244, %245 : vector<1x64xf32>
    %247 = arith.mulf %241, %246 : vector<1x64xf32>
    %248 = arith.mulf %240, %247 : vector<1x64xf32>
    %c4 = arith.constant 4 : index
    %c0_107 = arith.constant 0 : index
    %249 = vector.load %arg25[%c4, %c0_107] : memref<8x64xf32, #tpu.memory_space<vmem>>, vector<1x64xf32>
    tpu.vector_store %arg25[%c4, %c0_107], %248 {strides = array<i32>} : memref<8x64xf32, #tpu.memory_space<vmem>>, vector<1x64xf32>,
    %c80 = arith.constant 80 : index
    %c0_108 = arith.constant 0 : index
    %250 = vector.load %arg22[%c80, %c0_108] : memref<128x64xf32, #tpu.memory_space<vmem>>, vector<16x64xf32>
    %251 = arith.mulf %250, %233 : vector<16x64xf32>
    %c80_109 = arith.constant 80 : index
    %c0_110 = arith.constant 0 : index
    %252 = vector.load %arg23[%c80_109, %c0_110] : memref<128x64xf32, #tpu.memory_space<vmem>>, vector<16x64xf32>
    %253 = arith.addf %251, %252 : vector<16x64xf32>
    %c80_111 = arith.constant 80 : index
    %c0_112 = arith.constant 0 : index
    %254 = vector.load %arg24[%c80_111, %c0_112] : memref<128x64xf32, #tpu.memory_space<vmem>>, vector<16x64xf32>
    %255 = arith.mulf %253, %254 : vector<16x64xf32>
    %cst_113 = arith.constant dense<0.000000e+00> : vector<64xf32>
    %256 = vector.multi_reduction <add>, %255, %cst_113 [0] : vector<16x64xf32> to vector<64xf32>
    %257 = vector.shape_cast %256 : vector<64xf32> to vector<1x64xf32>
    %258 = vector.extract_strided_slice %102 {offsets = [5, 0], sizes = [1, 64], strides = [1, 1]} : vector<8x64xf32> to vector<1x64xf32>
    %259 = arith.mulf %126, %258 : vector<1x64xf32>
    %260 = arith.addf %257, %259 : vector<1x64xf32>
    %261 = vector.extract_strided_slice %69 {offsets = [5, 0], sizes = [1, 64], strides = [1, 1]} : vector<8x64xf32> to vector<1x64xf32>
    %262 = arith.negf %261 : vector<1x64xf32>
    %263 = math.exp %262 : vector<1x64xf32>
    %cst_114 = arith.constant 1.000000e+00 : f32
    %264 = vector.broadcast %cst_114 : f32 to vector<1x64xf32>
    %265 = arith.addf %264, %263 : vector<1x64xf32>
    %266 = arith.divf %264, %265 : vector<1x64xf32>
    %267 = arith.mulf %261, %266 : vector<1x64xf32>
    %268 = arith.mulf %260, %267 : vector<1x64xf32>
    %c5 = arith.constant 5 : index
    %c0_115 = arith.constant 0 : index
    %269 = vector.load %arg25[%c5, %c0_115] : memref<8x64xf32, #tpu.memory_space<vmem>>, vector<1x64xf32>
    tpu.vector_store %arg25[%c5, %c0_115], %268 {strides = array<i32>} : memref<8x64xf32, #tpu.memory_space<vmem>>, vector<1x64xf32>,
    %c96 = arith.constant 96 : index
    %c0_116 = arith.constant 0 : index
    %270 = vector.load %arg22[%c96, %c0_116] : memref<128x64xf32, #tpu.memory_space<vmem>>, vector<16x64xf32>
    %271 = arith.mulf %270, %253 : vector<16x64xf32>
    %c96_117 = arith.constant 96 : index
    %c0_118 = arith.constant 0 : index
    %272 = vector.load %arg23[%c96_117, %c0_118] : memref<128x64xf32, #tpu.memory_space<vmem>>, vector<16x64xf32>
    %273 = arith.addf %271, %272 : vector<16x64xf32>
    %c96_119 = arith.constant 96 : index
    %c0_120 = arith.constant 0 : index
    %274 = vector.load %arg24[%c96_119, %c0_120] : memref<128x64xf32, #tpu.memory_space<vmem>>, vector<16x64xf32>
    %275 = arith.mulf %273, %274 : vector<16x64xf32>
    %cst_121 = arith.constant dense<0.000000e+00> : vector<64xf32>
    %276 = vector.multi_reduction <add>, %275, %cst_121 [0] : vector<16x64xf32> to vector<64xf32>
    %277 = vector.shape_cast %276 : vector<64xf32> to vector<1x64xf32>
    %278 = vector.extract_strided_slice %102 {offsets = [6, 0], sizes = [1, 64], strides = [1, 1]} : vector<8x64xf32> to vector<1x64xf32>
    %279 = arith.mulf %126, %278 : vector<1x64xf32>
    %280 = arith.addf %277, %279 : vector<1x64xf32>
    %281 = vector.extract_strided_slice %69 {offsets = [6, 0], sizes = [1, 64], strides = [1, 1]} : vector<8x64xf32> to vector<1x64xf32>
    %282 = arith.negf %281 : vector<1x64xf32>
    %283 = math.exp %282 : vector<1x64xf32>
    %cst_122 = arith.constant 1.000000e+00 : f32
    %284 = vector.broadcast %cst_122 : f32 to vector<1x64xf32>
    %285 = arith.addf %284, %283 : vector<1x64xf32>
    %286 = arith.divf %284, %285 : vector<1x64xf32>
    %287 = arith.mulf %281, %286 : vector<1x64xf32>
    %288 = arith.mulf %280, %287 : vector<1x64xf32>
    %c6 = arith.constant 6 : index
    %c0_123 = arith.constant 0 : index
    %289 = vector.load %arg25[%c6, %c0_123] : memref<8x64xf32, #tpu.memory_space<vmem>>, vector<1x64xf32>
    tpu.vector_store %arg25[%c6, %c0_123], %288 {strides = array<i32>} : memref<8x64xf32, #tpu.memory_space<vmem>>, vector<1x64xf32>,
    %c112 = arith.constant 112 : index
    %c0_124 = arith.constant 0 : index
    %290 = vector.load %arg22[%c112, %c0_124] : memref<128x64xf32, #tpu.memory_space<vmem>>, vector<16x64xf32>
    %291 = arith.mulf %290, %273 : vector<16x64xf32>
    %c112_125 = arith.constant 112 : index
    %c0_126 = arith.constant 0 : index
    %292 = vector.load %arg23[%c112_125, %c0_126] : memref<128x64xf32, #tpu.memory_space<vmem>>, vector<16x64xf32>
    %293 = arith.addf %291, %292 : vector<16x64xf32>
    %c112_127 = arith.constant 112 : index
    %c0_128 = arith.constant 0 : index
    %294 = vector.load %arg24[%c112_127, %c0_128] : memref<128x64xf32, #tpu.memory_space<vmem>>, vector<16x64xf32>
    %295 = arith.mulf %293, %294 : vector<16x64xf32>
    %cst_129 = arith.constant dense<0.000000e+00> : vector<64xf32>
    %296 = vector.multi_reduction <add>, %295, %cst_129 [0] : vector<16x64xf32> to vector<64xf32>
    %297 = vector.shape_cast %296 : vector<64xf32> to vector<1x64xf32>
    %298 = vector.extract_strided_slice %102 {offsets = [7, 0], sizes = [1, 64], strides = [1, 1]} : vector<8x64xf32> to vector<1x64xf32>
    %299 = arith.mulf %126, %298 : vector<1x64xf32>
    %300 = arith.addf %297, %299 : vector<1x64xf32>
    %301 = vector.extract_strided_slice %69 {offsets = [7, 0], sizes = [1, 64], strides = [1, 1]} : vector<8x64xf32> to vector<1x64xf32>
    %302 = arith.negf %301 : vector<1x64xf32>
    %303 = math.exp %302 : vector<1x64xf32>
    %cst_130 = arith.constant 1.000000e+00 : f32
    %304 = vector.broadcast %cst_130 : f32 to vector<1x64xf32>
    %305 = arith.addf %304, %303 : vector<1x64xf32>
    %306 = arith.divf %304, %305 : vector<1x64xf32>
    %307 = arith.mulf %301, %306 : vector<1x64xf32>
    %308 = arith.mulf %300, %307 : vector<1x64xf32>
    %c7 = arith.constant 7 : index
    %c0_131 = arith.constant 0 : index
    %309 = vector.load %arg25[%c7, %c0_131] : memref<8x64xf32, #tpu.memory_space<vmem>>, vector<1x64xf32>
    tpu.vector_store %arg25[%c7, %c0_131], %308 {strides = array<i32>} : memref<8x64xf32, #tpu.memory_space<vmem>>, vector<1x64xf32>,
    %c0_132 = arith.constant 0 : index
    %c0_133 = arith.constant 0 : index
    %310 = vector.load %arg25[%c0_132, %c0_133] : memref<8x64xf32, #tpu.memory_space<vmem>>, vector<8x64xf32>
    %c0_134 = arith.constant 0 : index
    %c0_135 = arith.constant 0 : index
    %c0_136 = arith.constant 0 : index
    %311 = vector.load %arg12[%c0_134, %c0_135, %c0_136] : memref<2x64x32xf32, #tpu.memory_space<vmem>>, vector<1x64x32xf32>
    %312 = vector.shape_cast %311 : vector<1x64x32xf32> to vector<64x32xf32>
    %cst_137 = arith.constant dense<0.000000e+00> : vector<8x32xf32>
    %313 = tpu.matmul %310, %312, %cst_137 {dimension_numbers = #tpu.dot_dimension_numbers<[1], [0], [0], [1], [0, 0, 1, 1], [], []>} : vector<8x64xf32>, vector<64x32xf32>, vector<8x32xf32> -> vector<8x32xf32>
    %314 = arith.addf %313, %26 : vector<8x32xf32>
    %c0_138 = arith.constant 0 : index
    %c0_139 = arith.constant 0 : index
    %c0_140 = arith.constant 0 : index
    %315 = vector.load %arg13[%c0_138, %c0_139, %c0_140] : memref<2x1x32xf32, #tpu.memory_space<vmem>>, vector<1x1x32xf32>
    %316 = vector.shape_cast %315 : vector<1x1x32xf32> to vector<1x32xf32>
    %c0_141 = arith.constant 0 : index
    %c0_142 = arith.constant 0 : index
    %c0_143 = arith.constant 0 : index
    %317 = vector.load %arg14[%c0_141, %c0_142, %c0_143] : memref<2x1x32xf32, #tpu.memory_space<vmem>>, vector<1x1x32xf32>
    %318 = vector.shape_cast %317 : vector<1x1x32xf32> to vector<1x32xf32>
    %cst_144 = arith.constant dense<0.000000e+00> : vector<8xf32>
    %319 = vector.multi_reduction <add>, %314, %cst_144 [1] : vector<8x32xf32> to vector<8xf32>
    %320 = vector.shape_cast %319 : vector<8xf32> to vector<8x1xf32>
    %cst_145 = arith.constant 3.200000e+01 : f32
    %321 = vector.broadcast %cst_145 : f32 to vector<8x1xf32>
    %322 = arith.divf %320, %321 : vector<8x1xf32>
    %323 = vector.broadcast %322 : vector<8x1xf32> to vector<8x32xf32>
    %324 = arith.subf %314, %323 : vector<8x32xf32>
    %325 = arith.mulf %324, %324 : vector<8x32xf32>
    %cst_146 = arith.constant dense<0.000000e+00> : vector<8xf32>
    %326 = vector.multi_reduction <add>, %325, %cst_146 [1] : vector<8x32xf32> to vector<8xf32>
    %327 = vector.shape_cast %326 : vector<8xf32> to vector<8x1xf32>
    %cst_147 = arith.constant 3.200000e+01 : f32
    %328 = vector.broadcast %cst_147 : f32 to vector<8x1xf32>
    %329 = arith.divf %327, %328 : vector<8x1xf32>
    %330 = vector.broadcast %322 : vector<8x1xf32> to vector<8x32xf32>
    %331 = arith.subf %314, %330 : vector<8x32xf32>
    %cst_148 = arith.constant 9.99999996E-13 : f32
    %332 = vector.broadcast %cst_148 : f32 to vector<8x1xf32>
    %333 = arith.addf %329, %332 : vector<8x1xf32>
    %334 = math.rsqrt %333 : vector<8x1xf32>
    %335 = vector.broadcast %334 : vector<8x1xf32> to vector<8x32xf32>
    %336 = arith.mulf %331, %335 : vector<8x32xf32>
    %337 = vector.broadcast %316 : vector<1x32xf32> to vector<8x32xf32>
    %338 = arith.mulf %336, %337 : vector<8x32xf32>
    %339 = vector.broadcast %318 : vector<1x32xf32> to vector<8x32xf32>
    %340 = arith.addf %338, %339 : vector<8x32xf32>
    %c0_149 = arith.constant 0 : index
    %c0_150 = arith.constant 0 : index
    %c0_151 = arith.constant 0 : index
    %341 = vector.load %arg15[%c0_149, %c0_150, %c0_151] : memref<2x32x128xf32, #tpu.memory_space<vmem>>, vector<1x32x128xf32>
    %342 = vector.shape_cast %341 : vector<1x32x128xf32> to vector<32x128xf32>
    %cst_152 = arith.constant dense<0.000000e+00> : vector<8x128xf32>
    %343 = tpu.matmul %340, %342, %cst_152 {dimension_numbers = #tpu.dot_dimension_numbers<[1], [0], [0], [1], [0, 0, 1, 1], [], []>} : vector<8x32xf32>, vector<32x128xf32>, vector<8x128xf32> -> vector<8x128xf32>
    %c0_153 = arith.constant 0 : index
    %c0_154 = arith.constant 0 : index
    %c0_155 = arith.constant 0 : index
    %344 = vector.load %arg16[%c0_153, %c0_154, %c0_155] : memref<2x1x128xf32, #tpu.memory_space<vmem>>, vector<1x1x128xf32>
    %345 = vector.shape_cast %344 : vector<1x1x128xf32> to vector<1x128xf32>
    %346 = vector.broadcast %345 : vector<1x128xf32> to vector<8x128xf32>
    %347 = arith.addf %343, %346 : vector<8x128xf32>
    %cst_156 = arith.constant 5.000000e-01 : f32
    %348 = vector.broadcast %cst_156 : f32 to vector<8x128xf32>
    %349 = arith.mulf %348, %347 : vector<8x128xf32>
    %cst_157 = arith.constant 0.707106769 : f32
    %350 = vector.broadcast %cst_157 : f32 to vector<8x128xf32>
    %351 = arith.mulf %347, %350 : vector<8x128xf32>
    %cst_158 = arith.constant 0.000000e+00 : f32
    %352 = vector.broadcast %cst_158 : f32 to vector<8x128xf32>
    %353 = arith.cmpf oge, %351, %352 : vector<8x128xf32>
    %cst_159 = arith.constant 1.000000e+00 : f32
    %cst_160 = arith.constant -1.000000e+00 : f32
    %354 = vector.broadcast %cst_159 : f32 to vector<8x128xf32>
    %355 = vector.broadcast %cst_160 : f32 to vector<8x128xf32>
    %356 = arith.select %353, %354, %355 : vector<8x128xi1>, vector<8x128xf32>
    %357 = math.absf %351 : vector<8x128xf32>
    %cst_161 = arith.constant 0.327591091 : f32
    %358 = vector.broadcast %cst_161 : f32 to vector<8x128xf32>
    %359 = arith.mulf %358, %357 : vector<8x128xf32>
    %cst_162 = arith.constant 1.000000e+00 : f32
    %360 = vector.broadcast %cst_162 : f32 to vector<8x128xf32>
    %361 = arith.addf %360, %359 : vector<8x128xf32>
    %cst_163 = arith.constant 1.000000e+00 : f32
    %362 = vector.broadcast %cst_163 : f32 to vector<8x128xf32>
    %363 = arith.divf %362, %361 : vector<8x128xf32>
    %cst_164 = arith.constant 1.06140542 : f32
    %364 = vector.broadcast %cst_164 : f32 to vector<8x128xf32>
    %365 = arith.mulf %364, %363 : vector<8x128xf32>
    %cst_165 = arith.constant -1.45315206 : f32
    %366 = vector.broadcast %cst_165 : f32 to vector<8x128xf32>
    %367 = arith.addf %365, %366 : vector<8x128xf32>
    %368 = arith.mulf %367, %363 : vector<8x128xf32>
    %cst_166 = arith.constant 1.42141378 : f32
    %369 = vector.broadcast %cst_166 : f32 to vector<8x128xf32>
    %370 = arith.addf %368, %369 : vector<8x128xf32>
    %371 = arith.mulf %370, %363 : vector<8x128xf32>
    %cst_167 = arith.constant -0.284496725 : f32
    %372 = vector.broadcast %cst_167 : f32 to vector<8x128xf32>
    %373 = arith.addf %371, %372 : vector<8x128xf32>
    %374 = arith.mulf %373, %363 : vector<8x128xf32>
    %cst_168 = arith.constant 0.254829586 : f32
    %375 = vector.broadcast %cst_168 : f32 to vector<8x128xf32>
    %376 = arith.addf %374, %375 : vector<8x128xf32>
    %377 = arith.mulf %376, %363 : vector<8x128xf32>
    %cst_169 = arith.constant 0.000000e+00 : f32
    %378 = vector.broadcast %cst_169 : f32 to vector<8x128xf32>
    %379 = arith.subf %378, %357 : vector<8x128xf32>
    %380 = arith.mulf %379, %357 : vector<8x128xf32>
    %381 = math.exp %380 : vector<8x128xf32>
    %382 = arith.mulf %377, %381 : vector<8x128xf32>
    %cst_170 = arith.constant 1.000000e+00 : f32
    %383 = vector.broadcast %cst_170 : f32 to vector<8x128xf32>
    %384 = arith.subf %383, %382 : vector<8x128xf32>
    %385 = arith.mulf %356, %384 : vector<8x128xf32>
    %cst_171 = arith.constant 1.000000e+00 : f32
    %386 = vector.broadcast %cst_171 : f32 to vector<8x128xf32>
    %387 = arith.addf %386, %385 : vector<8x128xf32>
    %388 = arith.mulf %349, %387 : vector<8x128xf32>
    %c0_172 = arith.constant 0 : index
    %c0_173 = arith.constant 0 : index
    %c0_174 = arith.constant 0 : index
    %389 = vector.load %arg17[%c0_172, %c0_173, %c0_174] : memref<2x128x32xf32, #tpu.memory_space<vmem>>, vector<1x128x32xf32>
    %390 = vector.shape_cast %389 : vector<1x128x32xf32> to vector<128x32xf32>
    %cst_175 = arith.constant dense<0.000000e+00> : vector<8x32xf32>
    %391 = tpu.matmul %388, %390, %cst_175 {dimension_numbers = #tpu.dot_dimension_numbers<[1], [0], [0], [1], [0, 0, 1, 1], [], []>} : vector<8x128xf32>, vector<128x32xf32>, vector<8x32xf32> -> vector<8x32xf32>
    %c0_176 = arith.constant 0 : index
    %c0_177 = arith.constant 0 : index
    %c0_178 = arith.constant 0 : index
    %392 = vector.load %arg18[%c0_176, %c0_177, %c0_178] : memref<2x1x32xf32, #tpu.memory_space<vmem>>, vector<1x1x32xf32>
    %393 = vector.shape_cast %392 : vector<1x1x32xf32> to vector<1x32xf32>
    %394 = vector.broadcast %393 : vector<1x32xf32> to vector<8x32xf32>
    %395 = arith.addf %391, %394 : vector<8x32xf32>
    %396 = arith.addf %395, %340 : vector<8x32xf32>
    %c0_179 = arith.constant 0 : index
    %c0_180 = arith.constant 0 : index
    %c0_181 = arith.constant 0 : index
    %397 = vector.load %arg19[%c0_179, %c0_180, %c0_181] : memref<2x1x32xf32, #tpu.memory_space<vmem>>, vector<1x1x32xf32>
    %398 = vector.shape_cast %397 : vector<1x1x32xf32> to vector<1x32xf32>
    %c0_182 = arith.constant 0 : index
    %c0_183 = arith.constant 0 : index
    %c0_184 = arith.constant 0 : index
    %399 = vector.load %arg20[%c0_182, %c0_183, %c0_184] : memref<2x1x32xf32, #tpu.memory_space<vmem>>, vector<1x1x32xf32>
    %400 = vector.shape_cast %399 : vector<1x1x32xf32> to vector<1x32xf32>
    %cst_185 = arith.constant dense<0.000000e+00> : vector<8xf32>
    %401 = vector.multi_reduction <add>, %396, %cst_185 [1] : vector<8x32xf32> to vector<8xf32>
    %402 = vector.shape_cast %401 : vector<8xf32> to vector<8x1xf32>
    %cst_186 = arith.constant 3.200000e+01 : f32
    %403 = vector.broadcast %cst_186 : f32 to vector<8x1xf32>
    %404 = arith.divf %402, %403 : vector<8x1xf32>
    %405 = vector.broadcast %404 : vector<8x1xf32> to vector<8x32xf32>
    %406 = arith.subf %396, %405 : vector<8x32xf32>
    %407 = arith.mulf %406, %406 : vector<8x32xf32>
    %cst_187 = arith.constant dense<0.000000e+00> : vector<8xf32>
    %408 = vector.multi_reduction <add>, %407, %cst_187 [1] : vector<8x32xf32> to vector<8xf32>
    %409 = vector.shape_cast %408 : vector<8xf32> to vector<8x1xf32>
    %cst_188 = arith.constant 3.200000e+01 : f32
    %410 = vector.broadcast %cst_188 : f32 to vector<8x1xf32>
    %411 = arith.divf %409, %410 : vector<8x1xf32>
    %412 = vector.broadcast %404 : vector<8x1xf32> to vector<8x32xf32>
    %413 = arith.subf %396, %412 : vector<8x32xf32>
    %cst_189 = arith.constant 9.99999996E-13 : f32
    %414 = vector.broadcast %cst_189 : f32 to vector<8x1xf32>
    %415 = arith.addf %411, %414 : vector<8x1xf32>
    %416 = math.rsqrt %415 : vector<8x1xf32>
    %417 = vector.broadcast %416 : vector<8x1xf32> to vector<8x32xf32>
    %418 = arith.mulf %413, %417 : vector<8x32xf32>
    %419 = vector.broadcast %398 : vector<1x32xf32> to vector<8x32xf32>
    %420 = arith.mulf %418, %419 : vector<8x32xf32>
    %421 = vector.broadcast %400 : vector<1x32xf32> to vector<8x32xf32>
    %422 = arith.addf %420, %421 : vector<8x32xf32>
    %c1_190 = arith.constant 1 : index
    %c0_191 = arith.constant 0 : index
    %c0_192 = arith.constant 0 : index
    %423 = vector.load %arg5[%c1_190, %c0_191, %c0_192] : memref<2x32x128xf32, #tpu.memory_space<vmem>>, vector<1x32x128xf32>
    %424 = vector.shape_cast %423 : vector<1x32x128xf32> to vector<32x128xf32>
    %cst_193 = arith.constant dense<0.000000e+00> : vector<8x128xf32>
    %425 = tpu.matmul %422, %424, %cst_193 {dimension_numbers = #tpu.dot_dimension_numbers<[1], [0], [0], [1], [0, 0, 1, 1], [], []>} : vector<8x32xf32>, vector<32x128xf32>, vector<8x128xf32> -> vector<8x128xf32>
    %426 = vector.extract_strided_slice %425 {offsets = [0, 0], sizes = [8, 64], strides = [1, 1]} : vector<8x128xf32> to vector<8x64xf32>
    %427 = vector.extract_strided_slice %425 {offsets = [0, 64], sizes = [8, 64], strides = [1, 1]} : vector<8x128xf32> to vector<8x64xf32>
    %c1_194 = arith.constant 1 : index
    %c0_195 = arith.constant 0 : index
    %c0_196 = arith.constant 0 : index
    %428 = vector.load %arg6[%c1_194, %c0_195, %c0_196] : memref<2x4x64xf32, #tpu.memory_space<vmem>>, vector<1x4x64xf32>
    %429 = vector.shape_cast %428 : vector<1x4x64xf32> to vector<4x64xf32>
    %430 = vector.extract_strided_slice %429 {offsets = [3, 0], sizes = [1, 64], strides = [1, 1]} : vector<4x64xf32> to vector<1x64xf32>
    %431 = vector.broadcast %430 : vector<1x64xf32> to vector<8x64xf32>
    %432 = arith.mulf %431, %426 : vector<8x64xf32>
    %c1_197 = arith.constant 1 : index
    %c0_198 = arith.constant 0 : index
    %c0_199 = arith.constant 0 : index
    %433 = vector.load %arg7[%c1_197, %c0_198, %c0_199] : memref<2x1x64xf32, #tpu.memory_space<vmem>>, vector<1x1x64xf32>
    %434 = vector.shape_cast %433 : vector<1x1x64xf32> to vector<1x64xf32>
    %435 = vector.broadcast %434 : vector<1x64xf32> to vector<8x64xf32>
    %436 = arith.addf %432, %435 : vector<8x64xf32>
    %437 = vector.extract_strided_slice %429 {offsets = [2, 0], sizes = [1, 64], strides = [1, 1]} : vector<4x64xf32> to vector<1x64xf32>
    %c1_i32_200 = arith.constant 1 : i32
    %438 = tpu.dynamic_rotate %426 by %c1_i32_200 dim 0 : vector<8x64xf32>, i32 -> vector<8x64xf32>
    %439 = vector.broadcast %437 : vector<1x64xf32> to vector<8x64xf32>
    %440 = arith.mulf %439, %438 : vector<8x64xf32>
    %441 = arith.mulf %33, %440 : vector<8x64xf32>
    %442 = arith.addf %436, %441 : vector<8x64xf32>
    %443 = vector.extract_strided_slice %429 {offsets = [1, 0], sizes = [1, 64], strides = [1, 1]} : vector<4x64xf32> to vector<1x64xf32>
    %c2_i32_201 = arith.constant 2 : i32
    %444 = tpu.dynamic_rotate %426 by %c2_i32_201 dim 0 : vector<8x64xf32>, i32 -> vector<8x64xf32>
    %445 = vector.broadcast %443 : vector<1x64xf32> to vector<8x64xf32>
    %446 = arith.mulf %445, %444 : vector<8x64xf32>
    %447 = arith.mulf %38, %446 : vector<8x64xf32>
    %448 = arith.addf %442, %447 : vector<8x64xf32>
    %449 = vector.extract_strided_slice %429 {offsets = [0, 0], sizes = [1, 64], strides = [1, 1]} : vector<4x64xf32> to vector<1x64xf32>
    %c3_i32_202 = arith.constant 3 : i32
    %450 = tpu.dynamic_rotate %426 by %c3_i32_202 dim 0 : vector<8x64xf32>, i32 -> vector<8x64xf32>
    %451 = vector.broadcast %449 : vector<1x64xf32> to vector<8x64xf32>
    %452 = arith.mulf %451, %450 : vector<8x64xf32>
    %453 = arith.mulf %43, %452 : vector<8x64xf32>
    %454 = arith.addf %448, %453 : vector<8x64xf32>
    %455 = arith.negf %454 : vector<8x64xf32>
    %456 = math.exp %455 : vector<8x64xf32>
    %cst_203 = arith.constant 1.000000e+00 : f32
    %457 = vector.broadcast %cst_203 : f32 to vector<8x64xf32>
    %458 = arith.addf %457, %456 : vector<8x64xf32>
    %459 = arith.divf %457, %458 : vector<8x64xf32>
    %460 = arith.mulf %454, %459 : vector<8x64xf32>
    %c1_204 = arith.constant 1 : index
    %c0_205 = arith.constant 0 : index
    %c0_206 = arith.constant 0 : index
    %461 = vector.load %arg8[%c1_204, %c0_205, %c0_206] : memref<2x64x128xf32, #tpu.memory_space<vmem>>, vector<1x64x128xf32>
    %462 = vector.shape_cast %461 : vector<1x64x128xf32> to vector<64x128xf32>
    %cst_207 = arith.constant dense<0.000000e+00> : vector<8x128xf32>
    %463 = tpu.matmul %460, %462, %cst_207 {dimension_numbers = #tpu.dot_dimension_numbers<[1], [0], [0], [1], [0, 0, 1, 1], [], []>} : vector<8x64xf32>, vector<64x128xf32>, vector<8x128xf32> -> vector<8x128xf32>
    %464 = vector.extract_strided_slice %463 {offsets = [0, 0], sizes = [8, 64], strides = [1, 1]} : vector<8x128xf32> to vector<8x64xf32>
    %c1_208 = arith.constant 1 : index
    %c0_209 = arith.constant 0 : index
    %c0_210 = arith.constant 0 : index
    %465 = vector.load %arg9[%c1_208, %c0_209, %c0_210] : memref<2x1x64xf32, #tpu.memory_space<vmem>>, vector<1x1x64xf32>
    %466 = vector.shape_cast %465 : vector<1x1x64xf32> to vector<1x64xf32>
    %467 = vector.broadcast %466 : vector<1x64xf32> to vector<8x64xf32>
    %468 = arith.addf %464, %467 : vector<8x64xf32>
    %cst_211 = arith.constant 0.000000e+00 : f32
    %469 = vector.broadcast %cst_211 : f32 to vector<8x64xf32>
    %470 = arith.maximumf %468, %469 : vector<8x64xf32>
    %471 = math.absf %468 : vector<8x64xf32>
    %cst_212 = arith.constant 0.000000e+00 : f32
    %472 = vector.broadcast %cst_212 : f32 to vector<8x64xf32>
    %473 = arith.subf %472, %471 : vector<8x64xf32>
    %474 = math.exp %473 : vector<8x64xf32>
    %cst_213 = arith.constant 1.000000e+00 : f32
    %475 = vector.broadcast %cst_213 : f32 to vector<8x64xf32>
    %476 = arith.addf %475, %474 : vector<8x64xf32>
    %477 = math.log %476 : vector<8x64xf32>
    %478 = arith.addf %470, %477 : vector<8x64xf32>
    %479 = vector.extract_strided_slice %463 {offsets = [0, 64], sizes = [8, 32], strides = [1, 1]} : vector<8x128xf32> to vector<8x32xf32>
    %480 = arith.mulf %478, %460 : vector<8x64xf32>
    %c1_214 = arith.constant 1 : index
    %c0_215 = arith.constant 0 : index
    %c0_216 = arith.constant 0 : index
    %481 = vector.load %arg10[%c1_214, %c0_215, %c0_216] : memref<2x16x64xf32, #tpu.memory_space<vmem>>, vector<1x16x64xf32>
    %482 = vector.shape_cast %481 : vector<1x16x64xf32> to vector<16x64xf32>
    %c1_217 = arith.constant 1 : index
    %c0_218 = arith.constant 0 : index
    %c0_219 = arith.constant 0 : index
    %483 = vector.load %arg11[%c1_217, %c0_218, %c0_219] : memref<2x1x64xf32, #tpu.memory_space<vmem>>, vector<1x1x64xf32>
    %484 = vector.shape_cast %483 : vector<1x1x64xf32> to vector<1x64xf32>
    %cst_220 = arith.constant dense<0.000000e+00> : vector<128x64xf32>
    %485 = tpu.matmul %57, %478, %cst_220 {dimension_numbers = #tpu.dot_dimension_numbers<[1], [0], [0], [1], [0, 0, 1, 1], [], []>} : vector<128x8xf32>, vector<8x64xf32>, vector<128x64xf32> -> vector<128x64xf32>
    %cst_221 = arith.constant dense<0.000000e+00> : vector<128x64xf32>
    %486 = tpu.matmul %57, %480, %cst_221 {dimension_numbers = #tpu.dot_dimension_numbers<[1], [0], [0], [1], [0, 0, 1, 1], [], []>} : vector<128x8xf32>, vector<8x64xf32>, vector<128x64xf32> -> vector<128x64xf32>
    %cst_222 = arith.constant dense<0.000000e+00> : vector<128x64xf32>
    %487 = tpu.matmul %64, %482, %cst_222 {dimension_numbers = #tpu.dot_dimension_numbers<[1], [0], [0], [1], [0, 0, 1, 1], [], []>} : vector<128x16xf32>, vector<16x64xf32>, vector<128x64xf32> -> vector<128x64xf32>
    %488 = arith.mulf %485, %487 : vector<128x64xf32>
    %489 = math.exp %488 : vector<128x64xf32>
    %c0_223 = arith.constant 0 : index
    %c0_224 = arith.constant 0 : index
    %490 = vector.load %arg22[%c0_223, %c0_224] : memref<128x64xf32, #tpu.memory_space<vmem>>, vector<128x64xf32>
    tpu.vector_store %arg22[%c0_223, %c0_224], %489 {strides = array<i32>} : memref<128x64xf32, #tpu.memory_space<vmem>>, vector<128x64xf32>,
    %cst_225 = arith.constant dense<0.000000e+00> : vector<128x32xf32>
    %491 = tpu.matmul %57, %479, %cst_225 {dimension_numbers = #tpu.dot_dimension_numbers<[1], [0], [0], [1], [0, 0, 1, 1], [], []>} : vector<128x8xf32>, vector<8x32xf32>, vector<128x32xf32> -> vector<128x32xf32>
    %492 = vector.extract_strided_slice %491 {offsets = [0, 0], sizes = [128, 16], strides = [1, 1]} : vector<128x32xf32> to vector<128x16xf32>
    %493 = arith.mulf %492, %64 : vector<128x16xf32>
    %cst_226 = arith.constant dense<0.000000e+00> : vector<128xf32>
    %494 = vector.multi_reduction <add>, %493, %cst_226 [1] : vector<128x16xf32> to vector<128xf32>
    %495 = vector.shape_cast %494 : vector<128xf32> to vector<128x1xf32>
    %496 = vector.extract_strided_slice %491 {offsets = [0, 16], sizes = [128, 16], strides = [1, 1]} : vector<128x32xf32> to vector<128x16xf32>
    %497 = arith.mulf %496, %64 : vector<128x16xf32>
    %cst_227 = arith.constant dense<0.000000e+00> : vector<128xf32>
    %498 = vector.multi_reduction <add>, %497, %cst_227 [1] : vector<128x16xf32> to vector<128xf32>
    %499 = vector.shape_cast %498 : vector<128xf32> to vector<128x1xf32>
    %500 = vector.shape_cast %495 : vector<128x1xf32> to vector<128x1xf32>
    %501 = vector.broadcast %500 : vector<128x1xf32> to vector<128x64xf32>
    %502 = arith.mulf %501, %486 : vector<128x64xf32>
    %c0_228 = arith.constant 0 : index
    %c0_229 = arith.constant 0 : index
    %503 = vector.load %arg23[%c0_228, %c0_229] : memref<128x64xf32, #tpu.memory_space<vmem>>, vector<128x64xf32>
    tpu.vector_store %arg23[%c0_228, %c0_229], %502 {strides = array<i32>} : memref<128x64xf32, #tpu.memory_space<vmem>>, vector<128x64xf32>,
    %504 = vector.shape_cast %499 : vector<128x1xf32> to vector<128x1xf32>
    %505 = vector.broadcast %504 : vector<128x1xf32> to vector<128x64xf32>
    %c0_230 = arith.constant 0 : index
    %c0_231 = arith.constant 0 : index
    %506 = vector.load %arg24[%c0_230, %c0_231] : memref<128x64xf32, #tpu.memory_space<vmem>>, vector<128x64xf32>
    tpu.vector_store %arg24[%c0_230, %c0_231], %505 {strides = array<i32>} : memref<128x64xf32, #tpu.memory_space<vmem>>, vector<128x64xf32>,
    %cst_232 = arith.constant 0.000000e+00 : f32
    %507 = vector.broadcast %cst_232 : f32 to vector<16x64xf32>
    %c0_233 = arith.constant 0 : index
    %c0_234 = arith.constant 0 : index
    %508 = vector.load %arg22[%c0_233, %c0_234] : memref<128x64xf32, #tpu.memory_space<vmem>>, vector<16x64xf32>
    %509 = arith.mulf %508, %507 : vector<16x64xf32>
    %c0_235 = arith.constant 0 : index
    %c0_236 = arith.constant 0 : index
    %510 = vector.load %arg23[%c0_235, %c0_236] : memref<128x64xf32, #tpu.memory_space<vmem>>, vector<16x64xf32>
    %511 = arith.addf %509, %510 : vector<16x64xf32>
    %c0_237 = arith.constant 0 : index
    %c0_238 = arith.constant 0 : index
    %512 = vector.load %arg24[%c0_237, %c0_238] : memref<128x64xf32, #tpu.memory_space<vmem>>, vector<16x64xf32>
    %513 = arith.mulf %511, %512 : vector<16x64xf32>
    %cst_239 = arith.constant dense<0.000000e+00> : vector<64xf32>
    %514 = vector.multi_reduction <add>, %513, %cst_239 [0] : vector<16x64xf32> to vector<64xf32>
    %515 = vector.shape_cast %514 : vector<64xf32> to vector<1x64xf32>
    %516 = vector.extract_strided_slice %460 {offsets = [0, 0], sizes = [1, 64], strides = [1, 1]} : vector<8x64xf32> to vector<1x64xf32>
    %517 = arith.mulf %484, %516 : vector<1x64xf32>
    %518 = arith.addf %515, %517 : vector<1x64xf32>
    %519 = vector.extract_strided_slice %427 {offsets = [0, 0], sizes = [1, 64], strides = [1, 1]} : vector<8x64xf32> to vector<1x64xf32>
    %520 = arith.negf %519 : vector<1x64xf32>
    %521 = math.exp %520 : vector<1x64xf32>
    %cst_240 = arith.constant 1.000000e+00 : f32
    %522 = vector.broadcast %cst_240 : f32 to vector<1x64xf32>
    %523 = arith.addf %522, %521 : vector<1x64xf32>
    %524 = arith.divf %522, %523 : vector<1x64xf32>
    %525 = arith.mulf %519, %524 : vector<1x64xf32>
    %526 = arith.mulf %518, %525 : vector<1x64xf32>
    %c0_241 = arith.constant 0 : index
    %c0_242 = arith.constant 0 : index
    %527 = vector.load %arg25[%c0_241, %c0_242] : memref<8x64xf32, #tpu.memory_space<vmem>>, vector<1x64xf32>
    tpu.vector_store %arg25[%c0_241, %c0_242], %526 {strides = array<i32>} : memref<8x64xf32, #tpu.memory_space<vmem>>, vector<1x64xf32>,
    %c16_243 = arith.constant 16 : index
    %c0_244 = arith.constant 0 : index
    %528 = vector.load %arg22[%c16_243, %c0_244] : memref<128x64xf32, #tpu.memory_space<vmem>>, vector<16x64xf32>
    %529 = arith.mulf %528, %511 : vector<16x64xf32>
    %c16_245 = arith.constant 16 : index
    %c0_246 = arith.constant 0 : index
    %530 = vector.load %arg23[%c16_245, %c0_246] : memref<128x64xf32, #tpu.memory_space<vmem>>, vector<16x64xf32>
    %531 = arith.addf %529, %530 : vector<16x64xf32>
    %c16_247 = arith.constant 16 : index
    %c0_248 = arith.constant 0 : index
    %532 = vector.load %arg24[%c16_247, %c0_248] : memref<128x64xf32, #tpu.memory_space<vmem>>, vector<16x64xf32>
    %533 = arith.mulf %531, %532 : vector<16x64xf32>
    %cst_249 = arith.constant dense<0.000000e+00> : vector<64xf32>
    %534 = vector.multi_reduction <add>, %533, %cst_249 [0] : vector<16x64xf32> to vector<64xf32>
    %535 = vector.shape_cast %534 : vector<64xf32> to vector<1x64xf32>
    %536 = vector.extract_strided_slice %460 {offsets = [1, 0], sizes = [1, 64], strides = [1, 1]} : vector<8x64xf32> to vector<1x64xf32>
    %537 = arith.mulf %484, %536 : vector<1x64xf32>
    %538 = arith.addf %535, %537 : vector<1x64xf32>
    %539 = vector.extract_strided_slice %427 {offsets = [1, 0], sizes = [1, 64], strides = [1, 1]} : vector<8x64xf32> to vector<1x64xf32>
    %540 = arith.negf %539 : vector<1x64xf32>
    %541 = math.exp %540 : vector<1x64xf32>
    %cst_250 = arith.constant 1.000000e+00 : f32
    %542 = vector.broadcast %cst_250 : f32 to vector<1x64xf32>
    %543 = arith.addf %542, %541 : vector<1x64xf32>
    %544 = arith.divf %542, %543 : vector<1x64xf32>
    %545 = arith.mulf %539, %544 : vector<1x64xf32>
    %546 = arith.mulf %538, %545 : vector<1x64xf32>
    %c1_251 = arith.constant 1 : index
    %c0_252 = arith.constant 0 : index
    %547 = vector.load %arg25[%c1_251, %c0_252] : memref<8x64xf32, #tpu.memory_space<vmem>>, vector<1x64xf32>
    tpu.vector_store %arg25[%c1_251, %c0_252], %546 {strides = array<i32>} : memref<8x64xf32, #tpu.memory_space<vmem>>, vector<1x64xf32>,
    %c32_253 = arith.constant 32 : index
    %c0_254 = arith.constant 0 : index
    %548 = vector.load %arg22[%c32_253, %c0_254] : memref<128x64xf32, #tpu.memory_space<vmem>>, vector<16x64xf32>
    %549 = arith.mulf %548, %531 : vector<16x64xf32>
    %c32_255 = arith.constant 32 : index
    %c0_256 = arith.constant 0 : index
    %550 = vector.load %arg23[%c32_255, %c0_256] : memref<128x64xf32, #tpu.memory_space<vmem>>, vector<16x64xf32>
    %551 = arith.addf %549, %550 : vector<16x64xf32>
    %c32_257 = arith.constant 32 : index
    %c0_258 = arith.constant 0 : index
    %552 = vector.load %arg24[%c32_257, %c0_258] : memref<128x64xf32, #tpu.memory_space<vmem>>, vector<16x64xf32>
    %553 = arith.mulf %551, %552 : vector<16x64xf32>
    %cst_259 = arith.constant dense<0.000000e+00> : vector<64xf32>
    %554 = vector.multi_reduction <add>, %553, %cst_259 [0] : vector<16x64xf32> to vector<64xf32>
    %555 = vector.shape_cast %554 : vector<64xf32> to vector<1x64xf32>
    %556 = vector.extract_strided_slice %460 {offsets = [2, 0], sizes = [1, 64], strides = [1, 1]} : vector<8x64xf32> to vector<1x64xf32>
    %557 = arith.mulf %484, %556 : vector<1x64xf32>
    %558 = arith.addf %555, %557 : vector<1x64xf32>
    %559 = vector.extract_strided_slice %427 {offsets = [2, 0], sizes = [1, 64], strides = [1, 1]} : vector<8x64xf32> to vector<1x64xf32>
    %560 = arith.negf %559 : vector<1x64xf32>
    %561 = math.exp %560 : vector<1x64xf32>
    %cst_260 = arith.constant 1.000000e+00 : f32
    %562 = vector.broadcast %cst_260 : f32 to vector<1x64xf32>
    %563 = arith.addf %562, %561 : vector<1x64xf32>
    %564 = arith.divf %562, %563 : vector<1x64xf32>
    %565 = arith.mulf %559, %564 : vector<1x64xf32>
    %566 = arith.mulf %558, %565 : vector<1x64xf32>
    %c2_261 = arith.constant 2 : index
    %c0_262 = arith.constant 0 : index
    %567 = vector.load %arg25[%c2_261, %c0_262] : memref<8x64xf32, #tpu.memory_space<vmem>>, vector<1x64xf32>
    tpu.vector_store %arg25[%c2_261, %c0_262], %566 {strides = array<i32>} : memref<8x64xf32, #tpu.memory_space<vmem>>, vector<1x64xf32>,
    %c48_263 = arith.constant 48 : index
    %c0_264 = arith.constant 0 : index
    %568 = vector.load %arg22[%c48_263, %c0_264] : memref<128x64xf32, #tpu.memory_space<vmem>>, vector<16x64xf32>
    %569 = arith.mulf %568, %551 : vector<16x64xf32>
    %c48_265 = arith.constant 48 : index
    %c0_266 = arith.constant 0 : index
    %570 = vector.load %arg23[%c48_265, %c0_266] : memref<128x64xf32, #tpu.memory_space<vmem>>, vector<16x64xf32>
    %571 = arith.addf %569, %570 : vector<16x64xf32>
    %c48_267 = arith.constant 48 : index
    %c0_268 = arith.constant 0 : index
    %572 = vector.load %arg24[%c48_267, %c0_268] : memref<128x64xf32, #tpu.memory_space<vmem>>, vector<16x64xf32>
    %573 = arith.mulf %571, %572 : vector<16x64xf32>
    %cst_269 = arith.constant dense<0.000000e+00> : vector<64xf32>
    %574 = vector.multi_reduction <add>, %573, %cst_269 [0] : vector<16x64xf32> to vector<64xf32>
    %575 = vector.shape_cast %574 : vector<64xf32> to vector<1x64xf32>
    %576 = vector.extract_strided_slice %460 {offsets = [3, 0], sizes = [1, 64], strides = [1, 1]} : vector<8x64xf32> to vector<1x64xf32>
    %577 = arith.mulf %484, %576 : vector<1x64xf32>
    %578 = arith.addf %575, %577 : vector<1x64xf32>
    %579 = vector.extract_strided_slice %427 {offsets = [3, 0], sizes = [1, 64], strides = [1, 1]} : vector<8x64xf32> to vector<1x64xf32>
    %580 = arith.negf %579 : vector<1x64xf32>
    %581 = math.exp %580 : vector<1x64xf32>
    %cst_270 = arith.constant 1.000000e+00 : f32
    %582 = vector.broadcast %cst_270 : f32 to vector<1x64xf32>
    %583 = arith.addf %582, %581 : vector<1x64xf32>
    %584 = arith.divf %582, %583 : vector<1x64xf32>
    %585 = arith.mulf %579, %584 : vector<1x64xf32>
    %586 = arith.mulf %578, %585 : vector<1x64xf32>
    %c3_271 = arith.constant 3 : index
    %c0_272 = arith.constant 0 : index
    %587 = vector.load %arg25[%c3_271, %c0_272] : memref<8x64xf32, #tpu.memory_space<vmem>>, vector<1x64xf32>
    tpu.vector_store %arg25[%c3_271, %c0_272], %586 {strides = array<i32>} : memref<8x64xf32, #tpu.memory_space<vmem>>, vector<1x64xf32>,
    %c64_273 = arith.constant 64 : index
    %c0_274 = arith.constant 0 : index
    %588 = vector.load %arg22[%c64_273, %c0_274] : memref<128x64xf32, #tpu.memory_space<vmem>>, vector<16x64xf32>
    %589 = arith.mulf %588, %571 : vector<16x64xf32>
    %c64_275 = arith.constant 64 : index
    %c0_276 = arith.constant 0 : index
    %590 = vector.load %arg23[%c64_275, %c0_276] : memref<128x64xf32, #tpu.memory_space<vmem>>, vector<16x64xf32>
    %591 = arith.addf %589, %590 : vector<16x64xf32>
    %c64_277 = arith.constant 64 : index
    %c0_278 = arith.constant 0 : index
    %592 = vector.load %arg24[%c64_277, %c0_278] : memref<128x64xf32, #tpu.memory_space<vmem>>, vector<16x64xf32>
    %593 = arith.mulf %591, %592 : vector<16x64xf32>
    %cst_279 = arith.constant dense<0.000000e+00> : vector<64xf32>
    %594 = vector.multi_reduction <add>, %593, %cst_279 [0] : vector<16x64xf32> to vector<64xf32>
    %595 = vector.shape_cast %594 : vector<64xf32> to vector<1x64xf32>
    %596 = vector.extract_strided_slice %460 {offsets = [4, 0], sizes = [1, 64], strides = [1, 1]} : vector<8x64xf32> to vector<1x64xf32>
    %597 = arith.mulf %484, %596 : vector<1x64xf32>
    %598 = arith.addf %595, %597 : vector<1x64xf32>
    %599 = vector.extract_strided_slice %427 {offsets = [4, 0], sizes = [1, 64], strides = [1, 1]} : vector<8x64xf32> to vector<1x64xf32>
    %600 = arith.negf %599 : vector<1x64xf32>
    %601 = math.exp %600 : vector<1x64xf32>
    %cst_280 = arith.constant 1.000000e+00 : f32
    %602 = vector.broadcast %cst_280 : f32 to vector<1x64xf32>
    %603 = arith.addf %602, %601 : vector<1x64xf32>
    %604 = arith.divf %602, %603 : vector<1x64xf32>
    %605 = arith.mulf %599, %604 : vector<1x64xf32>
    %606 = arith.mulf %598, %605 : vector<1x64xf32>
    %c4_281 = arith.constant 4 : index
    %c0_282 = arith.constant 0 : index
    %607 = vector.load %arg25[%c4_281, %c0_282] : memref<8x64xf32, #tpu.memory_space<vmem>>, vector<1x64xf32>
    tpu.vector_store %arg25[%c4_281, %c0_282], %606 {strides = array<i32>} : memref<8x64xf32, #tpu.memory_space<vmem>>, vector<1x64xf32>,
    %c80_283 = arith.constant 80 : index
    %c0_284 = arith.constant 0 : index
    %608 = vector.load %arg22[%c80_283, %c0_284] : memref<128x64xf32, #tpu.memory_space<vmem>>, vector<16x64xf32>
    %609 = arith.mulf %608, %591 : vector<16x64xf32>
    %c80_285 = arith.constant 80 : index
    %c0_286 = arith.constant 0 : index
    %610 = vector.load %arg23[%c80_285, %c0_286] : memref<128x64xf32, #tpu.memory_space<vmem>>, vector<16x64xf32>
    %611 = arith.addf %609, %610 : vector<16x64xf32>
    %c80_287 = arith.constant 80 : index
    %c0_288 = arith.constant 0 : index
    %612 = vector.load %arg24[%c80_287, %c0_288] : memref<128x64xf32, #tpu.memory_space<vmem>>, vector<16x64xf32>
    %613 = arith.mulf %611, %612 : vector<16x64xf32>
    %cst_289 = arith.constant dense<0.000000e+00> : vector<64xf32>
    %614 = vector.multi_reduction <add>, %613, %cst_289 [0] : vector<16x64xf32> to vector<64xf32>
    %615 = vector.shape_cast %614 : vector<64xf32> to vector<1x64xf32>
    %616 = vector.extract_strided_slice %460 {offsets = [5, 0], sizes = [1, 64], strides = [1, 1]} : vector<8x64xf32> to vector<1x64xf32>
    %617 = arith.mulf %484, %616 : vector<1x64xf32>
    %618 = arith.addf %615, %617 : vector<1x64xf32>
    %619 = vector.extract_strided_slice %427 {offsets = [5, 0], sizes = [1, 64], strides = [1, 1]} : vector<8x64xf32> to vector<1x64xf32>
    %620 = arith.negf %619 : vector<1x64xf32>
    %621 = math.exp %620 : vector<1x64xf32>
    %cst_290 = arith.constant 1.000000e+00 : f32
    %622 = vector.broadcast %cst_290 : f32 to vector<1x64xf32>
    %623 = arith.addf %622, %621 : vector<1x64xf32>
    %624 = arith.divf %622, %623 : vector<1x64xf32>
    %625 = arith.mulf %619, %624 : vector<1x64xf32>
    %626 = arith.mulf %618, %625 : vector<1x64xf32>
    %c5_291 = arith.constant 5 : index
    %c0_292 = arith.constant 0 : index
    %627 = vector.load %arg25[%c5_291, %c0_292] : memref<8x64xf32, #tpu.memory_space<vmem>>, vector<1x64xf32>
    tpu.vector_store %arg25[%c5_291, %c0_292], %626 {strides = array<i32>} : memref<8x64xf32, #tpu.memory_space<vmem>>, vector<1x64xf32>,
    %c96_293 = arith.constant 96 : index
    %c0_294 = arith.constant 0 : index
    %628 = vector.load %arg22[%c96_293, %c0_294] : memref<128x64xf32, #tpu.memory_space<vmem>>, vector<16x64xf32>
    %629 = arith.mulf %628, %611 : vector<16x64xf32>
    %c96_295 = arith.constant 96 : index
    %c0_296 = arith.constant 0 : index
    %630 = vector.load %arg23[%c96_295, %c0_296] : memref<128x64xf32, #tpu.memory_space<vmem>>, vector<16x64xf32>
    %631 = arith.addf %629, %630 : vector<16x64xf32>
    %c96_297 = arith.constant 96 : index
    %c0_298 = arith.constant 0 : index
    %632 = vector.load %arg24[%c96_297, %c0_298] : memref<128x64xf32, #tpu.memory_space<vmem>>, vector<16x64xf32>
    %633 = arith.mulf %631, %632 : vector<16x64xf32>
    %cst_299 = arith.constant dense<0.000000e+00> : vector<64xf32>
    %634 = vector.multi_reduction <add>, %633, %cst_299 [0] : vector<16x64xf32> to vector<64xf32>
    %635 = vector.shape_cast %634 : vector<64xf32> to vector<1x64xf32>
    %636 = vector.extract_strided_slice %460 {offsets = [6, 0], sizes = [1, 64], strides = [1, 1]} : vector<8x64xf32> to vector<1x64xf32>
    %637 = arith.mulf %484, %636 : vector<1x64xf32>
    %638 = arith.addf %635, %637 : vector<1x64xf32>
    %639 = vector.extract_strided_slice %427 {offsets = [6, 0], sizes = [1, 64], strides = [1, 1]} : vector<8x64xf32> to vector<1x64xf32>
    %640 = arith.negf %639 : vector<1x64xf32>
    %641 = math.exp %640 : vector<1x64xf32>
    %cst_300 = arith.constant 1.000000e+00 : f32
    %642 = vector.broadcast %cst_300 : f32 to vector<1x64xf32>
    %643 = arith.addf %642, %641 : vector<1x64xf32>
    %644 = arith.divf %642, %643 : vector<1x64xf32>
    %645 = arith.mulf %639, %644 : vector<1x64xf32>
    %646 = arith.mulf %638, %645 : vector<1x64xf32>
    %c6_301 = arith.constant 6 : index
    %c0_302 = arith.constant 0 : index
    %647 = vector.load %arg25[%c6_301, %c0_302] : memref<8x64xf32, #tpu.memory_space<vmem>>, vector<1x64xf32>
    tpu.vector_store %arg25[%c6_301, %c0_302], %646 {strides = array<i32>} : memref<8x64xf32, #tpu.memory_space<vmem>>, vector<1x64xf32>,
    %c112_303 = arith.constant 112 : index
    %c0_304 = arith.constant 0 : index
    %648 = vector.load %arg22[%c112_303, %c0_304] : memref<128x64xf32, #tpu.memory_space<vmem>>, vector<16x64xf32>
    %649 = arith.mulf %648, %631 : vector<16x64xf32>
    %c112_305 = arith.constant 112 : index
    %c0_306 = arith.constant 0 : index
    %650 = vector.load %arg23[%c112_305, %c0_306] : memref<128x64xf32, #tpu.memory_space<vmem>>, vector<16x64xf32>
    %651 = arith.addf %649, %650 : vector<16x64xf32>
    %c112_307 = arith.constant 112 : index
    %c0_308 = arith.constant 0 : index
    %652 = vector.load %arg24[%c112_307, %c0_308] : memref<128x64xf32, #tpu.memory_space<vmem>>, vector<16x64xf32>
    %653 = arith.mulf %651, %652 : vector<16x64xf32>
    %cst_309 = arith.constant dense<0.000000e+00> : vector<64xf32>
    %654 = vector.multi_reduction <add>, %653, %cst_309 [0] : vector<16x64xf32> to vector<64xf32>
    %655 = vector.shape_cast %654 : vector<64xf32> to vector<1x64xf32>
    %656 = vector.extract_strided_slice %460 {offsets = [7, 0], sizes = [1, 64], strides = [1, 1]} : vector<8x64xf32> to vector<1x64xf32>
    %657 = arith.mulf %484, %656 : vector<1x64xf32>
    %658 = arith.addf %655, %657 : vector<1x64xf32>
    %659 = vector.extract_strided_slice %427 {offsets = [7, 0], sizes = [1, 64], strides = [1, 1]} : vector<8x64xf32> to vector<1x64xf32>
    %660 = arith.negf %659 : vector<1x64xf32>
    %661 = math.exp %660 : vector<1x64xf32>
    %cst_310 = arith.constant 1.000000e+00 : f32
    %662 = vector.broadcast %cst_310 : f32 to vector<1x64xf32>
    %663 = arith.addf %662, %661 : vector<1x64xf32>
    %664 = arith.divf %662, %663 : vector<1x64xf32>
    %665 = arith.mulf %659, %664 : vector<1x64xf32>
    %666 = arith.mulf %658, %665 : vector<1x64xf32>
    %c7_311 = arith.constant 7 : index
    %c0_312 = arith.constant 0 : index
    %667 = vector.load %arg25[%c7_311, %c0_312] : memref<8x64xf32, #tpu.memory_space<vmem>>, vector<1x64xf32>
    tpu.vector_store %arg25[%c7_311, %c0_312], %666 {strides = array<i32>} : memref<8x64xf32, #tpu.memory_space<vmem>>, vector<1x64xf32>,
    %c0_313 = arith.constant 0 : index
    %c0_314 = arith.constant 0 : index
    %668 = vector.load %arg25[%c0_313, %c0_314] : memref<8x64xf32, #tpu.memory_space<vmem>>, vector<8x64xf32>
    %c1_315 = arith.constant 1 : index
    %c0_316 = arith.constant 0 : index
    %c0_317 = arith.constant 0 : index
    %669 = vector.load %arg12[%c1_315, %c0_316, %c0_317] : memref<2x64x32xf32, #tpu.memory_space<vmem>>, vector<1x64x32xf32>
    %670 = vector.shape_cast %669 : vector<1x64x32xf32> to vector<64x32xf32>
    %cst_318 = arith.constant dense<0.000000e+00> : vector<8x32xf32>
    %671 = tpu.matmul %668, %670, %cst_318 {dimension_numbers = #tpu.dot_dimension_numbers<[1], [0], [0], [1], [0, 0, 1, 1], [], []>} : vector<8x64xf32>, vector<64x32xf32>, vector<8x32xf32> -> vector<8x32xf32>
    %672 = arith.addf %671, %422 : vector<8x32xf32>
    %c1_319 = arith.constant 1 : index
    %c0_320 = arith.constant 0 : index
    %c0_321 = arith.constant 0 : index
    %673 = vector.load %arg13[%c1_319, %c0_320, %c0_321] : memref<2x1x32xf32, #tpu.memory_space<vmem>>, vector<1x1x32xf32>
    %674 = vector.shape_cast %673 : vector<1x1x32xf32> to vector<1x32xf32>
    %c1_322 = arith.constant 1 : index
    %c0_323 = arith.constant 0 : index
    %c0_324 = arith.constant 0 : index
    %675 = vector.load %arg14[%c1_322, %c0_323, %c0_324] : memref<2x1x32xf32, #tpu.memory_space<vmem>>, vector<1x1x32xf32>
    %676 = vector.shape_cast %675 : vector<1x1x32xf32> to vector<1x32xf32>
    %cst_325 = arith.constant dense<0.000000e+00> : vector<8xf32>
    %677 = vector.multi_reduction <add>, %672, %cst_325 [1] : vector<8x32xf32> to vector<8xf32>
    %678 = vector.shape_cast %677 : vector<8xf32> to vector<8x1xf32>
    %cst_326 = arith.constant 3.200000e+01 : f32
    %679 = vector.broadcast %cst_326 : f32 to vector<8x1xf32>
    %680 = arith.divf %678, %679 : vector<8x1xf32>
    %681 = vector.broadcast %680 : vector<8x1xf32> to vector<8x32xf32>
    %682 = arith.subf %672, %681 : vector<8x32xf32>
    %683 = arith.mulf %682, %682 : vector<8x32xf32>
    %cst_327 = arith.constant dense<0.000000e+00> : vector<8xf32>
    %684 = vector.multi_reduction <add>, %683, %cst_327 [1] : vector<8x32xf32> to vector<8xf32>
    %685 = vector.shape_cast %684 : vector<8xf32> to vector<8x1xf32>
    %cst_328 = arith.constant 3.200000e+01 : f32
    %686 = vector.broadcast %cst_328 : f32 to vector<8x1xf32>
    %687 = arith.divf %685, %686 : vector<8x1xf32>
    %688 = vector.broadcast %680 : vector<8x1xf32> to vector<8x32xf32>
    %689 = arith.subf %672, %688 : vector<8x32xf32>
    %cst_329 = arith.constant 9.99999996E-13 : f32
    %690 = vector.broadcast %cst_329 : f32 to vector<8x1xf32>
    %691 = arith.addf %687, %690 : vector<8x1xf32>
    %692 = math.rsqrt %691 : vector<8x1xf32>
    %693 = vector.broadcast %692 : vector<8x1xf32> to vector<8x32xf32>
    %694 = arith.mulf %689, %693 : vector<8x32xf32>
    %695 = vector.broadcast %674 : vector<1x32xf32> to vector<8x32xf32>
    %696 = arith.mulf %694, %695 : vector<8x32xf32>
    %697 = vector.broadcast %676 : vector<1x32xf32> to vector<8x32xf32>
    %698 = arith.addf %696, %697 : vector<8x32xf32>
    %c1_330 = arith.constant 1 : index
    %c0_331 = arith.constant 0 : index
    %c0_332 = arith.constant 0 : index
    %699 = vector.load %arg15[%c1_330, %c0_331, %c0_332] : memref<2x32x128xf32, #tpu.memory_space<vmem>>, vector<1x32x128xf32>
    %700 = vector.shape_cast %699 : vector<1x32x128xf32> to vector<32x128xf32>
    %cst_333 = arith.constant dense<0.000000e+00> : vector<8x128xf32>
    %701 = tpu.matmul %698, %700, %cst_333 {dimension_numbers = #tpu.dot_dimension_numbers<[1], [0], [0], [1], [0, 0, 1, 1], [], []>} : vector<8x32xf32>, vector<32x128xf32>, vector<8x128xf32> -> vector<8x128xf32>
    %c1_334 = arith.constant 1 : index
    %c0_335 = arith.constant 0 : index
    %c0_336 = arith.constant 0 : index
    %702 = vector.load %arg16[%c1_334, %c0_335, %c0_336] : memref<2x1x128xf32, #tpu.memory_space<vmem>>, vector<1x1x128xf32>
    %703 = vector.shape_cast %702 : vector<1x1x128xf32> to vector<1x128xf32>
    %704 = vector.broadcast %703 : vector<1x128xf32> to vector<8x128xf32>
    %705 = arith.addf %701, %704 : vector<8x128xf32>
    %cst_337 = arith.constant 5.000000e-01 : f32
    %706 = vector.broadcast %cst_337 : f32 to vector<8x128xf32>
    %707 = arith.mulf %706, %705 : vector<8x128xf32>
    %cst_338 = arith.constant 0.707106769 : f32
    %708 = vector.broadcast %cst_338 : f32 to vector<8x128xf32>
    %709 = arith.mulf %705, %708 : vector<8x128xf32>
    %cst_339 = arith.constant 0.000000e+00 : f32
    %710 = vector.broadcast %cst_339 : f32 to vector<8x128xf32>
    %711 = arith.cmpf oge, %709, %710 : vector<8x128xf32>
    %cst_340 = arith.constant 1.000000e+00 : f32
    %cst_341 = arith.constant -1.000000e+00 : f32
    %712 = vector.broadcast %cst_340 : f32 to vector<8x128xf32>
    %713 = vector.broadcast %cst_341 : f32 to vector<8x128xf32>
    %714 = arith.select %711, %712, %713 : vector<8x128xi1>, vector<8x128xf32>
    %715 = math.absf %709 : vector<8x128xf32>
    %cst_342 = arith.constant 0.327591091 : f32
    %716 = vector.broadcast %cst_342 : f32 to vector<8x128xf32>
    %717 = arith.mulf %716, %715 : vector<8x128xf32>
    %cst_343 = arith.constant 1.000000e+00 : f32
    %718 = vector.broadcast %cst_343 : f32 to vector<8x128xf32>
    %719 = arith.addf %718, %717 : vector<8x128xf32>
    %cst_344 = arith.constant 1.000000e+00 : f32
    %720 = vector.broadcast %cst_344 : f32 to vector<8x128xf32>
    %721 = arith.divf %720, %719 : vector<8x128xf32>
    %cst_345 = arith.constant 1.06140542 : f32
    %722 = vector.broadcast %cst_345 : f32 to vector<8x128xf32>
    %723 = arith.mulf %722, %721 : vector<8x128xf32>
    %cst_346 = arith.constant -1.45315206 : f32
    %724 = vector.broadcast %cst_346 : f32 to vector<8x128xf32>
    %725 = arith.addf %723, %724 : vector<8x128xf32>
    %726 = arith.mulf %725, %721 : vector<8x128xf32>
    %cst_347 = arith.constant 1.42141378 : f32
    %727 = vector.broadcast %cst_347 : f32 to vector<8x128xf32>
    %728 = arith.addf %726, %727 : vector<8x128xf32>
    %729 = arith.mulf %728, %721 : vector<8x128xf32>
    %cst_348 = arith.constant -0.284496725 : f32
    %730 = vector.broadcast %cst_348 : f32 to vector<8x128xf32>
    %731 = arith.addf %729, %730 : vector<8x128xf32>
    %732 = arith.mulf %731, %721 : vector<8x128xf32>
    %cst_349 = arith.constant 0.254829586 : f32
    %733 = vector.broadcast %cst_349 : f32 to vector<8x128xf32>
    %734 = arith.addf %732, %733 : vector<8x128xf32>
    %735 = arith.mulf %734, %721 : vector<8x128xf32>
    %cst_350 = arith.constant 0.000000e+00 : f32
    %736 = vector.broadcast %cst_350 : f32 to vector<8x128xf32>
    %737 = arith.subf %736, %715 : vector<8x128xf32>
    %738 = arith.mulf %737, %715 : vector<8x128xf32>
    %739 = math.exp %738 : vector<8x128xf32>
    %740 = arith.mulf %735, %739 : vector<8x128xf32>
    %cst_351 = arith.constant 1.000000e+00 : f32
    %741 = vector.broadcast %cst_351 : f32 to vector<8x128xf32>
    %742 = arith.subf %741, %740 : vector<8x128xf32>
    %743 = arith.mulf %714, %742 : vector<8x128xf32>
    %cst_352 = arith.constant 1.000000e+00 : f32
    %744 = vector.broadcast %cst_352 : f32 to vector<8x128xf32>
    %745 = arith.addf %744, %743 : vector<8x128xf32>
    %746 = arith.mulf %707, %745 : vector<8x128xf32>
    %c1_353 = arith.constant 1 : index
    %c0_354 = arith.constant 0 : index
    %c0_355 = arith.constant 0 : index
    %747 = vector.load %arg17[%c1_353, %c0_354, %c0_355] : memref<2x128x32xf32, #tpu.memory_space<vmem>>, vector<1x128x32xf32>
    %748 = vector.shape_cast %747 : vector<1x128x32xf32> to vector<128x32xf32>
    %cst_356 = arith.constant dense<0.000000e+00> : vector<8x32xf32>
    %749 = tpu.matmul %746, %748, %cst_356 {dimension_numbers = #tpu.dot_dimension_numbers<[1], [0], [0], [1], [0, 0, 1, 1], [], []>} : vector<8x128xf32>, vector<128x32xf32>, vector<8x32xf32> -> vector<8x32xf32>
    %c1_357 = arith.constant 1 : index
    %c0_358 = arith.constant 0 : index
    %c0_359 = arith.constant 0 : index
    %750 = vector.load %arg18[%c1_357, %c0_358, %c0_359] : memref<2x1x32xf32, #tpu.memory_space<vmem>>, vector<1x1x32xf32>
    %751 = vector.shape_cast %750 : vector<1x1x32xf32> to vector<1x32xf32>
    %752 = vector.broadcast %751 : vector<1x32xf32> to vector<8x32xf32>
    %753 = arith.addf %749, %752 : vector<8x32xf32>
    %754 = arith.addf %753, %698 : vector<8x32xf32>
    %c1_360 = arith.constant 1 : index
    %c0_361 = arith.constant 0 : index
    %c0_362 = arith.constant 0 : index
    %755 = vector.load %arg19[%c1_360, %c0_361, %c0_362] : memref<2x1x32xf32, #tpu.memory_space<vmem>>, vector<1x1x32xf32>
    %756 = vector.shape_cast %755 : vector<1x1x32xf32> to vector<1x32xf32>
    %c1_363 = arith.constant 1 : index
    %c0_364 = arith.constant 0 : index
    %c0_365 = arith.constant 0 : index
    %757 = vector.load %arg20[%c1_363, %c0_364, %c0_365] : memref<2x1x32xf32, #tpu.memory_space<vmem>>, vector<1x1x32xf32>
    %758 = vector.shape_cast %757 : vector<1x1x32xf32> to vector<1x32xf32>
    %cst_366 = arith.constant dense<0.000000e+00> : vector<8xf32>
    %759 = vector.multi_reduction <add>, %754, %cst_366 [1] : vector<8x32xf32> to vector<8xf32>
    %760 = vector.shape_cast %759 : vector<8xf32> to vector<8x1xf32>
    %cst_367 = arith.constant 3.200000e+01 : f32
    %761 = vector.broadcast %cst_367 : f32 to vector<8x1xf32>
    %762 = arith.divf %760, %761 : vector<8x1xf32>
    %763 = vector.broadcast %762 : vector<8x1xf32> to vector<8x32xf32>
    %764 = arith.subf %754, %763 : vector<8x32xf32>
    %765 = arith.mulf %764, %764 : vector<8x32xf32>
    %cst_368 = arith.constant dense<0.000000e+00> : vector<8xf32>
    %766 = vector.multi_reduction <add>, %765, %cst_368 [1] : vector<8x32xf32> to vector<8xf32>
    %767 = vector.shape_cast %766 : vector<8xf32> to vector<8x1xf32>
    %cst_369 = arith.constant 3.200000e+01 : f32
    %768 = vector.broadcast %cst_369 : f32 to vector<8x1xf32>
    %769 = arith.divf %767, %768 : vector<8x1xf32>
    %770 = vector.broadcast %762 : vector<8x1xf32> to vector<8x32xf32>
    %771 = arith.subf %754, %770 : vector<8x32xf32>
    %cst_370 = arith.constant 9.99999996E-13 : f32
    %772 = vector.broadcast %cst_370 : f32 to vector<8x1xf32>
    %773 = arith.addf %769, %772 : vector<8x1xf32>
    %774 = math.rsqrt %773 : vector<8x1xf32>
    %775 = vector.broadcast %774 : vector<8x1xf32> to vector<8x32xf32>
    %776 = arith.mulf %771, %775 : vector<8x32xf32>
    %777 = vector.broadcast %756 : vector<1x32xf32> to vector<8x32xf32>
    %778 = arith.mulf %776, %777 : vector<8x32xf32>
    %779 = vector.broadcast %758 : vector<1x32xf32> to vector<8x32xf32>
    %780 = arith.addf %778, %779 : vector<8x32xf32>
    %781 = vector.extract_strided_slice %780 {offsets = [0, 0], sizes = [1, 32], strides = [1, 1]} : vector<8x32xf32> to vector<1x32xf32>
    %782 = vector.extract_strided_slice %780 {offsets = [1, 0], sizes = [1, 32], strides = [1, 1]} : vector<8x32xf32> to vector<1x32xf32>
    %783 = vector.extract_strided_slice %780 {offsets = [2, 0], sizes = [1, 32], strides = [1, 1]} : vector<8x32xf32> to vector<1x32xf32>
    %784 = vector.extract_strided_slice %780 {offsets = [3, 0], sizes = [1, 32], strides = [1, 1]} : vector<8x32xf32> to vector<1x32xf32>
    %785 = vector.extract_strided_slice %780 {offsets = [4, 0], sizes = [1, 32], strides = [1, 1]} : vector<8x32xf32> to vector<1x32xf32>
    %786 = vector.extract_strided_slice %780 {offsets = [5, 0], sizes = [1, 32], strides = [1, 1]} : vector<8x32xf32> to vector<1x32xf32>
    %787 = vector.extract_strided_slice %780 {offsets = [6, 0], sizes = [1, 32], strides = [1, 1]} : vector<8x32xf32> to vector<1x32xf32>
    %788 = vector.extract_strided_slice %780 {offsets = [7, 0], sizes = [1, 32], strides = [1, 1]} : vector<8x32xf32> to vector<1x32xf32>
    %789 = tpu.concatenate %781, %782, %783, %784, %785, %786, %787, %788 in 1 : vector<1x32xf32>, vector<1x32xf32>, vector<1x32xf32>, vector<1x32xf32>, vector<1x32xf32>, vector<1x32xf32>, vector<1x32xf32>, vector<1x32xf32> -> vector<1x256xf32>
    %c0_371 = arith.constant 0 : index
    %c0_372 = arith.constant 0 : index
    %c0_373 = arith.constant 0 : index
    %790 = vector.load %arg21[%c0_371, %c0_372, %c0_373] : memref<1x1x256xf32, #tpu.memory_space<vmem>>, vector<1x1x256xf32>
    %791 = vector.shape_cast %790 : vector<1x1x256xf32> to vector<1x256xf32>
    %792 = vector.shape_cast %789 : vector<1x256xf32> to vector<1x1x256xf32>
    tpu.vector_store %arg21[%c0_371, %c0_372, %c0_373], %792 {strides = array<i32>} : memref<1x1x256xf32, #tpu.memory_space<vmem>>, vector<1x1x256xf32>,
    return
  }
  func.func @transform_0(%arg0: i32) -> (i32, i32) {
    %c0_i32 = arith.constant 0 : i32
    %c0_i32_0 = arith.constant 0 : i32
    return %arg0, %c0_i32 : i32, i32
  }
  func.func @transform_1(%arg0: i32) -> (i32, i32) {
    %c0_i32 = arith.constant 0 : i32
    %c0_i32_0 = arith.constant 0 : i32
    %c0_i32_1 = arith.constant 0 : i32
    return %c0_i32, %c0_i32_0 : i32, i32
  }
  func.func @transform_2(%arg0: i32) -> (i32, i32) {
    %c0_i32 = arith.constant 0 : i32
    %c0_i32_0 = arith.constant 0 : i32
    %c0_i32_1 = arith.constant 0 : i32
    return %c0_i32, %c0_i32_0 : i32, i32
  }
  func.func @transform_3(%arg0: i32) -> (i32, i32) {
    %c0_i32 = arith.constant 0 : i32
    %c0_i32_0 = arith.constant 0 : i32
    %c0_i32_1 = arith.constant 0 : i32
    return %c0_i32, %c0_i32_0 : i32, i32
  }
  func.func @transform_4(%arg0: i32) -> (i32, i32, i32) {
    %c0_i32 = arith.constant 0 : i32
    %c0_i32_0 = arith.constant 0 : i32
    %c0_i32_1 = arith.constant 0 : i32
    %c0_i32_2 = arith.constant 0 : i32
    return %c0_i32, %c0_i32_0, %c0_i32_1 : i32, i32, i32
  }
  func.func @transform_5(%arg0: i32) -> (i32, i32, i32) {
    %c0_i32 = arith.constant 0 : i32
    %c0_i32_0 = arith.constant 0 : i32
    %c0_i32_1 = arith.constant 0 : i32
    %c0_i32_2 = arith.constant 0 : i32
    return %c0_i32, %c0_i32_0, %c0_i32_1 : i32, i32, i32
  }
  func.func @transform_6(%arg0: i32) -> (i32, i32, i32) {
    %c0_i32 = arith.constant 0 : i32
    %c0_i32_0 = arith.constant 0 : i32
    %c0_i32_1 = arith.constant 0 : i32
    %c0_i32_2 = arith.constant 0 : i32
    return %c0_i32, %c0_i32_0, %c0_i32_1 : i32, i32, i32
  }
  func.func @transform_7(%arg0: i32) -> (i32, i32, i32) {
    %c0_i32 = arith.constant 0 : i32
    %c0_i32_0 = arith.constant 0 : i32
    %c0_i32_1 = arith.constant 0 : i32
    %c0_i32_2 = arith.constant 0 : i32
    return %c0_i32, %c0_i32_0, %c0_i32_1 : i32, i32, i32
  }
  func.func @transform_8(%arg0: i32) -> (i32, i32, i32) {
    %c0_i32 = arith.constant 0 : i32
    %c0_i32_0 = arith.constant 0 : i32
    %c0_i32_1 = arith.constant 0 : i32
    %c0_i32_2 = arith.constant 0 : i32
    return %c0_i32, %c0_i32_0, %c0_i32_1 : i32, i32, i32
  }
  func.func @transform_9(%arg0: i32) -> (i32, i32, i32) {
    %c0_i32 = arith.constant 0 : i32
    %c0_i32_0 = arith.constant 0 : i32
    %c0_i32_1 = arith.constant 0 : i32
    %c0_i32_2 = arith.constant 0 : i32
    return %c0_i32, %c0_i32_0, %c0_i32_1 : i32, i32, i32
  }
  func.func @transform_10(%arg0: i32) -> (i32, i32, i32) {
    %c0_i32 = arith.constant 0 : i32
    %c0_i32_0 = arith.constant 0 : i32
    %c0_i32_1 = arith.constant 0 : i32
    %c0_i32_2 = arith.constant 0 : i32
    return %c0_i32, %c0_i32_0, %c0_i32_1 : i32, i32, i32
  }
  func.func @transform_11(%arg0: i32) -> (i32, i32, i32) {
    %c0_i32 = arith.constant 0 : i32
    %c0_i32_0 = arith.constant 0 : i32
    %c0_i32_1 = arith.constant 0 : i32
    %c0_i32_2 = arith.constant 0 : i32
    return %c0_i32, %c0_i32_0, %c0_i32_1 : i32, i32, i32
  }
  func.func @transform_12(%arg0: i32) -> (i32, i32, i32) {
    %c0_i32 = arith.constant 0 : i32
    %c0_i32_0 = arith.constant 0 : i32
    %c0_i32_1 = arith.constant 0 : i32
    %c0_i32_2 = arith.constant 0 : i32
    return %c0_i32, %c0_i32_0, %c0_i32_1 : i32, i32, i32
  }
  func.func @transform_13(%arg0: i32) -> (i32, i32, i32) {
    %c0_i32 = arith.constant 0 : i32
    %c0_i32_0 = arith.constant 0 : i32
    %c0_i32_1 = arith.constant 0 : i32
    %c0_i32_2 = arith.constant 0 : i32
    return %c0_i32, %c0_i32_0, %c0_i32_1 : i32, i32, i32
  }
  func.func @transform_14(%arg0: i32) -> (i32, i32, i32) {
    %c0_i32 = arith.constant 0 : i32
    %c0_i32_0 = arith.constant 0 : i32
    %c0_i32_1 = arith.constant 0 : i32
    %c0_i32_2 = arith.constant 0 : i32
    return %c0_i32, %c0_i32_0, %c0_i32_1 : i32, i32, i32
  }
  func.func @transform_15(%arg0: i32) -> (i32, i32, i32) {
    %c0_i32 = arith.constant 0 : i32
    %c0_i32_0 = arith.constant 0 : i32
    %c0_i32_1 = arith.constant 0 : i32
    %c0_i32_2 = arith.constant 0 : i32
    return %c0_i32, %c0_i32_0, %c0_i32_1 : i32, i32, i32
  }
  func.func @transform_16(%arg0: i32) -> (i32, i32, i32) {
    %c0_i32 = arith.constant 0 : i32
    %c0_i32_0 = arith.constant 0 : i32
    %c0_i32_1 = arith.constant 0 : i32
    %c0_i32_2 = arith.constant 0 : i32
    return %c0_i32, %c0_i32_0, %c0_i32_1 : i32, i32, i32
  }
  func.func @transform_17(%arg0: i32) -> (i32, i32, i32) {
    %c0_i32 = arith.constant 0 : i32
    %c0_i32_0 = arith.constant 0 : i32
    %c0_i32_1 = arith.constant 0 : i32
    %c0_i32_2 = arith.constant 0 : i32
    return %c0_i32, %c0_i32_0, %c0_i32_1 : i32, i32, i32
  }
  func.func @transform_18(%arg0: i32) -> (i32, i32, i32) {
    %c0_i32 = arith.constant 0 : i32
    %c0_i32_0 = arith.constant 0 : i32
    %c0_i32_1 = arith.constant 0 : i32
    %c0_i32_2 = arith.constant 0 : i32
    return %c0_i32, %c0_i32_0, %c0_i32_1 : i32, i32, i32
  }
  func.func @transform_19(%arg0: i32) -> (i32, i32, i32) {
    %c0_i32 = arith.constant 0 : i32
    %c0_i32_0 = arith.constant 0 : i32
    %c0_i32_1 = arith.constant 0 : i32
    %c0_i32_2 = arith.constant 0 : i32
    return %c0_i32, %c0_i32_0, %c0_i32_1 : i32, i32, i32
  }
  func.func @transform_20(%arg0: i32) -> (i32, i32, i32) {
    %c0_i32 = arith.constant 0 : i32
    %c0_i32_0 = arith.constant 0 : i32
    %c0_i32_1 = arith.constant 0 : i32
    return %arg0, %c0_i32, %c0_i32_0 : i32, i32, i32
  }
}

</mosaic_0001>

<bundles_post_ra>
// kernel: mamba4rec_forward.1
= control target key start
LH: loop header
LB: loop body
LE: loop exit
PB: predicated region body
PF: predicated region fallthrough
CT: control target
= control target key end

     0   :  { %s5103_s0 = inlined_call_operand.vmem [shape: f32[16,32], index: 0, kind: input, shape index: {}]   ;;  %s5104_s1 = inlined_call_operand.vmem [shape: f32[8,32], index: 1, kind: input, shape index: {}]   ;;  %s5105_s2 = inlined_call_operand.vmem [shape: f32[1,32], index: 2, kind: input, shape index: {}]   ;;  %s5106_s3 = inlined_call_operand.vmem [shape: f32[1,32], index: 3, kind: input, shape index: {}]   ;;  %s5107_s4 = inlined_call_operand.vmem [shape: f32[2,32,128], index: 4, kind: input, shape index: {}]   ;;  %s5108_s5 = inlined_call_operand.vmem [shape: f32[2,4,64], index: 5, kind: input, shape index: {}]   ;;  %s5109_s6 = inlined_call_operand.vmem [shape: f32[2,1,64], index: 6, kind: input, shape index: {}]   ;;  %s5110_s7 = inlined_call_operand.vmem [shape: f32[2,64,128], index: 7, kind: input, shape index: {}]   ;;  %s5111_s8 = inlined_call_operand.vmem [shape: f32[2,1,64], index: 8, kind: input, shape index: {}]   ;;  %s5112_s9 = inlined_call_operand.vmem [shape: f32[2,16,64], index: 9, kind: input, shape index: {}]   ;;  %s5113_s10 = inlined_call_operand.vmem [shape: f32[2,1,64], index: 10, kind: input, shape index: {}]   ;;  %s5114_s11 = inlined_call_operand.vmem [shape: f32[2,64,32], index: 11, kind: input, shape index: {}]   ;;  %s5115_s12 = inlined_call_operand.vmem [shape: f32[2,1,32], index: 12, kind: input, shape index: {}]   ;;  %s5116_s13 = inlined_call_operand.vmem [shape: f32[2,1,32], index: 13, kind: input, shape index: {}]   ;;  %s5117_s14 = inlined_call_operand.vmem [shape: f32[2,32,128], index: 14, kind: input, shape index: {}]   ;;  %s5118_s15 = inlined_call_operand.vmem [shape: f32[2,1,128], index: 15, kind: input, shape index: {}]   ;;  %s5119_s16 = inlined_call_operand.vmem [shape: f32[2,128,32], index: 16, kind: input, shape index: {}]   ;;  %s5120_s17 = inlined_call_operand.vmem [shape: f32[2,1,32], index: 17, kind: input, shape index: {}]   ;;  %s5121_s18 = inlined_call_operand.vmem [shape: f32[2,1,32], index: 18, kind: input, shape index: {}]   ;;  %s5122_s19 = inlined_call_operand.vmem [shape: f32[2,1,32], index: 19, kind: input, shape index: {}]   ;;  %s5123_s20 = inlined_call_operand.vmem [shape: f32[2,1,256], index: 20, kind: output, shape index: {}]  }
   0x1   :  { %5128 = sst [smem:[#allocation7_spill]] %s5103_s0 }
   0x2   :  { %5129 = sst [smem:[#allocation8_spill]] %s5104_s1  ;;  %s3764_s1 = smov 0  }
   0x3   :  { %5130 = sst [smem:[#allocation9_spill]] %s5105_s2 }
   0x4   :  { %5131 = sst [smem:[#allocation10_spill]] %s5106_s3 }
   0x5   :  { %5132 = sst [smem:[#allocation11_spill]] %s5107_s4 }
   0x6 LB: > { %s3292_s22 = sadd.s32 4294967295, %s3649_s1   ;;  %p3296_p0 = scmp.ge.s32.totalorder %s3649_s1, 1  ;;  %s3649_s1 = sphi %s3764_s1, %s30_s1  }
   0x7   : > { %p561_p1 = scmp.lt.s32.totalorder %s3649_s1, 3 }
   0x9   : > { %p562_p2 = pnand %p3296_p0, %p561_p1 }
   0xb   : > { %565 = sbr.rel (%p562_p2) target bundleno = 4612 (0x1204), region = 100 }
  0x10   : > { %p617_p3 = scmp.lt.s32.totalorder %s3292_s22, 1  ;;  %s5133_s25 = sld [smem:[#allocation8_spill]]  ;;  %vm630_vm0 = vcmask 261120   ;;  %v3651_v4 = vmov 32.0   ;;  %v5125_v35 = vlaneseq  ;;  %v3652_v39 = vmov 0.0   ;;  %v841_v45 = vld [vmem:[%s5110_s7 + $0x38] sm:$0xff] }
  0x11   : > { %s5134_s27 = sld [smem:[#allocation7_spill]]  ;;  %3532 = vrcp.f32 %v3651_v4  ;;  %v791_v43 = vld [vmem:[%s5108_s5] sm:$0xf]  ;;  %854 = vmatpush.msra.mxu1 %v841_v45  ;;  %v840_v48 = vld [vmem:[%s5110_s7 + $0x30] sm:$0xff]  ;;  %v839_v56 = vld [vmem:[%s5110_s7 + $0x28] sm:$0xff]  ;;  %s3655_s2 = smov 112  }
  0x12   : > { %s5142_s22 = smov (!%p617_p3, %s3292_s22), 1  ;;  %s5135_s30 = sld [smem:[#allocation11_spill]]  ;;  %v3810_v36 = vshrl.u32 %v5125_v35, 7  ;;  %v3816_v38 = vand.u32 127, %v5125_v35  ;;  %v792_v44 = vperm.slane %v791_v43, 3  ;;  %v800_v46 = vperm.slane %v791_v43, 2 }
  0x13   : > { %s3297_s23 = sshll.u32 %s5142_s22, 3  ;;  %s5137_s29 = sld [smem:[#allocation10_spill]]  ;;  %v805_v47 = vperm.slane %v791_v43, 1  ;;  %v810_v50 = vperm.slane %v791_v43, 0  ;;  %855 = vmatpush.msra.mxu1 %v840_v48  ;;  %v3516_v52 = vld [vmem:[%s5109_s6] ss:$0 sm:$0xff] }
  0x14   : > { %v3813_v37 = vadd.s32 8, %v3810_v36  ;;  %vm760_vm5 = vcmp.eq.s32.totalorder %v3810_v36, %v3816_v38  ;;  %vm670_vm7 = vcmp.ge.s32.totalorder %v3810_v36, 1  ;;  %vm672_vm8 = vcmp.ge.s32.totalorder %v3810_v36, 2  ;;  %v838_v61 = vld [vmem:[%s5110_s7 + $0x20] sm:$0xff]  ;;  %s3657_s24 = smov 32   ;;  %s3298_s3 = sshll.u32 %s5142_s22, 1 }
  0x15   : > { %v3823_v40 = vsel %vm760_vm5, 1.0, %v3652_v39  ;;  %v3848_v57 = vsel %vm670_vm7, 1.0, %v3652_v39  ;;  %856 = vmatpush.msra.mxu1 %v839_v56  ;;  %vm674_vm9 = vcmp.ge.s32.totalorder %v3810_v36, 3  ;;  %v3857_v62 = vsel %vm672_vm8, 1.0, %v3652_v39 }
  0x16   : > { %v625_v0 = vld [vmem:[%s5133_s25] sm:$0xff]  ;;  %vm761_vm6 = vcmp.eq.s32.totalorder %v3813_v37, %v3816_v38  ;;  %vm884_vm7 = vcmask 64512   ;;  %s3658_s25 = smov 96  }
  0x17   : > { %s620_s28 = scalar_lea.vmem %s5134_s27, %s3297_s23  ;;  %v3533_v5 = vpop.eup %3532  ;;  %s5136_s27 = sld [smem:[#allocation9_spill]]  ;;  %v3826_v41 = vsel %vm761_vm6, 1.0, %v3652_v39  ;;  %857 = vmatpush.msra.mxu1 %v838_v61 }
  0x18   : > { %v626_v1 = vld [vmem:[%s620_s28] sm:$0xff]  ;;  %v635_v6 = vmul.f32 32.0, %v3533_v5  ;;  %vm639_vm1 = vweird.f32 %v3533_v5  ;;  %v767_v16 = vld [vmem:[%s5135_s30 + $0x18] sm:$0xff]  ;;  %v766_v17 = vld [vmem:[%s5135_s30 + $0x10] sm:$0xff]  ;;  %v3509_v42 = vpack.i.bf16 %v3826_v41, %v3823_v40  ;;  %s3653_s23 = smov 16   ;;  %s3654_s28 = smov 64  }
  0x19   : > { %v627_v2 = vadd.f32 %v626_v1, %v625_v0  ;;  %783 = vmatpush.msra.mxu0 %v767_v16  ;;  %v765_v18 = vld [vmem:[%s5135_s30 + $0x8] sm:$0xff]  ;;  %v764_v19 = vld [vmem:[%s5135_s30] sm:$0xff] }
  0x1a   : > { %v636_v7 = vsub.f32 1.0, %v635_v6  ;;  %v3515_v32 = vld [vmem:[%s5137_s29] ss:$0 sm:$0xff]  ;;  %3510 = vrot.lane.b32.xlu1 %v3509_v42, %s3653_s23  ;;  %v836_v6 = vld [vmem:[%s5110_s7 + $0x10] sm:$0xff] }
  0x1b   : > { %v631_v3 = vsel %vm630_vm0, %v627_v2, 0.0  ;;  %784 = vmatpush.msra.mxu0 %v766_v17 }
  0x1c   : > { %632 = vadd.xlane.f32.xlu0 %v631_v3  ;;  %v637_v8 = vmul.f32 %v3533_v5, %v636_v7  ;;  %v3864_v3 = vsel %vm674_vm9, 1.0, %v3652_v39 }
  0x1d   : > { %785 = vmatpush.msra.mxu0 %v765_v18  ;;  %v3514_v29 = vld [vmem:[%s5136_s27] ss:$0 sm:$0xff] }
  0x1e   : > { %v638_v9 = vadd.f32 %v3533_v5, %v637_v8 }
  0x1f   : > { %786 = vmatpush.msra.mxu0 %v764_v19 }
  0x20   : > { %v3782_v10 = vsel %vm639_vm1, %v3533_v5, %v638_v9  ;;  %v835_v9 = vld [vmem:[%s5110_s7 + $0x8] sm:$0xff] }
  0x8f   : > { %v633_v11 = vpop.xlane.xlu0 %632 }
  0x90   : > { %v641_v12 = vmul.f32 %v3782_v10, %v633_v11 }
  0x92   : > { %v642_v13 = vsub.f32 %v627_v2, %v641_v12  ;;  %v837_v2 = vld [vmem:[%s5110_s7 + $0x18] sm:$0xff] }
  0x93   : > { %858 = vmatpush.msra.mxu1 %v837_v2 }
  0x94   : > { %v643_v14 = vmul.f32 %v642_v13, %v642_v13 }
  0x95   : > { %859 = vmatpush.msra.mxu1 %v836_v6 }
  0x96   : > { %v644_v15 = vsel %vm630_vm0, %v643_v14, 0.0  ;;  %v834_v14 = vld [vmem:[%s5110_s7] sm:$0xff] }
  0x97   : > { %645 = vadd.xlane.f32.xlu0 %v644_v15  ;;  %860 = vmatpush.msra.mxu1 %v835_v9 }
  0x99   : > { %861 = vmatpush.msra.mxu1 %v834_v14 }
 0x10a   : > { %v646_v20 = vpop.xlane.xlu0 %645 }
 0x10b   : > { %v647_v21 = vmul.f32 %v646_v20, %v3782_v10 }
 0x10d   : > { %v648_v22 = vadd.f32 1e-12, %v647_v21 }
 0x10f   : > { %3534 = vrsqrt.f32 %v648_v22  ;;  %vm655_vm3 = vweird.f32 %v648_v22 }
 0x115   : > { %v3535_v23 = vpop.eup %3534 }
 0x116   : > { %v650_v24 = vmul.f32 %v3535_v23, %v648_v22  ;;  %vm656_vm2 = vweird.f32 %v3535_v23 }
 0x117   : > { %vm657_vm4 = vmor %vm655_vm3, %vm656_vm2  ;;  %vm842_vm3 = vcmask 523264  }
 0x118   : > { %v651_v25 = vmul.f32 %v3535_v23, %v650_v24 }
 0x11a   : > { %v652_v26 = vmul.f32 0.5, %v651_v25 }
 0x11c   : > { %v653_v27 = vsub.f32 1.5, %v652_v26 }
 0x11e   : > { %v654_v28 = vmul.f32 %v3535_v23, %v653_v27 }
 0x120   : > { %v658_v30 = vsel %vm657_vm4, %v3535_v23, %v654_v28 }
 0x121   : > { %v659_v31 = vmul.f32 %v658_v30, %v642_v13 }
 0x123   : > { %v663_v33 = vmul.f32 %v3514_v29, %v659_v31 }
 0x125   : > { %v3805_v34 = vadd.f32 %v3515_v32, %v663_v33 }
 0x127   : > { %3299 = vmatmul.msk.f32.vlgmr.msra.gmra.mxu0 %vm630_vm0, %v3805_v34 }
 0x1a4   : > { %v788_v49 = vpop.f32.mrf.mxu0 }
 0x1a5   : > { %v793_v51 = vmul.f32 %v792_v44, %v788_v49  ;;  %v799_v53 = vrot.slane %v788_v49, 7  ;;  %v804_v54 = vrot.slane %v788_v49, 6  ;;  %v809_v55 = vrot.slane %v788_v49, 5 }
 0x1a6   : > { %v3366_v58 = vmul.f32 -1.442695, %v788_v49 }
 0x1a7   : > { %v801_v59 = vmul.f32 %v800_v46, %v799_v53  ;;  %v806_v60 = vmul.f32 %v805_v47, %v804_v54  ;;  %v798_v63 = vadd.f32 %v3516_v52, %v793_v51  ;;  %v811_v1 = vmul.f32 %v810_v50, %v809_v55 }
 0x1a8   : > { %3536 = vpow2.f32 %v3366_v58 }
 0x1a9   : > { %v802_v0 = vmul.f32 %v801_v59, %v3848_v57  ;;  %v807_v5 = vmul.f32 %v806_v60, %v3857_v62  ;;  %v812_v8 = vmul.f32 %v811_v1, %v3864_v3  ;;  %v3517_v59 = vld [vmem:[%s5111_s8] ss:$0 sm:$0xff] }
 0x1ab   : > { %v803_v4 = vadd.f32 %v802_v0, %v798_v63 }
 0x1ad   : > { %v808_v7 = vadd.f32 %v807_v5, %v803_v4 }
 0x1ae   : > { %v3537_v11 = vpop.eup %3536 }
 0x1af   : > { %v813_v12 = vadd.f32 %v812_v8, %v808_v7  ;;  %v1540_v13 = vadd.f32 1.0, %v3537_v11  ;;  %v710_v11 = vadd.s32 1, %v3816_v38 }
 0x1b1   : > { %v3300_v15 = vmul.f32 -1.442695, %v813_v12  ;;  %3538 = vrcp.f32 %v1540_v13  ;;  %v1552_v21 = vand.u32 2147483648, %v1540_v13  ;;  %v1550_v23 = vand.u32 2147483647, %v1540_v13 }
 0x1b2   : > { %vm1546_vm11 = vweird.f32 %v1540_v13 }
 0x1b3   : > { %3540 = vpow2.f32 %v3300_v15  ;;  %v1553_v25 = vor.u32 1.1754944e-38, %v1552_v21  ;;  %vm1551_vm13 = vcmp.eq.f32.partialorder %v1550_v23, 8.507059e+37 }
 0x1b7   : > { %v3539_v16 = vpop.eup %3538 }
 0x1b8   : > { %v1542_v17 = vmul.f32 %v3539_v16, %v1540_v13  ;;  %vm1547_vm10 = vweird.f32 %v3539_v16  ;;  %v3910_v13 = vmul.u32 16, %v710_v11 }
 0x1b9   : > { %v3541_v18 = vpop.eup %3540  ;;  %vm1548_vm12 = vmor %vm1546_vm11, %vm1547_vm10 }
 0x1ba   : > { %v817_v19 = vadd.f32 1.0, %v3541_v18  ;;  %v1543_v20 = vsub.f32 1.0, %v1542_v17  ;;  %vm712_vm5 = vcmp.lt.s32.totalorder %v3810_v36, %v3910_v13  ;;  %vm713_vm9 = vcmp.lt.s32.totalorder %v3813_v37, %v3910_v13 }
 0x1bc   : > { %3542 = vrcp.f32 %v817_v19  ;;  %v1544_v22 = vmul.f32 %v3539_v16, %v1543_v20  ;;  %v829_v42 = vand.u32 2147483648, %v817_v19  ;;  %v827_v44 = vand.u32 2147483647, %v817_v19 }
 0x1bd   : > { %vm823_vm15 = vweird.f32 %v817_v19 }
 0x1be   : > { %v1545_v24 = vadd.f32 %v3539_v16, %v1544_v22  ;;  %v830_v46 = vor.u32 1.1754944e-38, %v829_v42  ;;  %vm828_vm2 = vcmp.eq.f32.partialorder %v827_v44, 8.507059e+37  ;;  %v680_v22 = vadd.s32 40, %v3810_v36 }
 0x1c0   : > { %v1549_v26 = vsel %vm1548_vm12, %v3539_v16, %v1545_v24  ;;  %v3935_v16 = vpop.permute.xlu1 %3510  ;;  %v681_v24 = vadd.s32 48, %v3810_v36 }
 0x1c1   : > { %v1554_v28 = vsel %vm1551_vm13, %v1553_v25, %v1549_v26  ;;  %v682_v26 = vadd.s32 56, %v3810_v36 }
 0x1c2   : > { %v3543_v27 = vpop.eup %3542  ;;  %v3877_v30 = vmul.f32 %v1554_v28, %v788_v49  ;;  %v683_v28 = vadd.s32 64, %v3810_v36 }
 0x1c3   : > { %v819_v29 = vmul.f32 %v3543_v27, %v817_v19  ;;  %vm824_vm14 = vweird.f32 %v3543_v27  ;;  %v679_v19 = vadd.s32 32, %v3810_v36 }
 0x1c4   : > { %1558 = vrot.lane.b32.xlu0 %v3877_v30, %s3654_s28  ;;  %v1624_v32 = vrot.slane %v3877_v30, 2  ;;  %v1591_v33 = vrot.slane %v3877_v30, 1  ;;  %vm825_vm1 = vmor %vm823_vm15, %vm824_vm14  ;;  %v1657_v48 = vrot.slane %v3877_v30, 3  ;;  %v1690_v51 = vrot.slane %v3877_v30, 4 }
 0x1c5   : > { %v820_v31 = vsub.f32 1.0, %v819_v29 }
 0x1c6   : > { %1625 = vrot.lane.b32.xlu1 %v1624_v32, %s3654_s28  ;;  %1592 = vrot.lane.b32.xlu2 %v1591_v33, %s3654_s28  ;;  %v685_v33 = vadd.s32 80, %v3810_v36 }
 0x1c7   : > { %v821_v43 = vmul.f32 %v3543_v27, %v820_v31  ;;  %v684_v31 = vadd.s32 72, %v3810_v36 }
 0x1c9   : > { %v822_v45 = vadd.f32 %v3543_v27, %v821_v43  ;;  %v686_v43 = vadd.s32 88, %v3810_v36 }
 0x1cb   : > { %v826_v47 = vsel %vm825_vm1, %v3543_v27, %v822_v45  ;;  %v882_v45 = vld [vmem:[%s5112_s9 + $0x8] sm:$0xff] }
 0x1cc   : > { %v831_v49 = vsel %vm828_vm2, %v830_v46, %v826_v47  ;;  %1658 = vrot.lane.b32.xlu0 %v1657_v48, %s3654_s28  ;;  %v881_v46 = vld [vmem:[%s5112_s9] sm:$0xff]  ;;  %v687_v47 = vadd.s32 96, %v3810_v36  ;;  %1084 = vmatpush.msrb.mxu0 %v882_v45 }
 0x1cd   : > { %v833_v50 = vmul.f32 %v831_v49, %v813_v12  ;;  %v3908_v12 = vmul.u32 16, %v3816_v38  ;;  %v677_v38 = vadd.s32 16, %v3810_v36  ;;  %v688_v49 = vadd.s32 104, %v3810_v36 }
 0x1ce   : > { %1691 = vrot.lane.b32.xlu2 %v1690_v51, %s3654_s28  ;;  %1085 = vmatpush.msrb.mxu0 %v881_v46  ;;  %v689_v51 = vadd.s32 112, %v3810_v36 }
 0x1cf   : > { %1585 = vst [vmem:[#allocation1] sm:$0xff] %v833_v50  ;;  %3301 = vmatmul.msk.f32.vlgmr.msra.gmra.mxu1 %vm842_vm3, %v833_v50  ;;  %vm694_vm4 = vcmp.ge.s32.totalorder %v3810_v36, %v3908_v12  ;;  %vm695_vm8 = vcmp.ge.s32.totalorder %v3813_v37, %v3908_v12  ;;  %vm696_vm11 = vcmp.ge.s32.totalorder %v677_v38, %v3908_v12  ;;  %v678_v37 = vadd.s32 24, %v3810_v36 }
 0x1d0   : > { %vm728_vm6 = vmand %vm694_vm4, %vm712_vm5  ;;  %vm714_vm12 = vcmp.lt.s32.totalorder %v677_v38, %v3910_v13  ;;  %vm698_vm2 = vcmp.ge.s32.totalorder %v679_v19, %v3908_v12  ;;  %vm716_vm4 = vcmp.lt.s32.totalorder %v679_v19, %v3910_v13 }
 0x1d1   : > { %v3917_v14 = vsel %vm728_vm6, 1.0, %v3652_v39  ;;  %vm729_vm10 = vmand %vm695_vm8, %vm713_vm9  ;;  %vm697_vm14 = vcmp.ge.s32.totalorder %v678_v37, %v3908_v12  ;;  %vm715_vm15 = vcmp.lt.s32.totalorder %v678_v37, %v3910_v13  ;;  %vm699_vm6 = vcmp.ge.s32.totalorder %v680_v22, %v3908_v12 }
 0x1d2   : > { %v3929_v15 = vsel %vm729_vm10, 1.0, %v3652_v39  ;;  %vm730_vm13 = vmand %vm696_vm11, %vm714_vm12  ;;  %vm717_vm8 = vcmp.lt.s32.totalorder %v680_v22, %v3910_v13  ;;  %vm700_vm10 = vcmp.ge.s32.totalorder %v681_v24, %v3908_v12  ;;  %vm718_vm11 = vcmp.lt.s32.totalorder %v681_v24, %v3910_v13 }
 0x1d3   : > { %v3941_v17 = vsel %vm730_vm13, 1.0, %v3652_v39  ;;  %vm731_vm1 = vmand %vm697_vm14, %vm715_vm15  ;;  %vm701_vm13 = vcmp.ge.s32.totalorder %v682_v26, %v3908_v12  ;;  %vm719_vm14 = vcmp.lt.s32.totalorder %v682_v26, %v3910_v13 }
 0x1d4   : > { %v3953_v20 = vsel %vm731_vm1, 1.0, %v3652_v39  ;;  %vm732_vm5 = vmand %vm698_vm2, %vm716_vm4  ;;  %vm702_vm1 = vcmp.ge.s32.totalorder %v683_v28, %v3908_v12  ;;  %vm720_vm2 = vcmp.lt.s32.totalorder %v683_v28, %v3910_v13 }
 0x1d5   : > { %v3965_v23 = vsel %vm732_vm5, 1.0, %v3652_v39  ;;  %vm733_vm9 = vmand %vm699_vm6, %vm717_vm8  ;;  %vm703_vm5 = vcmp.ge.s32.totalorder %v684_v31, %v3908_v12  ;;  %vm721_vm6 = vcmp.lt.s32.totalorder %v684_v31, %v3910_v13 }
 0x1d6   : > { %v3890_v52 = vld [vmem:[#allocation1 + $0x1] ss:$9 sm:$0xff]  ;;  %v3977_v25 = vsel %vm733_vm9, 1.0, %v3652_v39  ;;  %vm734_vm12 = vmand %vm700_vm10, %vm718_vm11  ;;  %vm704_vm9 = vcmp.ge.s32.totalorder %v685_v33, %v3908_v12  ;;  %vm722_vm10 = vcmp.lt.s32.totalorder %v685_v33, %v3910_v13 }
 0x1d7   : > { %1618 = vst [vmem:[#allocation1] sm:$0xff] %v833_v50  ;;  %v3989_v27 = vsel %vm734_vm12, 1.0, %v3652_v39  ;;  %vm735_vm15 = vmand %vm701_vm13, %vm719_vm14  ;;  %vm705_vm12 = vcmp.ge.s32.totalorder %v686_v43, %v3908_v12  ;;  %vm723_vm13 = vcmp.lt.s32.totalorder %v686_v43, %v3910_v13 }
 0x1d8   : > { %v4001_v29 = vsel %vm735_vm15, 1.0, %v3652_v39  ;;  %vm736_vm4 = vmand %vm702_vm1, %vm720_vm2  ;;  %vm1063_vm15 = vcmask 130048   ;;  %vm706_vm1 = vcmp.ge.s32.totalorder %v687_v47, %v3908_v12  ;;  %vm724_vm2 = vcmp.lt.s32.totalorder %v687_v47, %v3910_v13 }
 0x1d9   : > { %v4013_v32 = vsel %vm736_vm4, 1.0, %v3652_v39  ;;  %vm737_vm8 = vmand %vm703_vm5, %vm721_vm6  ;;  %3334 = vmatmul.msk.f32.vlgmr.msrb.gmra.mxu0 %vm1063_vm15, %v3823_v40  ;;  %vm707_vm5 = vcmp.ge.s32.totalorder %v688_v49, %v3908_v12  ;;  %vm725_vm6 = vcmp.lt.s32.totalorder %v688_v49, %v3910_v13 }
 0x1da   : > { %v4025_v42 = vsel %vm737_vm8, 1.0, %v3652_v39  ;;  %vm738_vm11 = vmand %vm704_vm9, %vm722_vm10  ;;  %vm708_vm9 = vcmp.ge.s32.totalorder %v689_v51, %v3908_v12  ;;  %vm726_vm10 = vcmp.lt.s32.totalorder %v689_v51, %v3910_v13 }
 0x1db   : > { %v4037_v44 = vsel %vm738_vm11, 1.0, %v3652_v39  ;;  %vm739_vm14 = vmand %vm705_vm12, %vm723_vm13 }
 0x1dc   : > { %v4055_v48 = vsel %vm739_vm14, 1.0, %v3652_v39  ;;  %vm740_vm4 = vmand %vm706_vm1, %vm724_vm2  ;;  %vm1562_vm1 = vcmask 516096  }
 0x1dd   : > { %vm741_vm8 = vmand %vm707_vm5, %vm725_vm6 }
 0x1de   : > { %v3892_v53 = vld [vmem:[#allocation1 + $0x2] ss:$9 sm:$0xff]  ;;  %vm742_vm11 = vmand %vm708_vm9, %vm726_vm10 }
 0x1df   : > { %1651 = vst [vmem:[#allocation1] sm:$0xff] %v833_v50 }
 0x1e1   : > { %3335 = vmatmul.msk.f32.gmra.mxu0 %vm1063_vm15, %v3826_v41 }
 0x1e6   : > { %v3894_v54 = vld [vmem:[#allocation1 + $0x3] ss:$9 sm:$0xff] }
 0x1e7   : > { %1684 = vst [vmem:[#allocation1] sm:$0xff] %v833_v50 }
 0x1e9   : > { %3336 = vmatmul.msk.f32.gmra.mxu0 %vm1063_vm15, %v3823_v40 }
 0x1ee   : > { %v3896_v55 = vld [vmem:[#allocation1 + $0x4] ss:$9 sm:$0xff] }
 0x1ef   : > { %1717 = vst [vmem:[#allocation1] sm:$0xff] %v833_v50 }
 0x1f1   : > { %3337 = vmatmul.msk.f32.gmra.mxu0 %vm1063_vm15, %v3826_v41 }
 0x1f6   : > { %v3898_v56 = vld [vmem:[#allocation1 + $0x5] ss:$9 sm:$0xff] }
 0x1f7   : > { %1750 = vst [vmem:[#allocation1] sm:$0xff] %v833_v50 }
 0x1f9   : > { %3338 = vmatmul.msk.f32.gmra.mxu0 %vm1063_vm15, %v3823_v40 }
 0x1fe   : > { %v3900_v58 = vld [vmem:[#allocation1 + $0x6] ss:$9 sm:$0xff] }
 0x1ff   : > { %1783 = vst [vmem:[#allocation1] sm:$0xff] %v833_v50 }
 0x201   : > { %3339 = vmatmul.msk.f32.gmra.mxu0 %vm1063_vm15, %v3826_v41 }
 0x209   : > { %3340 = vmatmul.msk.f32.gmra.mxu0 %vm1063_vm15, %v3823_v40 }
 0x211   : > { %3341 = vmatmul.msk.f32.gmra.mxu0 %vm1063_vm15, %v3826_v41 }
 0x219   : > { %3342 = vmatmul.msk.f32.gmra.mxu0 %vm1063_vm15, %v3823_v40 }
 0x221   : > { %3343 = vmatmul.msk.f32.gmra.mxu0 %vm1063_vm15, %v3826_v41 }
 0x229   : > { %3344 = vmatmul.msk.f32.gmra.mxu0 %vm1063_vm15, %v3823_v40 }
 0x231   : > { %3345 = vmatmul.msk.f32.gmra.mxu0 %vm1063_vm15, %v3826_v41 }
 0x238   : > { %v3949_v18 = vpop.permute.xlu1 %1625 }
 0x239   : > { %3346 = vmatmul.msk.f32.gmra.mxu0 %vm1063_vm15, %v3823_v40 }
 0x241   : > { %3347 = vmatmul.msk.f32.gmra.mxu0 %vm1063_vm15, %v3826_v41 }
 0x249   : > { %3348 = vmatmul.msk.f32.gmra.mxu0 %vm1063_vm15, %v3823_v40 }
 0x24c   : > { %v863_v60 = vpop.f32.mrf.mxu1 }
 0x24d   : > { %v870_v61 = vadd.f32 %v3517_v59, %v863_v60  ;;  %1200 = vrot.lane.b32.xlu1 %v863_v60, %s3654_s28  ;;  %v4083_v59 = vsel %vm741_vm8, 1.0, %v3652_v39  ;;  %v690_v60 = vadd.s32 120, %v3810_v36 }
 0x24f   : > { %v872_v63 = vand.u32 2147483647, %v870_v61  ;;  %v871_v6 = vmax.f32 %v870_v61, 0.0  ;;  %v4097_v61 = vsel %vm742_vm11, 1.0, %v3652_v39  ;;  %vm709_vm12 = vcmp.ge.s32.totalorder %v690_v60, %v3908_v12 }
 0x250   : > { %vm727_vm13 = vcmp.lt.s32.totalorder %v690_v60, %v3910_v13 }
 0x251   : > { %v873_v0 = vsub.f32 0.0, %v872_v63  ;;  %vm743_vm14 = vmand %vm709_vm12, %vm727_vm13  ;;  %3349 = vmatmul.msk.f32.gmra.mxu0 %vm1063_vm15, %v3826_v41 }
 0x252   : > { %v4110_v36 = vsel %vm743_vm14, 1.0, %v3652_v39 }
 0x253   : > { %v874_v1 = vmul.f32 1.442695, %v873_v0 }
 0x255   : > { %3544 = vpow2.f32 %v874_v1 }
 0x256   : > { %v1087_v28 = vpop.f32.mrf.mxu0 }
 0x25b   : > { %v3545_v2 = vpop.eup %3544 }
 0x25c   : > { %v876_v4 = vadd.f32 1.0, %v3545_v2 }
 0x25e   : > { %3546 = vlog2.f32 %v876_v4  ;;  %v4142_v4 = vunpack.i.h.bf16 %v3935_v16  ;;  %v1090_v60 = vpop.f32.mrf.mxu0 }
 0x260   : > { %5138 = vst [vmem:[#allocation6_spill] sm:$0xff] %v4142_v4 }
 0x264   : > { %v3547_v5 = vpop.eup %3546 }
 0x265   : > { %v878_v7 = vmul.f32 0.6931472, %v3547_v5 }
 0x267   : > { %v879_v8 = vadd.f32 %v878_v7, %v871_v6 }
 0x269   : > { %948 = vmatpush.msra.mxu2 %v879_v8  ;;  %v880_v9 = vmul.f32 %v879_v8, %v833_v50  ;;  %v4069_v50 = vsel %vm740_vm4, 1.0, %v3652_v39  ;;  %v4133_v39 = vunpack.i.l.bf16 %v3935_v16 }
 0x26a   : > { %3302 = vmatmul.msk.f32.vlgmr.msra.gmra.mxu2 %vm884_vm7, %v3917_v14 }
 0x26b   : > { %1013 = vmatpush.msra.mxu3 %v880_v9 }
 0x26c   : > { %3318 = vmatmul.msk.f32.vlgmr.msra.gmra.mxu3 %vm884_vm7, %v3917_v14 }
 0x272   : > { %3303 = vmatmul.msk.f32.gmra.mxu2 %vm884_vm7, %v3929_v15 }
 0x274   : > { %3319 = vmatmul.msk.f32.gmra.mxu3 %vm884_vm7, %v3929_v15 }
 0x27a   : > { %3304 = vmatmul.msk.f32.gmra.mxu2 %vm884_vm7, %v3941_v17 }
 0x27c   : > { %3320 = vmatmul.msk.f32.gmra.mxu3 %vm884_vm7, %v3941_v17 }
 0x282   : > { %3305 = vmatmul.msk.f32.gmra.mxu2 %vm884_vm7, %v3953_v20 }
 0x284   : > { %3321 = vmatmul.msk.f32.gmra.mxu3 %vm884_vm7, %v3953_v20 }
 0x28a   : > { %3306 = vmatmul.msk.f32.gmra.mxu2 %vm884_vm7, %v3965_v23 }
 0x28c   : > { %3322 = vmatmul.msk.f32.gmra.mxu3 %vm884_vm7, %v3965_v23 }
 0x292   : > { %3307 = vmatmul.msk.f32.gmra.mxu2 %vm884_vm7, %v3977_v25 }
 0x294   : > { %3323 = vmatmul.msk.f32.gmra.mxu3 %vm884_vm7, %v3977_v25 }
 0x29a   : > { %3308 = vmatmul.msk.f32.gmra.mxu2 %vm884_vm7, %v3989_v27 }
 0x29c   : > { %3324 = vmatmul.msk.f32.gmra.mxu3 %vm884_vm7, %v3989_v27 }
 0x2a2   : > { %3309 = vmatmul.msk.f32.gmra.mxu2 %vm884_vm7, %v4001_v29 }
 0x2a4   : > { %3325 = vmatmul.msk.f32.gmra.mxu3 %vm884_vm7, %v4001_v29 }
 0x2aa   : > { %3310 = vmatmul.msk.f32.gmra.mxu2 %vm884_vm7, %v4013_v32 }
 0x2ac   : > { %3326 = vmatmul.msk.f32.gmra.mxu3 %vm884_vm7, %v4013_v32 }
 0x2b2   : > { %3311 = vmatmul.msk.f32.gmra.mxu2 %vm884_vm7, %v4025_v42 }
 0x2b4   : > { %3327 = vmatmul.msk.f32.gmra.mxu3 %vm884_vm7, %v4025_v42 }
 0x2ba   : > { %3312 = vmatmul.msk.f32.gmra.mxu2 %vm884_vm7, %v4037_v44 }
 0x2bc   : > { %3328 = vmatmul.msk.f32.gmra.mxu3 %vm884_vm7, %v4037_v44 }
 0x2bf   : > { %v1201_v21 = vpop.permute.xlu1 %1200 }
 0x2c0   : > { %1218 = vmatpush.msrb.mxu1 %v1201_v21 }
 0x2c1   : > { %3350 = vmatmul.msk.f32.vlgmr.msrb.gmra.mxu1 %vm884_vm7, %v3917_v14 }
 0x2c2   : > { %3313 = vmatmul.msk.f32.gmra.mxu2 %vm884_vm7, %v4055_v48 }
 0x2c4   : > { %3329 = vmatmul.msk.f32.gmra.mxu3 %vm884_vm7, %v4055_v48 }
 0x2c9   : > { %3351 = vmatmul.msk.f32.gmra.mxu1 %vm884_vm7, %v3929_v15 }
 0x2ca   : > { %3314 = vmatmul.msk.f32.gmra.mxu2 %vm884_vm7, %v4069_v50 }
 0x2cc   : > { %3330 = vmatmul.msk.f32.gmra.mxu3 %vm884_vm7, %v4069_v50 }
 0x2d1   : > { %3352 = vmatmul.msk.f32.gmra.mxu1 %vm884_vm7, %v3941_v17 }
 0x2d2   : > { %3315 = vmatmul.msk.f32.gmra.mxu2 %vm884_vm7, %v4083_v59 }
 0x2d4   : > { %3331 = vmatmul.msk.f32.gmra.mxu3 %vm884_vm7, %v4083_v59 }
 0x2d9   : > { %3353 = vmatmul.msk.f32.gmra.mxu1 %vm884_vm7, %v3953_v20 }
 0x2da   : > { %3316 = vmatmul.msk.f32.gmra.mxu2 %vm884_vm7, %v4097_v61 }
 0x2dc   : > { %3332 = vmatmul.msk.f32.gmra.mxu3 %vm884_vm7, %v4097_v61 }
 0x2e1   : > { %3354 = vmatmul.msk.f32.gmra.mxu1 %vm884_vm7, %v3965_v23 }
 0x2e2   : > { %3317 = vmatmul.msk.f32.gmra.mxu2 %vm884_vm7, %v4110_v36 }
 0x2e4   : > { %3333 = vmatmul.msk.f32.gmra.mxu3 %vm884_vm7, %v4110_v36 }
 0x2e9   : > { %3355 = vmatmul.msk.f32.gmra.mxu1 %vm884_vm7, %v3977_v25 }
 0x2ed   : > { %v950_v43 = vpop.f32.mrf.mxu2 }
 0x2ee   : > { %v1135_v45 = vmul.f32 %v1087_v28, %v950_v43 }
 0x2f0   : > { %v1151_v47 = vmul.f32 1.442695, %v1135_v45 }
 0x2f1   : > { %3356 = vmatmul.msk.f32.gmra.mxu1 %vm884_vm7, %v3989_v27 }
 0x2f2   : > { %3548 = vpow2.f32 %v1151_v47 }
 0x2f9   : > { %3357 = vmatmul.msk.f32.gmra.mxu1 %vm884_vm7, %v4001_v29 }
 0x301   : > { %3358 = vmatmul.msk.f32.gmra.mxu1 %vm884_vm7, %v4013_v32 }
 0x309   : > { %3359 = vmatmul.msk.f32.gmra.mxu1 %vm884_vm7, %v4025_v42 }
 0x311   : > { %3360 = vmatmul.msk.f32.gmra.mxu1 %vm884_vm7, %v4037_v44 }
 0x319   : > { %3361 = vmatmul.msk.f32.gmra.mxu1 %vm884_vm7, %v4055_v48 }
 0x321   : > { %3362 = vmatmul.msk.f32.gmra.mxu1 %vm884_vm7, %v4069_v50 }
 0x329   : > { %3363 = vmatmul.msk.f32.gmra.mxu1 %vm884_vm7, %v4083_v59 }
 0x331   : > { %3364 = vmatmul.msk.f32.gmra.mxu1 %vm884_vm7, %v4097_v61 }
 0x339   : > { %3365 = vmatmul.msk.f32.gmra.mxu1 %vm884_vm7, %v4110_v36 }
 0x33e   : > { %v1220_v63 = vpop.f32.mrf.mxu1 }
 0x33f   : > { %v1338_v0 = vmul.f32 %v4133_v39, %v1220_v63  ;;  %v1268_v1 = vmul.f32 %v1220_v63, %v3823_v40 }
 0x341   : > { %1370 = vrot.lane.b32.xlu2 %v1338_v0, %s3655_s2  ;;  %v1284_v2 = vsel %vm1063_vm15, %v1268_v1, 0.0  ;;  %v953_v0 = vpop.f32.mrf.mxu2 }
 0x342   : > { %1285 = vadd.xlane.f32.xlu1 %v1284_v2  ;;  %v1136_v1 = vmul.f32 %v1090_v60, %v953_v0 }
 0x346   : > { %v1223_v5 = vpop.f32.mrf.mxu1 }
 0x347   : > { %v1339_v6 = vmul.f32 %v4142_v4, %v1223_v5  ;;  %v1269_v38 = vmul.f32 %v1223_v5, %v3826_v41  ;;  %v3549_v5 = vpop.eup %3548 }
 0x348   : > { %1183 = vst.msk [vmem:[#allocation2] sm:$0xff] %vm842_vm3, %v3549_v5 }
 0x349   : > { %1372 = vrot.lane.b32.xlu2 %v1339_v6, %s3655_s2  ;;  %v1287_v37 = vsel %vm1063_vm15, %v1269_v38, 0.0  ;;  %v1153_v6 = vmul.f32 1.442695, %v1136_v1 }
 0x34b   : > { %3550 = vpow2.f32 %v1153_v6 }
 0x34e   : > { %v1226_v7 = vpop.f32.mrf.mxu1 }
 0x34f   : > { %v1340_v8 = vmul.f32 %v4133_v39, %v1226_v7  ;;  %v1270_v21 = vmul.f32 %v1226_v7, %v3823_v40  ;;  %v1093_v7 = vpop.f32.mrf.mxu0 }
 0x351   : > { %1374 = vrot.lane.b32.xlu0 %v1340_v8, %s3655_s2  ;;  %v1290_v26 = vsel %vm1063_vm15, %v1270_v21, 0.0  ;;  %v956_v8 = vpop.f32.mrf.mxu2  ;;  %v3551_v38 = vpop.eup %3550 }
 0x352   : > { %1184 = vst.msk [vmem:[#allocation2 + $0x8] sm:$0xff] %vm842_vm3, %v3551_v38 }
 0x356   : > { %v1229_v9 = vpop.f32.mrf.mxu1 }
 0x357   : > { %v1341_v11 = vmul.f32 %v4142_v4, %v1229_v9  ;;  %v1271_v19 = vmul.f32 %v1229_v9, %v3826_v41  ;;  %v1137_v9 = vmul.f32 %v1093_v7, %v956_v8 }
 0x359   : > { %v1293_v22 = vsel %vm1063_vm15, %v1271_v19, 0.0 }
 0x35b   : > { %1376 = vrot.lane.b32.xlu1 %v1341_v11, %s3655_s2 }
 0x35e   : > { %v1232_v12 = vpop.f32.mrf.mxu1 }
 0x35f   : > { %v1272_v33 = vmul.f32 %v1232_v12, %v3823_v40  ;;  %v1342_v11 = vmul.f32 %v4133_v39, %v1232_v12 }
 0x361   : > { %v1296_v49 = vsel %vm1063_vm15, %v1272_v33, 0.0  ;;  %v1096_v33 = vpop.f32.mrf.mxu0 }
 0x366   : > { %v1235_v13 = vpop.f32.mrf.mxu1 }
 0x367   : > { %v1273_v31 = vmul.f32 %v1235_v13, %v3826_v41 }
 0x369   : > { %v1299_v46 = vsel %vm1063_vm15, %v1273_v31, 0.0  ;;  %v959_v31 = vpop.f32.mrf.mxu2  ;;  %v1099_v60 = vpop.f32.mrf.mxu0 }
 0x36a   : > { %v1138_v43 = vmul.f32 %v1096_v33, %v959_v31 }
 0x36c   : > { %v1157_v45 = vmul.f32 1.442695, %v1138_v43 }
 0x36e   : > { %v4163_v16 = vpop.f32.mrf.mxu1 }
 0x36f   : > { %v1344_v19 = vmul.f32 %v4133_v39, %v4163_v16  ;;  %v1274_v5 = vmul.f32 %v4163_v16, %v3823_v40 }
 0x371   : > { %v1102_v7 = vpop.f32.mrf.mxu0 }
 0x372   : > { %1288 = vadd.xlane.f32.xlu2 %v1287_v37  ;;  %v1155_v37 = vmul.f32 1.442695, %v1137_v9 }
 0x374   : > { %3552 = vpow2.f32 %v1155_v37 }
 0x375   : > { %3554 = vpow2.f32 %v1157_v45 }
 0x376   : > { %v4171_v24 = vpop.f32.mrf.mxu1 }
 0x377   : > { %v1345_v28 = vmul.f32 %v4142_v4, %v4171_v24  ;;  %v1275_v33 = vmul.f32 %v4171_v24, %v3826_v41 }
 0x379   : > { %v1305_v45 = vsel %vm1063_vm15, %v1275_v33, 0.0 }
 0x37a   : > { %1294 = vadd.xlane.f32.xlu2 %v1293_v22  ;;  %v3553_v21 = vpop.eup %3552 }
 0x37b   : > { %1291 = vadd.xlane.f32.xlu0 %v1290_v26  ;;  %1185 = vst.msk [vmem:[#allocation2 + $0x10] sm:$0xff] %vm842_vm3, %v3553_v21  ;;  %v1343_v26 = vmul.f32 %v4142_v4, %v1235_v13  ;;  %v962_v13 = vpop.f32.mrf.mxu2  ;;  %v3555_v1 = vpop.eup %3554  ;;  %v1302_v21 = vsel %vm1063_vm15, %v1274_v5, 0.0 }
 0x37c   : > { %v1139_v0 = vmul.f32 %v1099_v60, %v962_v13  ;;  %1186 = vst.msk [vmem:[#allocation2 + $0x18] sm:$0xff] %vm842_vm3, %v3555_v1  ;;  %v4224_v1 = vpop.permute.xlu0 %1558 }
 0x37e   : > { %v4178_v51 = vpop.f32.mrf.mxu1 }
 0x37f   : > { %v1276_v63 = vmul.f32 %v4178_v51, %v3823_v40 }
 0x381   : > { %v1308_v2 = vsel %vm1063_vm15, %v1276_v63, 0.0 }
 0x383   : > { %1300 = vadd.xlane.f32.xlu0 %v1299_v46  ;;  %v1015_v46 = vpop.f32.mrf.mxu3  ;;  %v965_v6 = vpop.f32.mrf.mxu2 }
 0x384   : > { %v1140_v8 = vmul.f32 %v1102_v7, %v965_v6  ;;  %v1346_v7 = vmul.f32 %v4133_v39, %v4178_v51 }
 0x385   : > { %1297 = vadd.xlane.f32.xlu1 %v1296_v49 }
 0x386   : > { %v4189_v22 = vpop.f32.mrf.mxu1  ;;  %v1161_v37 = vmul.f32 1.442695, %v1140_v8 }
 0x387   : > { %v1347_v12 = vmul.f32 %v4142_v4, %v4189_v22 }
 0x38b   : > { %1309 = vadd.xlane.f32.xlu0 %v1308_v2  ;;  %v1159_v2 = vmul.f32 1.442695, %v1139_v0  ;;  %v1018_v43 = vpop.f32.mrf.mxu3 }
 0x38d   : > { %3556 = vpow2.f32 %v1159_v2 }
 0x38e   : > { %v4201_v63 = vpop.f32.mrf.mxu1  ;;  %3558 = vpow2.f32 %v1161_v37 }
 0x392   : > { %1378 = vrot.lane.b32.xlu2 %v1342_v11, %s3655_s2  ;;  %v4207_v11 = vpop.permute.xlu2 %1592 }
 0x393   : > { %v3557_v9 = vpop.eup %3556  ;;  %v1021_v5 = vpop.f32.mrf.mxu3 }
 0x394   : > { %1187 = vst.msk [vmem:[#allocation2 + $0x20] sm:$0xff] %vm842_vm3, %v3557_v9 }
 0x396   : > { %v4209_v38 = vpop.f32.mrf.mxu1 }
 0x39a   : > { %1382 = vrot.lane.b32.xlu2 %v1344_v19, %s3655_s2  ;;  %v1279_v19 = vmul.f32 %v4209_v38, %v3826_v41  ;;  %v4217_v31 = vpop.permute.xlu2 %1691 }
 0x39c   : > { %v1317_v16 = vsel %vm1063_vm15, %v1279_v19, 0.0  ;;  %v4237_v19 = vpop.permute.xlu0 %1658 }
 0x39e   : > { %1380 = vrot.lane.b32.xlu1 %v1343_v26, %s3655_s2  ;;  %v3559_v26 = vpop.eup %3558  ;;  %v4226_v6 = vpop.f32.mrf.mxu1 }
 0x39f   : > { %1388 = vrot.lane.b32.xlu0 %v1347_v12, %s3655_s2  ;;  %1188 = vst.msk [vmem:[#allocation2 + $0x28] sm:$0xff] %vm842_vm3, %v3559_v26  ;;  %v968_v12 = vpop.f32.mrf.mxu2  ;;  %v1350_v8 = vmul.f32 %v4133_v39, %v4226_v6 }
 0x3a2   : > { %v4222_v60 = vpop.permute.xlu2 %1370 }
 0x3a6   : > { %1384 = vrot.lane.b32.xlu1 %v1345_v28, %s3655_s2  ;;  %v1105_v28 = vpop.f32.mrf.mxu0 }
 0x3a7   : > { %v971_v13 = vpop.f32.mrf.mxu2 }
 0x3aa   : > { %v4234_v37 = vpop.permute.xlu2 %1372 }
 0x3b5   : > { %v1286_v47 = vpop.xlane.xlu1 %1285 }
 0x3b6   : > { %v1466_v49 = vmul.f32 %v1286_v47, %v1015_v46  ;;  %v1141_v46 = vmul.f32 %v1105_v28, %v968_v12  ;;  %v1348_v12 = vmul.f32 %v4133_v39, %v4201_v63 }
 0x3b8   : > { %1482 = vst.msk [vmem:[#allocation3] sm:$0xff] %vm842_vm3, %v1466_v49  ;;  %v1163_v47 = vmul.f32 1.442695, %v1141_v46  ;;  %v1108_v49 = vpop.f32.mrf.mxu0 }
 0x3b9   : > { %v1142_v0 = vmul.f32 %v1108_v49, %v971_v13 }
 0x3ba   : > { %3560 = vpow2.f32 %v1163_v47 }
 0x3bb   : > { %v1165_v2 = vmul.f32 1.442695, %v1142_v0 }
 0x3bd   : > { %3562 = vpow2.f32 %v1165_v2 }
 0x3c0   : > { %v3561_v24 = vpop.eup %3560 }
 0x3c1   : > { %1189 = vst.msk [vmem:[#allocation2 + $0x30] sm:$0xff] %vm842_vm3, %v3561_v24 }
 0x3c3   : > { %1303 = vadd.xlane.f32.xlu2 %v1302_v21  ;;  %v3563_v9 = vpop.eup %3562  ;;  %v1024_v21 = vpop.f32.mrf.mxu3 }
 0x3c4   : > { %1190 = vst.msk [vmem:[#allocation2 + $0x38] sm:$0xff] %vm842_vm3, %v3563_v9  ;;  %v4240_v26 = vpop.permute.xlu0 %1374  ;;  %v974_v9 = vpop.f32.mrf.mxu2 }
 0x3c9   : > { %1318 = vadd.xlane.f32.xlu0 %v1317_v16 }
 0x3cb   : > { %v1027_v28 = vpop.f32.mrf.mxu3 }
 0x3cd   : > { %v4246_v13 = vpop.permute.xlu1 %1376 }
 0x3d0   : > { %1306 = vadd.xlane.f32.xlu1 %v1305_v45 }
 0x3d3   : > { %v1030_v49 = vpop.f32.mrf.mxu3 }
 0x3db   : > { %1386 = vrot.lane.b32.xlu2 %v1346_v7, %s3655_s2 }
 0x3dd   : > { %1394 = vrot.lane.b32.xlu0 %v1350_v8, %s3655_s2  ;;  %v1033_v8 = vpop.f32.mrf.mxu3 }
 0x3e5   : > { %v1289_v16 = vpop.xlane.xlu2 %1288 }
 0x3e6   : > { %v1467_v51 = vmul.f32 %v1289_v16, %v1018_v43  ;;  %v4250_v43 = vpop.f32.mrf.mxu1  ;;  %v1277_v16 = vmul.f32 %v4189_v22, %v3826_v41 }
 0x3e8   : > { %1483 = vst.msk [vmem:[#allocation3 + $0x8] sm:$0xff] %vm842_vm3, %v1467_v51 }
 0x3e9   : > { %1390 = vrot.lane.b32.xlu1 %v1348_v12, %s3655_s2 }
 0x3ed   : > { %v1295_v33 = vpop.xlane.xlu2 %1294 }
 0x3ee   : > { %v1469_v45 = vmul.f32 %v1295_v33, %v1024_v21  ;;  %v1292_v46 = vpop.xlane.xlu0 %1291  ;;  %v4256_v51 = vpop.f32.mrf.mxu1 }
 0x3ef   : > { %v1468_v47 = vmul.f32 %v1292_v46, %v1021_v5  ;;  %v1111_v5 = vpop.f32.mrf.mxu0  ;;  %v1282_v12 = vmul.f32 %v4256_v51, %v3823_v40  ;;  %v1036_v46 = vpop.f32.mrf.mxu3 }
 0x3f0   : > { %1485 = vst.msk [vmem:[#allocation3 + $0x18] sm:$0xff] %vm842_vm3, %v1469_v45  ;;  %v1143_v21 = vmul.f32 %v1111_v5, %v974_v9  ;;  %v1311_v45 = vsel %vm1063_vm15, %v1277_v16, 0.0  ;;  %v1278_v16 = vmul.f32 %v4201_v63, %v3823_v40  ;;  %v1349_v63 = vmul.f32 %v4142_v4, %v4209_v38 }
 0x3f1   : > { %1484 = vst.msk [vmem:[#allocation3 + $0x10] sm:$0xff] %vm842_vm3, %v1468_v47  ;;  %v977_v47 = vpop.f32.mrf.mxu2 }
 0x3f2   : > { %v1167_v33 = vmul.f32 1.442695, %v1143_v21 }
 0x3f4   : > { %3564 = vpow2.f32 %v1167_v33 }
 0x3f6   : > { %v1301_v0 = vpop.xlane.xlu0 %1300 }
 0x3f7   : > { %v1471_v2 = vmul.f32 %v1301_v0, %v1030_v49  ;;  %v1114_v49 = vpop.f32.mrf.mxu0 }
 0x3f8   : > { %v1298_v24 = vpop.xlane.xlu1 %1297  ;;  %v1144_v0 = vmul.f32 %v1114_v49, %v977_v47  ;;  %v4268_v47 = vpop.f32.mrf.mxu1 }
 0x3f9   : > { %1487 = vst.msk [vmem:[#allocation3 + $0x28] sm:$0xff] %vm842_vm3, %v1471_v2  ;;  %v1470_v7 = vmul.f32 %v1298_v24, %v1027_v28  ;;  %v1326_v28 = vsel %vm1063_vm15, %v1282_v12, 0.0  ;;  %v980_v9 = vpop.f32.mrf.mxu2 }
 0x3fa   : > { %v3565_v2 = vpop.eup %3564  ;;  %v1169_v24 = vmul.f32 1.442695, %v1144_v0  ;;  %v1353_v0 = vmul.f32 %v4142_v4, %v4268_v47 }
 0x3fb   : > { %1486 = vst.msk [vmem:[#allocation3 + $0x20] sm:$0xff] %vm842_vm3, %v1470_v7  ;;  %v1039_v7 = vpop.f32.mrf.mxu3 }
 0x3fc   : > { %1191 = vst.msk [vmem:[#allocation2 + $0x40] sm:$0xff] %vm842_vm3, %v3565_v2  ;;  %3566 = vpow2.f32 %v1169_v24  ;;  %v1379_v2 = vpop.permute.xlu2 %1378  ;;  %v1351_v24 = vmul.f32 %v4142_v4, %v4250_v43 }
 0x3fe   : > { %v1310_v22 = vpop.xlane.xlu0 %1309 }
 0x3ff   : > { %v1474_v5 = vmul.f32 %v1310_v22, %v1039_v7  ;;  %v1117_v21 = vpop.f32.mrf.mxu0 }
 0x400   : > { %v1145_v33 = vmul.f32 %v1117_v21, %v980_v9 }
 0x401   : > { %1490 = vst.msk [vmem:[#allocation3 + $0x40] sm:$0xff] %vm842_vm3, %v1474_v5  ;;  %v983_v38 = vpop.f32.mrf.mxu2 }
 0x402   : > { %v3567_v12 = vpop.eup %3566 }
 0x403   : > { %1192 = vst.msk [vmem:[#allocation2 + $0x48] sm:$0xff] %vm842_vm3, %v3567_v12  ;;  %v1280_v12 = vmul.f32 %v4226_v6, %v3823_v40 }
 0x404   : > { %1312 = vadd.xlane.f32.xlu2 %v1311_v45  ;;  %v1171_v45 = vmul.f32 1.442695, %v1145_v33  ;;  %v1383_v22 = vpop.permute.xlu2 %1382 }
 0x406   : > { %3568 = vpow2.f32 %v1171_v45 }
 0x407   : > { %1327 = vadd.xlane.f32.xlu0 %v1326_v28  ;;  %v1314_v28 = vsel %vm1063_vm15, %v1278_v16, 0.0  ;;  %v1042_v16 = vpop.f32.mrf.mxu3  ;;  %v1120_v33 = vpop.f32.mrf.mxu0 }
 0x408   : > { %v1146_v45 = vmul.f32 %v1120_v33, %v983_v38 }
 0x40c   : > { %v3569_v49 = vpop.eup %3568 }
 0x40d   : > { %1193 = vst.msk [vmem:[#allocation2 + $0x50] sm:$0xff] %vm842_vm3, %v3569_v49 }
 0x40f   : > { %v1123_v35 = vpop.f32.mrf.mxu0 }
 0x410   : > { %v4280_v7 = vpop.permute.xlu1 %1380 }
 0x413   : > { %1315 = vadd.xlane.f32.xlu1 %v1314_v28  ;;  %v1173_v28 = vmul.f32 1.442695, %v1146_v45 }
 0x415   : > { %3570 = vpow2.f32 %v1173_v28 }
 0x417   : > { %v1126_v28 = vpop.f32.mrf.mxu0 }
 0x418   : > { %v1385_v21 = vpop.permute.xlu1 %1384 }
 0x41b   : > { %1400 = vrot.lane.b32.xlu0 %v1353_v0, %s3655_s2  ;;  %v3571_v6 = vpop.eup %3570 }
 0x41c   : > { %1392 = vrot.lane.b32.xlu2 %v1349_v63, %s3655_s2  ;;  %v1320_v63 = vsel %vm1063_vm15, %v1280_v12, 0.0  ;;  %1194 = vst.msk [vmem:[#allocation2 + $0x58] sm:$0xff] %vm842_vm3, %v3571_v6 }
 0x42c   : > { %1396 = vrot.lane.b32.xlu1 %v1351_v24, %s3655_s2  ;;  %v1421_v24 = vsel %vm1063_vm15, %v4234_v37, 0.0 }
 0x436   : > { %v1304_v9 = vpop.xlane.xlu2 %1303 }
 0x437   : > { %v1472_v5 = vmul.f32 %v1304_v9, %v1033_v8  ;;  %v1389_v8 = vpop.permute.xlu0 %1388  ;;  %v1045_v9 = vpop.f32.mrf.mxu3 }
 0x439   : > { %1488 = vst.msk [vmem:[#allocation3 + $0x30] sm:$0xff] %vm842_vm3, %v1472_v5  ;;  %v986_v5 = vpop.f32.mrf.mxu2 }
 0x43a   : > { %v1147_v4 = vmul.f32 %v1123_v35, %v986_v5  ;;  %v1352_v5 = vmul.f32 %v4133_v39, %v4256_v51 }
 0x43c   : > { %v1175_v38 = vmul.f32 1.442695, %v1147_v4 }
 0x43e   : > { %3572 = vpow2.f32 %v1175_v38  ;;  %v1427_v38 = vsel %vm1063_vm15, %v4246_v13, 0.0  ;;  %v1387_v51 = vpop.permute.xlu2 %1386  ;;  %v1283_v13 = vmul.f32 %v4268_v47, %v3826_v41  ;;  %v1424_v47 = vsel %vm1063_vm15, %v4240_v26, 0.0 }
 0x43f   : > { %v1319_v33 = vpop.xlane.xlu0 %1318  ;;  %v1048_v37 = vpop.f32.mrf.mxu3 }
 0x440   : > { %v1477_v12 = vmul.f32 %v1319_v33, %v1048_v37  ;;  %v1445_v33 = vsel %vm1063_vm15, %v1389_v8, 0.0 }
 0x441   : > { %v989_v45 = vpop.f32.mrf.mxu2 }
 0x442   : > { %1493 = vst.msk [vmem:[#allocation3 + $0x58] sm:$0xff] %vm842_vm3, %v1477_v12 }
 0x443   : > { %v1307_v49 = vpop.xlane.xlu1 %1306 }
 0x444   : > { %v1473_v0 = vmul.f32 %v1307_v49, %v1036_v46  ;;  %v1430_v46 = vsel %vm1063_vm15, %v1379_v2, 0.0  ;;  %v1281_v49 = vmul.f32 %v4250_v43, %v3826_v41  ;;  %v3573_v35 = vpop.eup %3572 }
 0x445   : > { %1321 = vadd.xlane.f32.xlu2 %v1320_v63  ;;  %1422 = vadd.xlane.f32.xlu0 %v1421_v24  ;;  %1195 = vst.msk [vmem:[#allocation2 + $0x60] sm:$0xff] %vm842_vm3, %v3573_v35  ;;  %v1439_v63 = vsel %vm1063_vm15, %v1385_v21, 0.0  ;;  %v1418_v21 = vsel %vm1063_vm15, %v4222_v60, 0.0 }
 0x446   : > { %1489 = vst.msk [vmem:[#allocation3 + $0x38] sm:$0xff] %vm842_vm3, %v1473_v0  ;;  %v1148_v0 = vmul.f32 %v1126_v28, %v989_v45  ;;  %v1323_v2 = vsel %vm1063_vm15, %v1281_v49, 0.0 }
 0x447   : > { %v1051_v37 = vpop.f32.mrf.mxu3 }
 0x448   : > { %v1177_v4 = vmul.f32 1.442695, %v1148_v0 }
 0x44a   : > { %3574 = vpow2.f32 %v1177_v4 }
 0x44d   : > { %1431 = vadd.xlane.f32.xlu0 %v1430_v46  ;;  %v1436_v46 = vsel %vm1063_vm15, %v1383_v22, 0.0  ;;  %v1329_v22 = vsel %vm1063_vm15, %v1283_v13, 0.0 }
 0x44f   : > { %v1395_v28 = vpop.permute.xlu0 %1394  ;;  %v1054_v49 = vpop.f32.mrf.mxu3 }
 0x450   : > { %v3575_v24 = vpop.eup %3574  ;;  %v1454_v60 = vsel %vm1063_vm15, %v1395_v28, 0.0 }
 0x451   : > { %1196 = vst.msk [vmem:[#allocation2 + $0x68] sm:$0xff] %vm842_vm3, %v3575_v24 }
 0x455   : > { %1440 = vadd.xlane.f32.xlu0 %v1439_v63  ;;  %v992_v63 = vpop.f32.mrf.mxu2 }
 0x456   : > { %1324 = vadd.xlane.f32.xlu1 %v1323_v2  ;;  %v1129_v2 = vpop.f32.mrf.mxu0 }
 0x457   : > { %v1057_v4 = vpop.f32.mrf.mxu3  ;;  %v1149_v24 = vmul.f32 %v1129_v2, %v992_v63  ;;  %v1803_v2 = vld [vmem:[%s5114_s11 + $0x38] sm:$0xff] }
 0x458   : > { %1815 = vmatpush.msrb.mxu2 %v1803_v2  ;;  %v1598_v2 = vld [vmem:[#allocation2 + $0x28] sm:$0xff] }
 0x45b   : > { %v1391_v6 = vpop.permute.xlu1 %1390 }
 0x45c   : > { %v1448_v43 = vsel %vm1063_vm15, %v1391_v6, 0.0 }
 0x45d   : > { %1398 = vrot.lane.b32.xlu2 %v1352_v5, %s3655_s2  ;;  %1449 = vadd.xlane.f32.xlu0 %v1448_v43  ;;  %v1179_v5 = vmul.f32 1.442695, %v1149_v24  ;;  %v995_v28 = vpop.f32.mrf.mxu2 }
 0x45e   : > { %1419 = vadd.xlane.f32.xlu1 %v1418_v21  ;;  %v1433_v21 = vsel %vm1063_vm15, %v4280_v7, 0.0 }
 0x45f   : > { %3576 = vpow2.f32 %v1179_v5 }
 0x466   : > { %1428 = vadd.xlane.f32.xlu1 %v1427_v38  ;;  %v1442_v38 = vsel %vm1063_vm15, %v1387_v51, 0.0  ;;  %v1723_v51 = vrot.slane %v3877_v30, 5 }
 0x46e   : > { %1437 = vadd.xlane.f32.xlu1 %v1436_v46 }
 0x476   : > { %1446 = vadd.xlane.f32.xlu1 %v1445_v33 }
 0x477   : > { %v1313_v12 = vpop.xlane.xlu2 %1312 }
 0x478   : > { %v1475_v45 = vmul.f32 %v1313_v12, %v1042_v16 }
 0x47a   : > { %1491 = vst.msk [vmem:[#allocation3 + $0x48] sm:$0xff] %vm842_vm3, %v1475_v45  ;;  %v1328_v0 = vpop.xlane.xlu0 %1327  ;;  %v1132_v45 = vpop.f32.mrf.mxu0 }
 0x47b   : > { %v1480_v16 = vmul.f32 %v1328_v0, %v1057_v4  ;;  %v1150_v13 = vmul.f32 %v1132_v45, %v995_v28  ;;  %v1565_v45 = vld [vmem:[#allocation2 + $0x18] sm:$0xff] }
 0x47d   : > { %1496 = vst.msk [vmem:[#allocation3 + $0x70] sm:$0xff] %vm842_vm3, %v1480_v16  ;;  %v1181_v7 = vmul.f32 1.442695, %v1150_v13  ;;  %v1564_v13 = vld [vmem:[#allocation2 + $0x10] sm:$0xff] }
 0x47e   : > { %1455 = vadd.xlane.f32.xlu1 %v1454_v60  ;;  %v1756_v60 = vrot.slane %v3877_v30, 6 }
 0x47f   : > { %v1393_v26 = vpop.permute.xlu2 %1392  ;;  %3578 = vpow2.f32 %v1181_v7 }
 0x480   : > { %v1451_v12 = vsel %vm1063_vm15, %v1393_v26, 0.0  ;;  %v1518_v26 = vld [vmem:[#allocation3] sm:$0xff] }
 0x486   : > { %v1316_v35 = vpop.xlane.xlu1 %1315  ;;  %1330 = vadd.xlane.f32.xlu2 %v1329_v22 }
 0x487   : > { %v1476_v8 = vmul.f32 %v1316_v35, %v1045_v9  ;;  %v3577_v9 = vpop.eup %3576 }
 0x488   : > { %1197 = vst.msk [vmem:[#allocation2 + $0x70] sm:$0xff] %vm842_vm3, %v3577_v9  ;;  %v3579_v0 = vpop.eup %3578 }
 0x489   : > { %1492 = vst.msk [vmem:[#allocation3 + $0x50] sm:$0xff] %vm842_vm3, %v1476_v8 }
 0x48a   : > { %1198 = vst.msk [vmem:[#allocation2 + $0x78] sm:$0xff] %vm842_vm3, %v3579_v0 }
 0x48d   : > { %v1401_v6 = vpop.permute.xlu0 %1400 }
 0x48e   : > { %1425 = vadd.xlane.f32.xlu2 %v1424_v47  ;;  %v1463_v43 = vsel %vm1063_vm15, %v1401_v6, 0.0  ;;  %v1515_v6 = vld [vmem:[#allocation2 + $0x8] sm:$0xff]  ;;  %v1514_v47 = vld [vmem:[#allocation2] sm:$0xff] }
 0x48f   : > { %1464 = vadd.xlane.f32.xlu1 %v1463_v43  ;;  %v1517_v43 = vmul.f32 0.0, %v1515_v6 }
 0x496   : > { %1434 = vadd.xlane.f32.xlu2 %v1433_v21  ;;  %v1519_v21 = vld [vmem:[#allocation3 + $0x8] sm:$0xff] }
 0x49e   : > { %v1397_v46 = vpop.permute.xlu1 %1396  ;;  %1443 = vadd.xlane.f32.xlu2 %v1442_v38 }
 0x49f   : > { %v1457_v33 = vsel %vm1063_vm15, %v1397_v46, 0.0  ;;  %v1516_v46 = vmul.f32 0.0, %v1514_v47  ;;  %v1602_v47 = vld [vmem:[#allocation3 + $0x28] sm:$0xff] }
 0x4a0   : > { %1458 = vadd.xlane.f32.xlu0 %v1457_v33  ;;  %v1802_v33 = vld [vmem:[%s5114_s11 + $0x30] sm:$0xff] }
 0x4a1   : > { %1816 = vmatpush.msrb.mxu2 %v1802_v33  ;;  %v1520_v28 = vadd.f32 %v1518_v26, %v1516_v46 }
 0x4a6   : > { %1452 = vadd.xlane.f32.xlu2 %v1451_v12 }
 0x4a8   : > { %1757 = vrot.lane.b32.xlu1 %v1756_v60, %s3654_s28  ;;  %v1569_v60 = vld [vmem:[#allocation3 + $0x18] sm:$0xff] }
 0x4b4   : > { %1724 = vrot.lane.b32.xlu0 %v1723_v51, %s3654_s28  ;;  %v1789_v51 = vrot.slane %v3877_v30, 7  ;;  %v1597_v30 = vld [vmem:[#allocation2 + $0x20] sm:$0xff] }
 0x4b8   : > { %v1322_v22 = vpop.xlane.xlu2 %1321  ;;  %v1423_v35 = vpop.xlane.xlu0 %1422 }
 0x4b9   : > { %v1478_v8 = vmul.f32 %v1322_v22, %v1051_v37  ;;  %1499 = vst.msk [vmem:[#allocation4 + $0x8] sm:$0xff] %vm842_vm3, %v1423_v35  ;;  %v1568_v22 = vld [vmem:[#allocation3 + $0x10] sm:$0xff] }
 0x4bb   : > { %1494 = vst.msk [vmem:[#allocation3 + $0x60] sm:$0xff] %vm842_vm3, %v1478_v8 }
 0x4c0   : > { %v1399_v4 = vpop.permute.xlu2 %1398  ;;  %v1432_v63 = vpop.xlane.xlu0 %1431  ;;  %v1523_v12 = vld [vmem:[#allocation4 + $0x8] sm:$0xff] }
 0x4c1   : > { %1502 = vst.msk [vmem:[#allocation4 + $0x20] sm:$0xff] %vm842_vm3, %v1432_v63  ;;  %v1460_v16 = vsel %vm1063_vm15, %v1399_v4, 0.0 }
 0x4c2   : > { %1461 = vadd.xlane.f32.xlu2 %v1460_v16  ;;  %v1566_v16 = vmul.f32 %v1564_v13, %v1520_v28 }
 0x4c8   : > { %v1441_v24 = vpop.xlane.xlu0 %1440 }
 0x4c9   : > { %1505 = vst.msk [vmem:[#allocation4 + $0x38] sm:$0xff] %vm842_vm3, %v1441_v24  ;;  %v1325_v37 = vpop.xlane.xlu1 %1324 }
 0x4ca   : > { %v1479_v5 = vmul.f32 %v1325_v37, %v1054_v49  ;;  %v1521_v49 = vadd.f32 %v1519_v21, %v1517_v43  ;;  %v1601_v21 = vld [vmem:[#allocation3 + $0x20] sm:$0xff] }
 0x4cc   : > { %1495 = vst.msk [vmem:[#allocation3 + $0x68] sm:$0xff] %vm842_vm3, %v1479_v5  ;;  %v1525_v7 = vmul.f32 %v1523_v12, %v1521_v49  ;;  %v1567_v0 = vmul.f32 %v1565_v45, %v1521_v49  ;;  %v4350_v5 = vadd.f32 %v1568_v22, %v1566_v16  ;;  %v1631_v49 = vld [vmem:[#allocation2 + $0x38] sm:$0xff] }
 0x4cd   : > { %v4363_v22 = vld [vmem:[%s5113_s10] sm:$0x1] }
 0x4ce   : > { %v4345_v63 = vadd.f32 %v1569_v60, %v1567_v0  ;;  %v1527_v24 = vsel %vm842_vm3, %v1525_v7, 0.0  ;;  %v1635_v60 = vld [vmem:[#allocation3 + $0x38] sm:$0xff]  ;;  %v1634_v0 = vld [vmem:[#allocation3 + $0x30] sm:$0xff] }
 0x4d0   : > { %v1450_v9 = vpop.xlane.xlu0 %1449  ;;  %v1600_v43 = vmul.f32 %v1598_v2, %v4345_v63 }
 0x4d1   : > { %1508 = vst.msk [vmem:[#allocation4 + $0x50] sm:$0xff] %vm842_vm3, %v1450_v9  ;;  %v1420_v38 = vpop.xlane.xlu1 %1419 }
 0x4d2   : > { %1498 = vst.msk [vmem:[#allocation4] sm:$0xff] %vm842_vm3, %v1420_v38  ;;  %v1599_v38 = vmul.f32 %v1597_v30, %v4350_v5  ;;  %v4354_v46 = vadd.f32 %v1602_v47, %v1600_v43 }
 0x4d4   : > { %v4357_v12 = vadd.f32 %v1601_v21, %v1599_v38  ;;  %v1633_v13 = vmul.f32 %v1631_v49, %v4354_v46 }
 0x4d9   : > { %v1522_v35 = vld [vmem:[#allocation4] sm:$0xff]  ;;  %v1429_v8 = vpop.xlane.xlu1 %1428 }
 0x4da   : > { %v1524_v4 = vmul.f32 %v1522_v35, %v1520_v28  ;;  %1501 = vst.msk [vmem:[#allocation4 + $0x18] sm:$0xff] %vm842_vm3, %v1429_v8  ;;  %1790 = vrot.lane.b32.xlu2 %v1789_v51, %s3654_s28  ;;  %v1630_v28 = vld [vmem:[#allocation2 + $0x30] sm:$0xff]  ;;  %v1639_v51 = vld [vmem:[#allocation4 + $0x38] sm:$0xff]  ;;  %v1637_v8 = vadd.f32 %v1635_v60, %v1633_v13  ;;  %v1801_v13 = vld [vmem:[%s5114_s11 + $0x28] sm:$0xff] }
 0x4db   : > { %v1632_v35 = vmul.f32 %v1630_v28, %v4357_v12  ;;  %1817 = vmatpush.msrb.mxu2 %v1801_v13 }
 0x4dc   : > { %v1526_v37 = vsel %vm842_vm3, %v1524_v4, 0.0  ;;  %v1641_v2 = vmul.f32 %v1639_v51, %v1637_v8 }
 0x4dd   : > { %v1528_v6 = vadd.f32 %v1527_v24, %v1526_v37  ;;  %v1636_v16 = vadd.f32 %v1634_v0, %v1632_v35  ;;  %v3640_v37 = vld [vmem:[#allocation1] sm:$0xff] }
 0x4de   : > { %v1643_v38 = vsel %vm842_vm3, %v1641_v2, 0.0 }
 0x4df   : > { %v1529_v9 = vrot.slane %v1528_v6, 4 }
 0x4e1   : > { %v1530_v33 = vadd.f32 %v1529_v9, %v1528_v6  ;;  %v1438_v26 = vpop.xlane.xlu1 %1437  ;;  %v1535_v6 = vmul.f32 %v3640_v37, %v4363_v22 }
 0x4e2   : > { %1504 = vst.msk [vmem:[#allocation4 + $0x30] sm:$0xff] %vm842_vm3, %v1438_v26 }
 0x4e3   : > { %v1531_v45 = vrot.slane %v1530_v33, 2 }
 0x4e5   : > { %v1532_v7 = vadd.f32 %v1531_v45, %v1530_v33 }
 0x4e7   : > { %v1533_v4 = vrot.slane %v1532_v7, 1 }
 0x4e9   : > { %v1447_v24 = vpop.xlane.xlu1 %1446  ;;  %v1638_v30 = vld [vmem:[#allocation4 + $0x30] sm:$0xff]  ;;  %v1534_v47 = vadd.f32 %v1533_v4, %v1532_v7  ;;  %v1800_v7 = vld [vmem:[%s5114_s11 + $0x20] sm:$0xff]  ;;  %v1655_v4 = vmul.f32 %v3894_v54, %v4363_v22 }
 0x4ea   : > { %1507 = vst.msk [vmem:[#allocation4 + $0x48] sm:$0xff] %vm842_vm3, %v1447_v24  ;;  %v1640_v43 = vmul.f32 %v1638_v30, %v1636_v16  ;;  %1818 = vmatpush.msrb.mxu2 %v1800_v7 }
 0x4eb   : > { %v1536_v9 = vadd.f32 %v1535_v6, %v1534_v47 }
 0x4ec   : > { %v1642_v21 = vsel %vm842_vm3, %v1640_v43, 0.0  ;;  %v1573_v43 = vld [vmem:[#allocation4 + $0x18] sm:$0xff] }
 0x4ed   : > { %v1561_v33 = vmul.f32 %v4224_v1, %v1536_v9  ;;  %v1644_v26 = vadd.f32 %v1643_v38, %v1642_v21  ;;  %v1060_v1 = vpop.f32.mrf.mxu3  ;;  %v1663_v9 = vld [vmem:[#allocation2 + $0x40] sm:$0xff]  ;;  %v1664_v21 = vld [vmem:[#allocation2 + $0x48] sm:$0xff]  ;;  %v1575_v54 = vmul.f32 %v1573_v43, %v4345_v63  ;;  %v1697_v63 = vld [vmem:[#allocation2 + $0x58] sm:$0xff] }
 0x4ee   : > { %v1665_v38 = vmul.f32 %v1663_v9, %v1636_v16 }
 0x4ef   : > { %1563 = vst.msk [vmem:[#allocation5] sm:$0x1] %vm1562_vm1, %v1561_v33  ;;  %v1645_v49 = vrot.slane %v1644_v26, 4 }
 0x4f1   : > { %v1456_v45 = vpop.xlane.xlu1 %1455  ;;  %v1646_v28 = vadd.f32 %v1645_v49, %v1644_v26  ;;  %v1668_v49 = vld [vmem:[#allocation3 + $0x48] sm:$0xff] }
 0x4f2   : > { %1510 = vst.msk [vmem:[#allocation4 + $0x60] sm:$0xff] %vm842_vm3, %v1456_v45 }
 0x4f3   : > { %v1647_v60 = vrot.slane %v1646_v28, 2 }
 0x4f5   : > { %v1648_v0 = vadd.f32 %v1647_v60, %v1646_v28  ;;  %v1667_v28 = vld [vmem:[#allocation3 + $0x40] sm:$0xff]  ;;  %v1577_v60 = vsel %vm842_vm3, %v1575_v54, 0.0  ;;  %v1701_v54 = vld [vmem:[#allocation3 + $0x58] sm:$0xff] }
 0x4f6   : > { %v1669_v7 = vadd.f32 %v1667_v28, %v1665_v38  ;;  %v1729_v38 = vld [vmem:[#allocation2 + $0x60] sm:$0xff]  ;;  %v1730_v28 = vld [vmem:[#allocation2 + $0x68] sm:$0xff] }
 0x4f7   : > { %v1649_v51 = vrot.slane %v1648_v0, 1 }
 0x4f9   : > { %v1331_v35 = vpop.xlane.xlu2 %1330  ;;  %v1650_v2 = vadd.f32 %v1649_v51, %v1648_v0 }
 0x4fa   : > { %v1481_v24 = vmul.f32 %v1331_v35, %v1060_v1  ;;  %v1605_v1 = vld [vmem:[#allocation4 + $0x20] sm:$0xff]  ;;  %v1696_v35 = vld [vmem:[#allocation2 + $0x50] sm:$0xff] }
 0x4fb   : > { %v1656_v37 = vadd.f32 %v1655_v4, %v1650_v2  ;;  %v1700_v4 = vld [vmem:[#allocation3 + $0x50] sm:$0xff]  ;;  %v1607_v2 = vmul.f32 %v1605_v1, %v4357_v12 }
 0x4fc   : > { %1497 = vst.msk [vmem:[#allocation3 + $0x78] sm:$0xff] %vm842_vm3, %v1481_v24  ;;  %v1698_v24 = vmul.f32 %v1696_v35, %v1669_v7  ;;  %v1734_v35 = vld [vmem:[#allocation3 + $0x68] sm:$0xff] }
 0x4fd   : > { %v1661_v6 = vmul.f32 %v4237_v19, %v1656_v37  ;;  %v1666_v19 = vmul.f32 %v1664_v21, %v1637_v8  ;;  %v1609_v12 = vsel %vm842_vm3, %v1607_v2, 0.0 }
 0x4fe   : > { %v1702_v43 = vadd.f32 %v1700_v4, %v1698_v24 }
 0x4ff   : > { %1662 = vst.msk [vmem:[#allocation5 + $0x3] sm:$0x1] %vm1562_vm1, %v1661_v6  ;;  %v1670_v0 = vadd.f32 %v1668_v49, %v1666_v19 }
 0x501   : > { %v1426_v30 = vpop.xlane.xlu2 %1425 }
 0x502   : > { %1500 = vst.msk [vmem:[#allocation4 + $0x10] sm:$0xff] %vm842_vm3, %v1426_v30  ;;  %v1465_v47 = vpop.xlane.xlu1 %1464  ;;  %v1799_v30 = vld [vmem:[%s5114_s11 + $0x18] sm:$0xff] }
 0x503   : > { %1513 = vst.msk [vmem:[#allocation4 + $0x78] sm:$0xff] %vm842_vm3, %v1465_v47  ;;  %1819 = vmatpush.msrb.mxu2 %v1799_v30 }
 0x509   : > { %v1572_v33 = vld [vmem:[#allocation4 + $0x10] sm:$0xff]  ;;  %v1435_v26 = vpop.xlane.xlu2 %1434 }
 0x50a   : > { %v1574_v45 = vmul.f32 %v1572_v33, %v4350_v5  ;;  %1503 = vst.msk [vmem:[#allocation4 + $0x28] sm:$0xff] %vm842_vm3, %v1435_v26  ;;  %v1699_v5 = vmul.f32 %v1697_v63, %v1670_v0  ;;  %v1798_v63 = vld [vmem:[%s5114_s11 + $0x10] sm:$0xff] }
 0x50b   : > { %1820 = vmatpush.msrb.mxu2 %v1798_v63 }
 0x50c   : > { %v1576_v13 = vsel %vm842_vm3, %v1574_v45, 0.0  ;;  %v1703_v26 = vadd.f32 %v1701_v54, %v1699_v5  ;;  %v1672_v45 = vld [vmem:[#allocation4 + $0x48] sm:$0xff]  ;;  %v1589_v5 = vmul.f32 %v3890_v52, %v4363_v22 }
 0x50d   : > { %v1578_v51 = vadd.f32 %v1577_v60, %v1576_v13  ;;  %v1733_v60 = vld [vmem:[#allocation3 + $0x60] sm:$0xff]  ;;  %v1731_v13 = vmul.f32 %v1729_v38, %v1702_v43 }
 0x50e   : > { %v1732_v4 = vmul.f32 %v1730_v28, %v1703_v26 }
 0x50f   : > { %v1579_v16 = vrot.slane %v1578_v51, 4  ;;  %v4403_v2 = vadd.f32 %v1733_v60, %v1731_v13 }
 0x511   : > { %v1580_v37 = vadd.f32 %v1579_v16, %v1578_v51  ;;  %v1606_v6 = vld [vmem:[#allocation4 + $0x28] sm:$0xff]  ;;  %v1444_v8 = vpop.xlane.xlu2 %1443  ;;  %v1674_v16 = vmul.f32 %v1672_v45, %v1670_v0 }
 0x512   : > { %1506 = vst.msk [vmem:[#allocation4 + $0x40] sm:$0xff] %vm842_vm3, %v1444_v8  ;;  %v1608_v47 = vmul.f32 %v1606_v6, %v4354_v46  ;;  %v1737_v46 = vld [vmem:[#allocation4 + $0x60] sm:$0xff] }
 0x513   : > { %v1581_v9 = vrot.slane %v1580_v37, 2  ;;  %v1459_v21 = vpop.xlane.xlu0 %1458 }
 0x514   : > { %1511 = vst.msk [vmem:[#allocation4 + $0x68] sm:$0xff] %vm842_vm3, %v1459_v21  ;;  %v1610_v33 = vsel %vm842_vm3, %v1608_v47, 0.0  ;;  %v4408_v47 = vadd.f32 %v1734_v35, %v1732_v4 }
 0x515   : > { %v1582_v49 = vadd.f32 %v1581_v9, %v1580_v37  ;;  %v1611_v19 = vadd.f32 %v1610_v33, %v1609_v12  ;;  %v1739_v9 = vmul.f32 %v1737_v46, %v4403_v2  ;;  %v1676_v12 = vsel %vm842_vm3, %v1674_v16, 0.0 }
 0x517   : > { %v1583_v1 = vrot.slane %v1582_v49, 1  ;;  %v1612_v51 = vrot.slane %v1611_v19, 4 }
 0x519   : > { %v1453_v24 = vpop.xlane.xlu2 %1452  ;;  %v1584_v37 = vadd.f32 %v1583_v1, %v1582_v49  ;;  %v1613_v6 = vadd.f32 %v1612_v51, %v1611_v19  ;;  %v1671_v8 = vld [vmem:[#allocation4 + $0x40] sm:$0xff]  ;;  %v1704_v19 = vld [vmem:[#allocation4 + $0x50] sm:$0xff]  ;;  %v1622_v51 = vmul.f32 %v3892_v53, %v4363_v22 }
 0x51a   : > { %1509 = vst.msk [vmem:[#allocation4 + $0x58] sm:$0xff] %vm842_vm3, %v1453_v24  ;;  %v1673_v30 = vmul.f32 %v1671_v8, %v1669_v7  ;;  %v1741_v7 = vsel %vm842_vm3, %v1739_v9, 0.0  ;;  %v1706_v1 = vmul.f32 %v1704_v19, %v1702_v43 }
 0x51b   : > { %v1590_v21 = vadd.f32 %v1589_v5, %v1584_v37  ;;  %v1614_v0 = vrot.slane %v1613_v6, 2  ;;  %v1738_v54 = vld [vmem:[#allocation4 + $0x68] sm:$0xff] }
 0x51c   : > { %v1675_v38 = vsel %vm842_vm3, %v1673_v30, 0.0  ;;  %v1740_v33 = vmul.f32 %v1738_v54, %v4408_v47 }
 0x51d   : > { %v1595_v52 = vmul.f32 %v4207_v11, %v1590_v21  ;;  %v1615_v49 = vadd.f32 %v1614_v0, %v1613_v6  ;;  %v1677_v45 = vadd.f32 %v1676_v12, %v1675_v38  ;;  %v1708_v6 = vsel %vm842_vm3, %v1706_v1, 0.0 }
 0x51e   : > { %v1742_v28 = vsel %vm842_vm3, %v1740_v33, 0.0 }
 0x51f   : > { %1596 = vst.msk [vmem:[#allocation5 + $0x1] sm:$0x1] %vm1562_vm1, %v1595_v52  ;;  %v1616_v60 = vrot.slane %v1615_v49, 1  ;;  %v1678_v13 = vrot.slane %v1677_v45, 4  ;;  %v1743_v46 = vadd.f32 %v1742_v28, %v1741_v7  ;;  %v1754_v52 = vmul.f32 %v3900_v58, %v4363_v22  ;;  %v1797_v58 = vld [vmem:[%s5114_s11 + $0x8] sm:$0xff] }
 0x520   : > { %1821 = vmatpush.msrb.mxu2 %v1797_v58 }
 0x521   : > { %v1617_v35 = vadd.f32 %v1616_v60, %v1615_v49  ;;  %v1679_v63 = vadd.f32 %v1678_v13, %v1677_v45  ;;  %v1744_v16 = vrot.slane %v1743_v46, 4  ;;  %v1705_v11 = vld [vmem:[#allocation4 + $0x58] sm:$0xff]  ;;  %v1758_v60 = vpop.permute.xlu1 %1757 }
 0x522   : > { %v1707_v4 = vmul.f32 %v1705_v11, %v1703_v26  ;;  %v1688_v26 = vmul.f32 %v3896_v55, %v4363_v22  ;;  %v1721_v55 = vmul.f32 %v3898_v56, %v4363_v22  ;;  %v1762_v11 = vld [vmem:[#allocation2 + $0x70] sm:$0xff]  ;;  %v1767_v56 = vld [vmem:[#allocation3 + $0x78] sm:$0xff] }
 0x523   : > { %v1623_v24 = vadd.f32 %v1622_v51, %v1617_v35  ;;  %v1680_v5 = vrot.slane %v1679_v63, 2  ;;  %v1745_v37 = vadd.f32 %v1744_v16, %v1743_v46 }
 0x524   : > { %v1709_v8 = vsel %vm842_vm3, %v1707_v4, 0.0  ;;  %v1763_v4 = vld [vmem:[#allocation2 + $0x78] sm:$0xff] }
 0x525   : > { %v1628_v30 = vmul.f32 %v3949_v18, %v1623_v24  ;;  %v1681_v9 = vadd.f32 %v1680_v5, %v1679_v63  ;;  %v1746_v21 = vrot.slane %v1745_v37, 2  ;;  %v1710_v43 = vadd.f32 %v1709_v8, %v1708_v6  ;;  %v1766_v8 = vld [vmem:[#allocation3 + $0x70] sm:$0xff] }
 0x526   : > { %v1725_v35 = vpop.permute.xlu0 %1724  ;;  %v1764_v24 = vmul.f32 %v1762_v11, %v4403_v2  ;;  %v1765_v5 = vmul.f32 %v1763_v4, %v4408_v47  ;;  %v1943_v11 = vld [vmem:[%s5119_s16 + $0x68] sm:$0xff] }
 0x527   : > { %1629 = vst.msk [vmem:[#allocation5 + $0x2] sm:$0x1] %vm1562_vm1, %v1628_v30  ;;  %v1682_v53 = vrot.slane %v1681_v9, 1  ;;  %v1747_v0 = vadd.f32 %v1746_v21, %v1745_v37  ;;  %v1711_v54 = vrot.slane %v1710_v43, 4  ;;  %v1771_v37 = vld [vmem:[#allocation4 + $0x78] sm:$0xff] }
 0x528   : > { %v1769_v6 = vadd.f32 %v1767_v56, %v1765_v5  ;;  %v1768_v30 = vadd.f32 %v1766_v8, %v1764_v24  ;;  %v1942_v24 = vld [vmem:[%s5119_s16 + $0x60] sm:$0xff]  ;;  %v1939_v8 = vld [vmem:[%s5119_s16 + $0x48] sm:$0xff] }
 0x529   : > { %v1683_v38 = vadd.f32 %v1682_v53, %v1681_v9  ;;  %v1748_v12 = vrot.slane %v1747_v0, 1  ;;  %v1712_v33 = vadd.f32 %v1711_v54, %v1710_v43 }
 0x52a   : > { %v1773_v9 = vmul.f32 %v1771_v37, %v1769_v6  ;;  %v1941_v37 = vld [vmem:[%s5119_s16 + $0x58] sm:$0xff]  ;;  %v1940_v6 = vld [vmem:[%s5119_s16 + $0x50] sm:$0xff] }
 0x52b   : > { %v1689_v49 = vadd.f32 %v1688_v26, %v1683_v38  ;;  %v1749_v45 = vadd.f32 %v1748_v12, %v1747_v0  ;;  %v1713_v18 = vrot.slane %v1712_v33, 2 }
 0x52c   : > { %v1775_v0 = vsel %vm842_vm3, %v1773_v9, 0.0 }
 0x52d   : > { %v1694_v19 = vmul.f32 %v4217_v31, %v1689_v49  ;;  %v1755_v7 = vadd.f32 %v1754_v52, %v1749_v45  ;;  %v1714_v28 = vadd.f32 %v1713_v18, %v1712_v33  ;;  %v1796_v31 = vld [vmem:[%s5114_s11] sm:$0xff] }
 0x52e   : > { %1822 = vmatpush.msrb.mxu2 %v1796_v31  ;;  %v1785_v52 = vld [vmem:[#allocation1 + $0x7] ss:$9 sm:$0xff] }
 0x52f   : > { %1695 = vst.msk [vmem:[#allocation5 + $0x4] sm:$0x1] %vm1562_vm1, %v1694_v19  ;;  %v1760_v13 = vmul.f32 %v1758_v60, %v1755_v7  ;;  %v1715_v46 = vrot.slane %v1714_v28, 1  ;;  %v1787_v47 = vmul.f32 %v1785_v52, %v4363_v22  ;;  %v1861_v22 = vld [vmem:[%s5117_s14 + $0x10] sm:$0xff]  ;;  %v3519_v52 = vld [vmem:[%s5116_s13] ss:$0 sm:$0xff] }
 0x531   : > { %1761 = vst.msk [vmem:[#allocation5 + $0x6] sm:$0x1] %vm1562_vm1, %v1760_v13  ;;  %v1716_v1 = vadd.f32 %v1715_v46, %v1714_v28  ;;  %v1862_v46 = vld [vmem:[%s5117_s14 + $0x18] sm:$0xff] }
 0x532   : > { %1882 = vmatpush.msrb.mxu3 %v1862_v46  ;;  %v1935_v46 = vld [vmem:[%s5119_s16 + $0x28] sm:$0xff] }
 0x533   : > { %v1722_v51 = vadd.f32 %v1721_v55, %v1716_v1  ;;  %v1860_v55 = vld [vmem:[%s5117_s14 + $0x8] sm:$0xff] }
 0x534   : > { %1883 = vmatpush.msrb.mxu3 %v1861_v22 }
 0x535   : > { %v1727_v63 = vmul.f32 %v1725_v35, %v1722_v51  ;;  %v1462_v16 = vpop.xlane.xlu2 %1461  ;;  %v1859_v35 = vld [vmem:[%s5117_s14] sm:$0xff] }
 0x536   : > { %1512 = vst.msk [vmem:[#allocation4 + $0x70] sm:$0xff] %vm842_vm3, %v1462_v16  ;;  %1884 = vmatpush.msrb.mxu3 %v1860_v55  ;;  %v1944_v16 = vld [vmem:[%s5119_s16 + $0x70] sm:$0xff]  ;;  %v1934_v55 = vld [vmem:[%s5119_s16 + $0x20] sm:$0xff] }
 0x537   : > { %1728 = vst.msk [vmem:[#allocation5 + $0x5] sm:$0x1] %vm1562_vm1, %v1727_v63  ;;  %v1945_v63 = vld [vmem:[%s5119_s16 + $0x78] sm:$0xff] }
 0x538   : > { %1885 = vmatpush.msrb.mxu3 %v1859_v35  ;;  %1950 = vmatpush.msra.mxu0 %v1945_v63 }
 0x53a   : > { %1951 = vmatpush.msra.mxu0 %v1944_v16  ;;  %v1931_v16 = vld [vmem:[%s5119_s16 + $0x8] sm:$0xff] }
 0x53c   : > { %1952 = vmatpush.msra.mxu0 %v1943_v11  ;;  %v1930_v11 = vld [vmem:[%s5119_s16] sm:$0xff] }
 0x53d   : > { %v1770_v21 = vld [vmem:[#allocation4 + $0x70] sm:$0xff]  ;;  %v1791_v18 = vpop.permute.xlu2 %1790 }
 0x53e   : > { %v1772_v43 = vmul.f32 %v1770_v21, %v1768_v30  ;;  %1953 = vmatpush.msra.mxu0 %v1942_v24  ;;  %v1938_v30 = vld [vmem:[%s5119_s16 + $0x40] sm:$0xff]  ;;  %v1937_v21 = vld [vmem:[%s5119_s16 + $0x38] sm:$0xff] }
 0x540   : > { %v1774_v53 = vsel %vm842_vm3, %v1772_v43, 0.0  ;;  %1954 = vmatpush.msra.mxu0 %v1941_v37 }
 0x541   : > { %v1776_v54 = vadd.f32 %v1775_v0, %v1774_v53 }
 0x542   : > { %1955 = vmatpush.msra.mxu0 %v1940_v6 }
 0x543   : > { %v1777_v26 = vrot.slane %v1776_v54, 4 }
 0x544   : > { %1956 = vmatpush.msra.mxu0 %v1939_v8 }
 0x545   : > { %v1778_v38 = vadd.f32 %v1777_v26, %v1776_v54 }
 0x546   : > { %1957 = vmatpush.msra.mxu0 %v1938_v30 }
 0x547   : > { %v1779_v12 = vrot.slane %v1778_v38, 2 }
 0x548   : > { %1958 = vmatpush.msra.mxu0 %v1937_v21 }
 0x549   : > { %v1780_v33 = vadd.f32 %v1779_v12, %v1778_v38  ;;  %v3518_v38 = vld [vmem:[%s5115_s12] ss:$0 sm:$0xff] }
 0x54b   : > { %v1781_v2 = vrot.slane %v1780_v33, 1 }
 0x54d   : > { %v1782_v49 = vadd.f32 %v1781_v2, %v1780_v33 }
 0x54f   : > { %v1788_v45 = vadd.f32 %v1787_v47, %v1782_v49  ;;  %v3520_v49 = vld [vmem:[%s5118_s15] ss:$0 sm:$0xff] }
 0x551   : > { %v1793_v19 = vmul.f32 %v1791_v18, %v1788_v45 }
 0x553   : > { %1794 = vst.msk [vmem:[#allocation5 + $0x7] sm:$0x1] %vm1562_vm1, %v1793_v19 }
 0x55a   : > { %v1795_v7 = vld [vmem:[#allocation5] sm:$0xff] }
 0x55b   : > { %3367 = vmatmul.msk.f32.vlgmr.msrb.gmra.mxu2 %vm842_vm3, %v1795_v7 }
 0x5de   : > { %v1824_v28 = vpop.f32.mrf.mxu2 }
 0x5df   : > { %v1825_v60 = vadd.f32 %v1824_v28, %v3805_v34 }
 0x5e1   : > { %v1829_v13 = vsel %vm630_vm0, %v1825_v60, 0.0 }
 0x5e2   : > { %1830 = vadd.xlane.f32.xlu0 %v1829_v13  ;;  %v1936_v13 = vld [vmem:[%s5119_s16 + $0x30] sm:$0xff] }
 0x5e3   : > { %1959 = vmatpush.msra.mxu0 %v1936_v13  ;;  %v3521_v13 = vld [vmem:[%s5120_s17] ss:$0 sm:$0xff] }
 0x5e5   : > { %1960 = vmatpush.msra.mxu0 %v1935_v46 }
 0x5e7   : > { %1961 = vmatpush.msra.mxu0 %v1934_v55 }
 0x655   : > { %v1831_v1 = vpop.xlane.xlu0 %1830 }
 0x656   : > { %v1832_v34 = vmul.f32 %v1831_v1, %v3782_v10 }
 0x658   : > { %v1833_v51 = vsub.f32 %v1825_v60, %v1832_v34  ;;  %v1933_v34 = vld [vmem:[%s5119_s16 + $0x18] sm:$0xff] }
 0x659   : > { %1962 = vmatpush.msra.mxu0 %v1933_v34 }
 0x65a   : > { %v1834_v58 = vmul.f32 %v1833_v51, %v1833_v51 }
 0x65c   : > { %v1835_v31 = vsel %vm630_vm0, %v1834_v58, 0.0 }
 0x65d   : > { %1836 = vadd.xlane.f32.xlu1 %v1835_v31  ;;  %v1932_v31 = vld [vmem:[%s5119_s16 + $0x10] sm:$0xff] }
 0x65e   : > { %1963 = vmatpush.msra.mxu0 %v1932_v31  ;;  %v3372_v31 = vld [vmem:[%s5135_s30 + $0x38] sm:$0xff] }
 0x65f   : > { %2023 = vmatpush.msra.mxu2 %v3372_v31  ;;  %v3380_v31 = vld [vmem:[%s5110_s7 + $0x58] sm:$0xff] }
 0x660   : > { %1964 = vmatpush.msra.mxu0 %v1931_v16 }
 0x662   : > { %1965 = vmatpush.msra.mxu0 %v1930_v11 }
 0x6d0   : > { %v1837_v4 = vpop.xlane.xlu1 %1836 }
 0x6d1   : > { %v1838_v56 = vmul.f32 %v1837_v4, %v3782_v10 }
 0x6d3   : > { %v1839_v5 = vadd.f32 1e-12, %v1838_v56 }
 0x6d5   : > { %3580 = vrsqrt.f32 %v1839_v5  ;;  %vm1846_vm4 = vweird.f32 %v1839_v5 }
 0x6db   : > { %v3581_v9 = vpop.eup %3580 }
 0x6dc   : > { %v1841_v43 = vmul.f32 %v3581_v9, %v1839_v5  ;;  %vm1847_vm2 = vweird.f32 %v3581_v9 }
 0x6dd   : > { %vm1848_vm5 = vmor %vm1846_vm4, %vm1847_vm2 }
 0x6de   : > { %v1842_v53 = vmul.f32 %v3581_v9, %v1841_v43 }
 0x6e0   : > { %v1843_v0 = vmul.f32 0.5, %v1842_v53 }
 0x6e2   : > { %v1844_v54 = vsub.f32 1.5, %v1843_v0 }
 0x6e4   : > { %v1845_v26 = vmul.f32 %v3581_v9, %v1844_v54 }
 0x6e6   : > { %v1849_v12 = vsel %vm1848_vm5, %v3581_v9, %v1845_v26 }
 0x6e7   : > { %v1850_v33 = vmul.f32 %v1849_v12, %v1833_v51 }
 0x6e9   : > { %v1854_v2 = vmul.f32 %v3518_v38, %v1850_v33 }
 0x6eb   : > { %v4498_v47 = vadd.f32 %v3519_v52, %v1854_v2  ;;  %v3656_v2 = vmov -1.0  }
 0x6ed   : > { %3368 = vmatmul.msk.f32.vlgmr.msrb.gmra.mxu3 %vm630_vm0, %v4498_v47 }
 0x770   : > { %v1887_v45 = vpop.f32.mrf.mxu3 }
 0x771   : > { %v1888_v18 = vadd.f32 %v3520_v49, %v1887_v45 }
 0x773   : > { %v1891_v19 = vmul.f32 0.70710677, %v1888_v18 }
 0x775   : > { %v1894_v7 = vand.u32 2147483647, %v1891_v19  ;;  %vm1892_vm11 = vcmp.ge.f32.partialorder %v1891_v19, 0.0 }
 0x776   : > { %v1893_v49 = vsel %vm1892_vm11, 1.0, %v3656_v2 }
 0x777   : > { %v1895_v28 = vmul.f32 0.3275911, %v1894_v7  ;;  %v1921_v37 = vsub.f32 0.0, %v1894_v7 }
 0x779   : > { %v1896_v60 = vadd.f32 1.0, %v1895_v28  ;;  %v1922_v30 = vmul.f32 %v1921_v37, %v1894_v7  ;;  %v1890_v28 = vmul.f32 0.5, %v1888_v18 }
 0x77b   : > { %3582 = vrcp.f32 %v1896_v60  ;;  %v1908_v58 = vand.u32 2147483648, %v1896_v60  ;;  %v1906_v63 = vand.u32 2147483647, %v1896_v60  ;;  %vm1902_vm8 = vweird.f32 %v1896_v60 }
 0x77c   : > { %v1923_v43 = vmul.f32 1.442695, %v1922_v30  ;;  %v3522_v30 = vld [vmem:[%s5121_s18] ss:$0 sm:$0xff] }
 0x77d   : > { %v1909_v56 = vor.u32 1.1754944e-38, %v1908_v58  ;;  %vm1907_vm10 = vcmp.eq.f32.partialorder %v1906_v63, 8.507059e+37  ;;  %v3369_v63 = vld [vmem:[%s5135_s30 + $0x20] sm:$0xff] }
 0x77e   : > { %3584 = vpow2.f32 %v1923_v43  ;;  %v3523_v43 = vld [vmem:[%s5122_s19] ss:$0 sm:$0xff] }
 0x781   : > { %v3583_v22 = vpop.eup %3582 }
 0x782   : > { %v1898_v1 = vmul.f32 %v3583_v22, %v1896_v60  ;;  %vm1903_vm6 = vweird.f32 %v3583_v22 }
 0x783   : > { %vm1904_vm9 = vmor %vm1902_vm8, %vm1903_vm6 }
 0x784   : > { %v1899_v51 = vsub.f32 1.0, %v1898_v1  ;;  %v3585_v12 = vpop.eup %3584 }
 0x786   : > { %v1900_v35 = vmul.f32 %v3583_v22, %v1899_v51 }
 0x788   : > { %v1901_v4 = vadd.f32 %v3583_v22, %v1900_v35  ;;  %v3370_v35 = vld [vmem:[%s5135_s30 + $0x28] sm:$0xff] }
 0x78a   : > { %v1905_v24 = vsel %vm1904_vm9, %v3583_v22, %v1901_v4 }
 0x78b   : > { %v1910_v5 = vsel %vm1907_vm10, %v1909_v56, %v1905_v24 }
 0x78c   : > { %v1912_v6 = vmul.f32 1.0614054, %v1910_v5 }
 0x78e   : > { %v1913_v8 = vadd.f32 -1.4531521, %v1912_v6 }
 0x790   : > { %v1914_v9 = vmul.f32 %v1913_v8, %v1910_v5 }
 0x792   : > { %v1915_v21 = vadd.f32 1.4214138, %v1914_v9 }
 0x794   : > { %v1916_v53 = vmul.f32 %v1915_v21, %v1910_v5 }
 0x796   : > { %v1917_v0 = vadd.f32 -0.28449672, %v1916_v53 }
 0x798   : > { %v1918_v54 = vmul.f32 %v1917_v0, %v1910_v5 }
 0x79a   : > { %v1919_v26 = vadd.f32 0.2548296, %v1918_v54  ;;  %v3374_v54 = vld [vmem:[%s5108_s5 + $0x4] sm:$0xf] }
 0x79c   : > { %v1920_v38 = vmul.f32 %v1919_v26, %v1910_v5  ;;  %v2033_v26 = vperm.slane %v3374_v54, 3 }
 0x79e   : > { %v1925_v33 = vmul.f32 %v3585_v12, %v1920_v38  ;;  %v3384_v38 = vld [vmem:[%s5110_s7 + $0x78] sm:$0xff]  ;;  %v2042_v12 = vperm.slane %v3374_v54, 2 }
 0x79f   : > { %2096 = vmatpush.msra.mxu3 %v3384_v38 }
 0x7a0   : > { %v1926_v52 = vsub.f32 1.0, %v1925_v33  ;;  %v2047_v33 = vperm.slane %v3374_v54, 1 }
 0x7a2   : > { %v1927_v45 = vmul.f32 %v1926_v52, %v1893_v49  ;;  %v2052_v49 = vperm.slane %v3374_v54, 0 }
 0x7a4   : > { %v1928_v60 = vadd.f32 1.0, %v1927_v45  ;;  %v3383_v45 = vld [vmem:[%s5110_s7 + $0x70] sm:$0xff] }
 0x7a5   : > { %2097 = vmatpush.msra.mxu3 %v3383_v45 }
 0x7a6   : > { %v1929_v7 = vmul.f32 %v1928_v60, %v1890_v28  ;;  %v3524_v60 = vld [vmem:[%s5109_s6 + $0x1] ss:$0 sm:$0xff] }
 0x7a8   : > { %1966 = vmatmul.f32.vlgmr.msra.gmra.mxu0 %v1929_v7 }
 0x825   : > { %v1967_v46 = vpop.f32.mrf.mxu0 }
 0x826   : > { %v1968_v22 = vadd.f32 %v3521_v13, %v1967_v46 }
 0x828   : > { %v1970_v55 = vadd.f32 %v1968_v22, %v4498_v47  ;;  %v3371_v47 = vld [vmem:[%s5135_s30 + $0x30] sm:$0xff] }
 0x829   : > { %2024 = vmatpush.msra.mxu2 %v3371_v47 }
 0x82a   : > { %v1973_v19 = vsel %vm630_vm0, %v1970_v55, 0.0 }
 0x82b   : > { %1974 = vadd.xlane.f32.xlu2 %v1973_v19  ;;  %2025 = vmatpush.msra.mxu2 %v3370_v35 }
 0x82d   : > { %2026 = vmatpush.msra.mxu2 %v3369_v63  ;;  %v3379_v63 = vld [vmem:[%s5110_s7 + $0x50] sm:$0xff] }
 0x89e   : > { %v1975_v1 = vpop.xlane.xlu2 %1974 }
 0x89f   : > { %v1976_v34 = vmul.f32 %v1975_v1, %v3782_v10 }
 0x8a1   : > { %v1977_v51 = vsub.f32 %v1970_v55, %v1976_v34  ;;  %v3382_v55 = vld [vmem:[%s5110_s7 + $0x68] sm:$0xff]  ;;  %v3381_v34 = vld [vmem:[%s5110_s7 + $0x60] sm:$0xff] }
 0x8a2   : > { %2098 = vmatpush.msra.mxu3 %v3382_v55 }
 0x8a3   : > { %v1978_v58 = vmul.f32 %v1977_v51, %v1977_v51 }
 0x8a4   : > { %2099 = vmatpush.msra.mxu3 %v3381_v34 }
 0x8a5   : > { %v1979_v18 = vsel %vm630_vm0, %v1978_v58, 0.0 }
 0x8a6   : > { %1980 = vadd.xlane.f32.xlu0 %v1979_v18  ;;  %2100 = vmatpush.msra.mxu3 %v3380_v31 }
 0x8a8   : > { %2101 = vmatpush.msra.mxu3 %v3379_v63  ;;  %v3389_v63 = vld [vmem:[%s5113_s10 + $0x1] sm:$0x1] }
 0x919   : > { %v1981_v16 = vpop.xlane.xlu0 %1980 }
 0x91a   : > { %v1982_v11 = vmul.f32 %v1981_v16, %v3782_v10 }
 0x91c   : > { %v1983_v4 = vadd.f32 1e-12, %v1982_v11 }
 0x91e   : > { %3586 = vrsqrt.f32 %v1983_v4  ;;  %vm1990_vm13 = vweird.f32 %v1983_v4 }
 0x924   : > { %v3587_v56 = vpop.eup %3586 }
 0x925   : > { %v1985_v24 = vmul.f32 %v3587_v56, %v1983_v4  ;;  %vm1991_vm12 = vweird.f32 %v3587_v56 }
 0x926   : > { %vm1992_vm14 = vmor %vm1990_vm13, %vm1991_vm12 }
 0x927   : > { %v1986_v5 = vmul.f32 %v3587_v56, %v1985_v24 }
 0x929   : > { %v1987_v37 = vmul.f32 0.5, %v1986_v5 }
 0x92b   : > { %v1988_v6 = vsub.f32 1.5, %v1987_v37 }
 0x92d   : > { %v1989_v8 = vmul.f32 %v3587_v56, %v1988_v6 }
 0x92f   : > { %v1993_v9 = vsel %vm1992_vm14, %v3587_v56, %v1989_v8 }
 0x930   : > { %v1994_v21 = vmul.f32 %v1993_v9, %v1977_v51 }
 0x932   : > { %v1998_v53 = vmul.f32 %v3522_v30, %v1994_v21 }
 0x934   : > { %v4553_v0 = vadd.f32 %v3523_v43, %v1998_v53 }
 0x936   : > { %3373 = vmatmul.msk.f32.vlgmr.msra.gmra.mxu2 %vm630_vm0, %v4553_v0 }
 0x9b9   : > { %v2028_v52 = vpop.f32.mrf.mxu2 }
 0x9ba   : > { %v2034_v28 = vmul.f32 %v2033_v26, %v2028_v52  ;;  %v2041_v7 = vrot.slane %v2028_v52, 7  ;;  %v2046_v13 = vrot.slane %v2028_v52, 6  ;;  %v2051_v46 = vrot.slane %v2028_v52, 5 }
 0x9bb   : > { %v3454_v22 = vmul.f32 -1.442695, %v2028_v52 }
 0x9bc   : > { %v2043_v19 = vmul.f32 %v2042_v12, %v2041_v7  ;;  %v2048_v1 = vmul.f32 %v2047_v33, %v2046_v13  ;;  %v2040_v51 = vadd.f32 %v3524_v60, %v2034_v28  ;;  %v2053_v18 = vmul.f32 %v2052_v49, %v2051_v46 }
 0x9bd   : > { %3588 = vpow2.f32 %v3454_v22 }
 0x9be   : > { %v2044_v58 = vmul.f32 %v2043_v19, %v3848_v57  ;;  %v2049_v35 = vmul.f32 %v2048_v1, %v3857_v62  ;;  %v2054_v11 = vmul.f32 %v2053_v18, %v3864_v3  ;;  %v3378_v57 = vld [vmem:[%s5110_s7 + $0x48] sm:$0xff]  ;;  %v3377_v62 = vld [vmem:[%s5110_s7 + $0x40] sm:$0xff] }
 0x9bf   : > { %2102 = vmatpush.msra.mxu3 %v3378_v57 }
 0x9c0   : > { %v2045_v47 = vadd.f32 %v2044_v58, %v2040_v51 }
 0x9c1   : > { %2103 = vmatpush.msra.mxu3 %v3377_v62 }
 0x9c2   : > { %v2050_v16 = vadd.f32 %v2049_v35, %v2045_v47 }
 0x9c3   : > { %v3589_v4 = vpop.eup %3588 }
 0x9c4   : > { %v2055_v56 = vadd.f32 %v2054_v11, %v2050_v16  ;;  %v2723_v24 = vadd.f32 1.0, %v3589_v4  ;;  %v3525_v4 = vld [vmem:[%s5111_s8 + $0x1] ss:$0 sm:$0xff] }
 0x9c6   : > { %v3376_v5 = vmul.f32 -1.442695, %v2055_v56  ;;  %3590 = vrcp.f32 %v2723_v24  ;;  %v2735_v9 = vand.u32 2147483648, %v2723_v24  ;;  %v2733_v43 = vand.u32 2147483647, %v2723_v24 }
 0x9c7   : > { %vm2729_vm4 = vweird.f32 %v2723_v24 }
 0x9c8   : > { %3592 = vpow2.f32 %v3376_v5  ;;  %v2736_v54 = vor.u32 1.1754944e-38, %v2735_v9  ;;  %vm2734_vm6 = vcmp.eq.f32.partialorder %v2733_v43, 8.507059e+37 }
 0x9cc   : > { %v3591_v37 = vpop.eup %3590 }
 0x9cd   : > { %v2725_v6 = vmul.f32 %v3591_v37, %v2723_v24  ;;  %vm2730_vm2 = vweird.f32 %v3591_v37 }
 0x9ce   : > { %v3593_v3 = vpop.eup %3592  ;;  %vm2731_vm5 = vmor %vm2729_vm4, %vm2730_vm2 }
 0x9cf   : > { %v2059_v8 = vadd.f32 1.0, %v3593_v3  ;;  %v2726_v30 = vsub.f32 1.0, %v2725_v6 }
 0x9d1   : > { %3594 = vrcp.f32 %v2059_v8  ;;  %v2727_v21 = vmul.f32 %v3591_v37, %v2726_v30  ;;  %v2071_v7 = vand.u32 2147483648, %v2059_v8  ;;  %v2069_v46 = vand.u32 2147483647, %v2059_v8 }
 0x9d2   : > { %vm2065_vm9 = vweird.f32 %v2059_v8 }
 0x9d3   : > { %v2728_v53 = vadd.f32 %v3591_v37, %v2727_v21  ;;  %vm2070_vm11 = vcmp.eq.f32.partialorder %v2069_v46, 8.507059e+37 }
 0x9d5   : > { %v2732_v26 = vsel %vm2731_vm5, %v3591_v37, %v2728_v53 }
 0x9d6   : > { %v2737_v12 = vsel %vm2734_vm6, %v2736_v54, %v2732_v26 }
 0x9d7   : > { %v3595_v38 = vpop.eup %3594  ;;  %v4590_v49 = vmul.f32 %v2737_v12, %v2028_v52  ;;  %v2072_v52 = vor.u32 1.1754944e-38, %v2071_v7 }
 0x9d8   : > { %v2061_v33 = vmul.f32 %v3595_v38, %v2059_v8  ;;  %vm2066_vm8 = vweird.f32 %v3595_v38 }
 0x9d9   : > { %2741 = vrot.lane.b32.xlu0 %v4590_v49, %s3654_s28  ;;  %v2806_v28 = vrot.slane %v4590_v49, 2  ;;  %v2773_v60 = vrot.slane %v4590_v49, 1  ;;  %vm2067_vm10 = vmor %vm2065_vm9, %vm2066_vm8  ;;  %v2839_v19 = vrot.slane %v4590_v49, 3  ;;  %v2872_v51 = vrot.slane %v4590_v49, 4 }
 0x9da   : > { %v2062_v45 = vsub.f32 1.0, %v2061_v33  ;;  %vm3223_vm9 = vcmask 785408  }
 0x9db   : > { %2807 = vrot.lane.b32.xlu1 %v2806_v28, %s3654_s28  ;;  %2774 = vrot.lane.b32.xlu2 %v2773_v60, %s3654_s28 }
 0x9dc   : > { %v2063_v13 = vmul.f32 %v3595_v38, %v2062_v45 }
 0x9de   : > { %v2064_v22 = vadd.f32 %v3595_v38, %v2063_v13 }
 0x9e0   : > { %v2068_v55 = vsel %vm2067_vm10, %v3595_v38, %v2064_v22  ;;  %vm3231_vm10 = vcmask 1040384  }
 0x9e1   : > { %v2073_v1 = vsel %vm2070_vm11, %v2072_v52, %v2068_v55  ;;  %2840 = vrot.lane.b32.xlu0 %v2839_v19, %s3654_s28 }
 0x9e2   : > { %v2075_v34 = vmul.f32 %v2073_v1, %v2055_v56 }
 0x9e3   : > { %2873 = vrot.lane.b32.xlu2 %v2872_v51, %s3654_s28 }
 0x9e4   : > { %2767 = vst [vmem:[#allocation1] sm:$0xff] %v2075_v34  ;;  %3385 = vmatmul.msk.f32.vlgmr.msra.gmra.mxu3 %vm842_vm3, %v2075_v34 }
 0x9eb   : > { %v4603_v58 = vld [vmem:[#allocation1 + $0x1] ss:$9 sm:$0xff] }
 0x9ec   : > { %2800 = vst [vmem:[#allocation1] sm:$0xff] %v2075_v34 }
 0x9f3   : > { %v4605_v18 = vld [vmem:[#allocation1 + $0x2] ss:$9 sm:$0xff] }
 0x9f4   : > { %2833 = vst [vmem:[#allocation1] sm:$0xff] %v2075_v34 }
 0x9fb   : > { %v4607_v31 = vld [vmem:[#allocation1 + $0x3] ss:$9 sm:$0xff] }
 0x9fc   : > { %2866 = vst [vmem:[#allocation1] sm:$0xff] %v2075_v34 }
 0xa03   : > { %v4609_v47 = vld [vmem:[#allocation1 + $0x4] ss:$9 sm:$0xff] }
 0xa04   : > { %2899 = vst [vmem:[#allocation1] sm:$0xff] %v2075_v34 }
 0xa0b   : > { %v4611_v35 = vld [vmem:[#allocation1 + $0x5] ss:$9 sm:$0xff] }
 0xa0c   : > { %2932 = vst [vmem:[#allocation1] sm:$0xff] %v2075_v34 }
 0xa13   : > { %v2934_v16 = vld [vmem:[#allocation1 + $0x6] ss:$9 sm:$0xff] }
 0xa14   : > { %v4616_v11 = vmul.f32 %v3389_v63, %v2934_v16  ;;  %2965 = vst [vmem:[#allocation1] sm:$0xff] %v2075_v34 }
 0xa4d   : > { %v4662_v43 = vpop.permute.xlu1 %2807 }
 0xa67   : > { %v2105_v57 = vpop.f32.mrf.mxu3 }
 0xa68   : > { %v2113_v56 = vadd.f32 %v3525_v4, %v2105_v57  ;;  %2389 = vrot.lane.b32.xlu1 %v2105_v57, %s3654_s28 }
 0xa6a   : > { %v2115_v24 = vand.u32 2147483647, %v2113_v56  ;;  %v2114_v8 = vmax.f32 %v2113_v56, 0.0 }
 0xa6c   : > { %v2116_v62 = vsub.f32 0.0, %v2115_v24 }
 0xa6e   : > { %v2117_v5 = vmul.f32 1.442695, %v2116_v62 }
 0xa70   : > { %3596 = vpow2.f32 %v2117_v5 }
 0xa76   : > { %v3597_v37 = vpop.eup %3596 }
 0xa77   : > { %v2119_v6 = vadd.f32 1.0, %v3597_v37 }
 0xa79   : > { %3598 = vlog2.f32 %v2119_v6 }
 0xa7f   : > { %v3599_v3 = vpop.eup %3598 }
 0xa80   : > { %v2121_v30 = vmul.f32 0.6931472, %v3599_v3 }
 0xa82   : > { %v2122_v9 = vadd.f32 %v2121_v30, %v2114_v8 }
 0xa84   : > { %2144 = vmatpush.msrb.mxu2 %v2122_v9  ;;  %v2123_v21 = vmul.f32 %v2122_v9, %v2075_v34 }
 0xa85   : > { %3390 = vmatmul.msk.f32.vlgmr.msrb.gmra.mxu2 %vm884_vm7, %v3917_v14 }
 0xa86   : > { %2209 = vmatpush.msrb.mxu0 %v2123_v21 }
 0xa87   : > { %3406 = vmatmul.msk.f32.vlgmr.msrb.gmra.mxu0 %vm884_vm7, %v3917_v14 }
 0xa8d   : > { %3391 = vmatmul.msk.f32.gmra.mxu2 %vm884_vm7, %v3929_v15 }
 0xa8f   : > { %3407 = vmatmul.msk.f32.gmra.mxu0 %vm884_vm7, %v3929_v15 }
 0xa95   : > { %3392 = vmatmul.msk.f32.gmra.mxu2 %vm884_vm7, %v3941_v17 }
 0xa97   : > { %3408 = vmatmul.msk.f32.gmra.mxu0 %vm884_vm7, %v3941_v17 }
 0xa9d   : > { %3393 = vmatmul.msk.f32.gmra.mxu2 %vm884_vm7, %v3953_v20 }
 0xa9f   : > { %3409 = vmatmul.msk.f32.gmra.mxu0 %vm884_vm7, %v3953_v20 }
 0xaa5   : > { %3394 = vmatmul.msk.f32.gmra.mxu2 %vm884_vm7, %v3965_v23 }
 0xaa7   : > { %3410 = vmatmul.msk.f32.gmra.mxu0 %vm884_vm7, %v3965_v23 }
 0xaad   : > { %3395 = vmatmul.msk.f32.gmra.mxu2 %vm884_vm7, %v3977_v25 }
 0xaaf   : > { %3411 = vmatmul.msk.f32.gmra.mxu0 %vm884_vm7, %v3977_v25 }
 0xab5   : > { %3396 = vmatmul.msk.f32.gmra.mxu2 %vm884_vm7, %v3989_v27 }
 0xab7   : > { %3412 = vmatmul.msk.f32.gmra.mxu0 %vm884_vm7, %v3989_v27 }
 0xabd   : > { %3397 = vmatmul.msk.f32.gmra.mxu2 %vm884_vm7, %v4001_v29 }
 0xabf   : > { %3413 = vmatmul.msk.f32.gmra.mxu0 %vm884_vm7, %v4001_v29 }
 0xac5   : > { %3398 = vmatmul.msk.f32.gmra.mxu2 %vm884_vm7, %v4013_v32 }
 0xac7   : > { %3414 = vmatmul.msk.f32.gmra.mxu0 %vm884_vm7, %v4013_v32 }
 0xacd   : > { %3399 = vmatmul.msk.f32.gmra.mxu2 %vm884_vm7, %v4025_v42 }
 0xacf   : > { %3415 = vmatmul.msk.f32.gmra.mxu0 %vm884_vm7, %v4025_v42 }
 0xad5   : > { %3400 = vmatmul.msk.f32.gmra.mxu2 %vm884_vm7, %v4037_v44 }
 0xad7   : > { %3416 = vmatmul.msk.f32.gmra.mxu0 %vm884_vm7, %v4037_v44 }
 0xada   : > { %v2390_v53 = vpop.permute.xlu1 %2389 }
 0xadb   : > { %2407 = vmatpush.msrb.mxu3 %v2390_v53 }
 0xadc   : > { %3438 = vmatmul.msk.f32.vlgmr.msrb.gmra.mxu3 %vm884_vm7, %v3917_v14  ;;  %v3388_v14 = vld [vmem:[%s5112_s9 + $0x18] sm:$0xff] }
 0xadd   : > { %3401 = vmatmul.msk.f32.gmra.mxu2 %vm884_vm7, %v4055_v48  ;;  %2273 = vmatpush.msra.mxu1 %v3388_v14 }
 0xadf   : > { %3417 = vmatmul.msk.f32.gmra.mxu0 %vm884_vm7, %v4055_v48 }
 0xae4   : > { %3439 = vmatmul.msk.f32.gmra.mxu3 %vm884_vm7, %v3929_v15  ;;  %v3387_v15 = vld [vmem:[%s5112_s9 + $0x10] sm:$0xff] }
 0xae5   : > { %3402 = vmatmul.msk.f32.gmra.mxu2 %vm884_vm7, %v4069_v50  ;;  %2274 = vmatpush.msra.mxu1 %v3387_v15 }
 0xae6   : > { %3422 = vmatmul.msk.f32.vlgmr.msra.gmra.mxu1 %vm1063_vm15, %v3823_v40 }
 0xae7   : > { %3418 = vmatmul.msk.f32.gmra.mxu0 %vm884_vm7, %v4069_v50 }
 0xaec   : > { %3440 = vmatmul.msk.f32.gmra.mxu3 %vm884_vm7, %v3941_v17 }
 0xaed   : > { %3403 = vmatmul.msk.f32.gmra.mxu2 %vm884_vm7, %v4083_v59 }
 0xaee   : > { %3423 = vmatmul.msk.f32.gmra.mxu1 %vm1063_vm15, %v3826_v41 }
 0xaef   : > { %3419 = vmatmul.msk.f32.gmra.mxu0 %vm884_vm7, %v4083_v59 }
 0xaf4   : > { %3441 = vmatmul.msk.f32.gmra.mxu3 %vm884_vm7, %v3953_v20 }
 0xaf5   : > { %3404 = vmatmul.msk.f32.gmra.mxu2 %vm884_vm7, %v4097_v61 }
 0xaf6   : > { %3424 = vmatmul.msk.f32.gmra.mxu1 %vm1063_vm15, %v3823_v40 }
 0xaf7   : > { %3420 = vmatmul.msk.f32.gmra.mxu0 %vm884_vm7, %v4097_v61 }
 0xafc   : > { %3442 = vmatmul.msk.f32.gmra.mxu3 %vm884_vm7, %v3965_v23 }
 0xafd   : > { %3405 = vmatmul.msk.f32.gmra.mxu2 %vm884_vm7, %v4110_v36 }
 0xafe   : > { %3425 = vmatmul.msk.f32.gmra.mxu1 %vm1063_vm15, %v3826_v41 }
 0xaff   : > { %3421 = vmatmul.msk.f32.gmra.mxu0 %vm884_vm7, %v4110_v36 }
 0xb04   : > { %3443 = vmatmul.msk.f32.gmra.mxu3 %vm884_vm7, %v3977_v25  ;;  %v2211_v14 = vpop.f32.mrf.mxu0 }
 0xb06   : > { %3426 = vmatmul.msk.f32.gmra.mxu1 %vm1063_vm15, %v3823_v40 }
 0xb08   : > { %v2146_v38 = vpop.f32.mrf.mxu2 }
 0xb0c   : > { %3444 = vmatmul.msk.f32.gmra.mxu3 %vm884_vm7, %v3989_v27  ;;  %v5139_v27 = vld [vmem:[#allocation6_spill] sm:$0xff] }
 0xb0e   : > { %3427 = vmatmul.msk.f32.gmra.mxu1 %vm1063_vm15, %v3826_v41 }
 0xb10   : > { %v2149_v13 = vpop.f32.mrf.mxu2 }
 0xb14   : > { %3445 = vmatmul.msk.f32.gmra.mxu3 %vm884_vm7, %v4001_v29 }
 0xb16   : > { %3428 = vmatmul.msk.f32.gmra.mxu1 %vm1063_vm15, %v3823_v40 }
 0xb18   : > { %v2152_v34 = vpop.f32.mrf.mxu2 }
 0xb1c   : > { %3446 = vmatmul.msk.f32.gmra.mxu3 %vm884_vm7, %v4013_v32 }
 0xb1e   : > { %3429 = vmatmul.msk.f32.gmra.mxu1 %vm1063_vm15, %v3826_v41 }
 0xb20   : > { %v2155_v57 = vpop.f32.mrf.mxu2 }
 0xb24   : > { %3447 = vmatmul.msk.f32.gmra.mxu3 %vm884_vm7, %v4025_v42 }
 0xb26   : > { %3430 = vmatmul.msk.f32.gmra.mxu1 %vm1063_vm15, %v3823_v40 }
 0xb28   : > { %v2158_v15 = vpop.f32.mrf.mxu2 }
 0xb2c   : > { %3448 = vmatmul.msk.f32.gmra.mxu3 %vm884_vm7, %v4037_v44 }
 0xb2e   : > { %3431 = vmatmul.msk.f32.gmra.mxu1 %vm1063_vm15, %v3826_v41 }
 0xb34   : > { %3449 = vmatmul.msk.f32.gmra.mxu3 %vm884_vm7, %v4055_v48 }
 0xb36   : > { %3432 = vmatmul.msk.f32.gmra.mxu1 %vm1063_vm15, %v3823_v40 }
 0xb3c   : > { %3450 = vmatmul.msk.f32.gmra.mxu3 %vm884_vm7, %v4069_v50 }
 0xb3e   : > { %3433 = vmatmul.msk.f32.gmra.mxu1 %vm1063_vm15, %v3826_v41 }
 0xb44   : > { %3451 = vmatmul.msk.f32.gmra.mxu3 %vm884_vm7, %v4083_v59 }
 0xb46   : > { %3434 = vmatmul.msk.f32.gmra.mxu1 %vm1063_vm15, %v3823_v40 }
 0xb4c   : > { %3452 = vmatmul.msk.f32.gmra.mxu3 %vm884_vm7, %v4097_v61 }
 0xb4e   : > { %3435 = vmatmul.msk.f32.gmra.mxu1 %vm1063_vm15, %v3826_v41 }
 0xb54   : > { %3453 = vmatmul.msk.f32.gmra.mxu3 %vm884_vm7, %v4110_v36 }
 0xb56   : > { %3436 = vmatmul.msk.f32.gmra.mxu1 %vm1063_vm15, %v3823_v40 }
 0xb5e   : > { %3437 = vmatmul.msk.f32.gmra.mxu1 %vm1063_vm15, %v3826_v41 }
 0xb5f   : > { %v2409_v17 = vpop.f32.mrf.mxu3 }
 0xb60   : > { %v2521_v20 = vmul.f32 %v4133_v39, %v2409_v17  ;;  %v2457_v48 = vmul.f32 %v2409_v17, %v3823_v40 }
 0xb62   : > { %2553 = vrot.lane.b32.xlu2 %v2521_v20, %s3655_s2  ;;  %v2473_v50 = vsel %vm1063_vm15, %v2457_v48, 0.0 }
 0xb63   : > { %v2276_v12 = vpop.f32.mrf.mxu1 }
 0xb64   : > { %v2324_v33 = vmul.f32 %v2276_v12, %v2146_v38 }
 0xb66   : > { %v2340_v45 = vmul.f32 1.442695, %v2324_v33  ;;  %v4797_v33 = vpop.permute.xlu0 %2741 }
 0xb67   : > { %v2412_v23 = vpop.f32.mrf.mxu3 }
 0xb68   : > { %v2458_v25 = vmul.f32 %v2412_v23, %v3826_v41  ;;  %v2522_v29 = vmul.f32 %v5139_v27, %v2412_v23  ;;  %3600 = vpow2.f32 %v2340_v45 }
 0xb6a   : > { %2555 = vrot.lane.b32.xlu0 %v2522_v29, %s3655_s2  ;;  %v2476_v32 = vsel %vm1063_vm15, %v2458_v25, 0.0  ;;  %v2214_v25 = vpop.f32.mrf.mxu0 }
 0xb6b   : > { %2477 = vadd.xlane.f32.xlu1 %v2476_v32  ;;  %v2279_v22 = vpop.f32.mrf.mxu1 }
 0xb6c   : > { %v2325_v55 = vmul.f32 %v2279_v22, %v2149_v13 }
 0xb6e   : > { %v3601_v19 = vpop.eup %3600  ;;  %v2342_v1 = vmul.f32 1.442695, %v2325_v55 }
 0xb6f   : > { %v2415_v42 = vpop.f32.mrf.mxu3  ;;  %2372 = vst.msk [vmem:[#allocation2] sm:$0xff] %vm842_vm3, %v3601_v19 }
 0xb70   : > { %v2523_v44 = vmul.f32 %v4133_v39, %v2415_v42  ;;  %v2459_v36 = vmul.f32 %v2415_v42, %v3823_v40  ;;  %3602 = vpow2.f32 %v2342_v1 }
 0xb72   : > { %v2479_v26 = vsel %vm1063_vm15, %v2459_v36, 0.0 }
 0xb73   : > { %v2282_v51 = vpop.f32.mrf.mxu1 }
 0xb74   : > { %v2326_v63 = vmul.f32 %v2282_v51, %v2152_v34 }
 0xb76   : > { %v3603_v16 = vpop.eup %3602  ;;  %v2344_v4 = vmul.f32 1.442695, %v2326_v63 }
 0xb77   : > { %v2418_v59 = vpop.f32.mrf.mxu3  ;;  %2373 = vst.msk [vmem:[#allocation2 + $0x8] sm:$0xff] %vm842_vm3, %v3603_v16 }
 0xb78   : > { %v2460_v61 = vmul.f32 %v2418_v59, %v3826_v41  ;;  %v2524_v28 = vmul.f32 %v5139_v27, %v2418_v59  ;;  %3604 = vpow2.f32 %v2344_v4  ;;  %v4790_v59 = vpop.permute.xlu2 %2774 }
 0xb7a   : > { %v2482_v54 = vsel %vm1063_vm15, %v2460_v61, 0.0 }
 0xb7b   : > { %v2285_v56 = vpop.f32.mrf.mxu1 }
 0xb7c   : > { %v2327_v24 = vmul.f32 %v2285_v56, %v2155_v57 }
 0xb7e   : > { %v2346_v62 = vmul.f32 1.442695, %v2327_v24  ;;  %v3605_v5 = vpop.eup %3604 }
 0xb7f   : > { %v2421_v60 = vpop.f32.mrf.mxu3  ;;  %2374 = vst.msk [vmem:[#allocation2 + $0x10] sm:$0xff] %vm842_vm3, %v3605_v5 }
 0xb80   : > { %v2461_v7 = vmul.f32 %v2421_v60, %v3823_v40  ;;  %v2525_v46 = vmul.f32 %v4133_v39, %v2421_v60  ;;  %3606 = vpow2.f32 %v2346_v62  ;;  %v4799_v45 = vpop.permute.xlu2 %2873 }
 0xb82   : > { %v2485_v52 = vsel %vm1063_vm15, %v2461_v7, 0.0  ;;  %v4805_v7 = vpop.permute.xlu0 %2840 }
 0xb83   : > { %v2288_v17 = vpop.f32.mrf.mxu1 }
 0xb84   : > { %2557 = vrot.lane.b32.xlu1 %v2523_v44, %s3655_s2  ;;  %v2328_v20 = vmul.f32 %v2288_v17, %v2158_v15  ;;  %v2161_v44 = vpop.f32.mrf.mxu2 }
 0xb86   : > { %v3607_v6 = vpop.eup %3606  ;;  %v2348_v23 = vmul.f32 1.442695, %v2328_v20 }
 0xb87   : > { %v2424_v37 = vpop.f32.mrf.mxu3  ;;  %2375 = vst.msk [vmem:[#allocation2 + $0x18] sm:$0xff] %vm842_vm3, %v3607_v6 }
 0xb88   : > { %v2526_v3 = vmul.f32 %v5139_v27, %v2424_v37  ;;  %v2462_v8 = vmul.f32 %v2424_v37, %v3826_v41  ;;  %3608 = vpow2.f32 %v2348_v23 }
 0xb8a   : > { %v2488_v21 = vsel %vm1063_vm15, %v2462_v8, 0.0 }
 0xb8b   : > { %2474 = vadd.xlane.f32.xlu2 %v2473_v50  ;;  %v2291_v48 = vpop.f32.mrf.mxu1 }
 0xb8c   : > { %v2329_v50 = vmul.f32 %v2291_v48, %v2161_v44  ;;  %v2164_v22 = vpop.f32.mrf.mxu2 }
 0xb8e   : > { %v3609_v42 = vpop.eup %3608  ;;  %v2350_v36 = vmul.f32 1.442695, %v2329_v50 }
 0xb8f   : > { %v2427_v30 = vpop.f32.mrf.mxu3  ;;  %2376 = vst.msk [vmem:[#allocation2 + $0x20] sm:$0xff] %vm842_vm3, %v3609_v42 }
 0xb90   : > { %v2463_v9 = vmul.f32 %v2427_v30, %v3823_v40  ;;  %v2527_v61 = vmul.f32 %v4133_v39, %v2427_v30  ;;  %3610 = vpow2.f32 %v2350_v36 }
 0xb92   : > { %v2491_v53 = vsel %vm1063_vm15, %v2463_v9, 0.0 }
 0xb93   : > { %2483 = vadd.xlane.f32.xlu2 %v2482_v54  ;;  %v2294_v13 = vpop.f32.mrf.mxu1 }
 0xb94   : > { %2480 = vadd.xlane.f32.xlu0 %v2479_v26  ;;  %v2167_v30 = vpop.f32.mrf.mxu2 }
 0xb96   : > { %v3611_v12 = vpop.eup %3610 }
 0xb97   : > { %v2430_v54 = vpop.f32.mrf.mxu3  ;;  %2377 = vst.msk [vmem:[#allocation2 + $0x28] sm:$0xff] %vm842_vm3, %v3611_v12 }
 0xb98   : > { %v2464_v26 = vmul.f32 %v2430_v54, %v3826_v41  ;;  %v2528_v38 = vmul.f32 %v5139_v27, %v2430_v54 }
 0xb9b   : > { %v2297_v9 = vpop.f32.mrf.mxu1 }
 0xb9c   : > { %v2170_v15 = vpop.f32.mrf.mxu2 }
 0xb9f   : > { %v2433_v51 = vpop.f32.mrf.mxu3 }
 0xba0   : > { %v2529_v24 = vmul.f32 %v4133_v39, %v2433_v51  ;;  %v2465_v5 = vmul.f32 %v2433_v51, %v3823_v40 }
 0xba2   : > { %v2497_v6 = vsel %vm1063_vm15, %v2465_v5, 0.0 }
 0xba3   : > { %v2300_v17 = vpop.f32.mrf.mxu1 }
 0xba4   : > { %v2332_v20 = vmul.f32 %v2300_v17, %v2170_v15 }
 0xba7   : > { %v2436_v37 = vpop.f32.mrf.mxu3 }
 0xba8   : > { %2559 = vrot.lane.b32.xlu0 %v2524_v28, %s3655_s2  ;;  %v2494_v28 = vsel %vm1063_vm15, %v2464_v26, 0.0  ;;  %v2530_v42 = vmul.f32 %v5139_v27, %v2436_v37  ;;  %v2173_v26 = vpop.f32.mrf.mxu2 }
 0xbab   : > { %2561 = vrot.lane.b32.xlu2 %v2525_v46, %s3655_s2  ;;  %v2217_v46 = vpop.f32.mrf.mxu0 }
 0xbae   : > { %2486 = vadd.xlane.f32.xlu1 %v2485_v52  ;;  %v2330_v52 = vmul.f32 %v2294_v13, %v2164_v22 }
 0xbaf   : > { %v2439_v50 = vpop.f32.mrf.mxu3 }
 0xbb0   : > { %v2352_v55 = vmul.f32 1.442695, %v2330_v52  ;;  %v2467_v36 = vmul.f32 %v2439_v50, %v3823_v40 }
 0xbb2   : > { %3612 = vpow2.f32 %v2352_v55  ;;  %v2503_v54 = vsel %vm1063_vm15, %v2467_v36, 0.0 }
 0xbb3   : > { %v2220_v63 = vpop.f32.mrf.mxu0 }
 0xbb7   : > { %v2442_v55 = vpop.f32.mrf.mxu3 }
 0xbb8   : > { %v3613_v16 = vpop.eup %3612 }
 0xbb9   : > { %2378 = vst.msk [vmem:[#allocation2 + $0x30] sm:$0xff] %vm842_vm3, %v3613_v16 }
 0xbbc   : > { %v4803_v60 = vpop.permute.xlu2 %2553 }
 0xbc7   : > { %2563 = vrot.lane.b32.xlu1 %v2526_v3, %s3655_s2  ;;  %v2466_v3 = vmul.f32 %v2436_v37, %v3826_v41  ;;  %v2176_v37 = vpop.f32.mrf.mxu2 }
 0xbc9   : > { %v2500_v8 = vsel %vm1063_vm15, %v2466_v3, 0.0 }
 0xbd2   : > { %2489 = vadd.xlane.f32.xlu0 %v2488_v21  ;;  %v2331_v21 = vmul.f32 %v2297_v9, %v2167_v30  ;;  %v2179_v9 = vpop.f32.mrf.mxu2 }
 0xbd4   : > { %2492 = vadd.xlane.f32.xlu2 %v2491_v53  ;;  %v2354_v53 = vmul.f32 1.442695, %v2331_v21 }
 0xbd6   : > { %3614 = vpow2.f32 %v2354_v53 }
 0xbdc   : > { %v4807_v1 = vpop.permute.xlu0 %2555  ;;  %v3615_v23 = vpop.eup %3614 }
 0xbdd   : > { %2379 = vst.msk [vmem:[#allocation2 + $0x38] sm:$0xff] %vm842_vm3, %v3615_v23 }
 0xbde   : > { %v2478_v29 = vpop.xlane.xlu1 %2477 }
 0xbdf   : > { %v2650_v32 = vmul.f32 %v2478_v29, %v2214_v25  ;;  %v2223_v25 = vpop.f32.mrf.mxu0  ;;  %v2356_v29 = vmul.f32 1.442695, %v2332_v20 }
 0xbe1   : > { %2666 = vst.msk [vmem:[#allocation3 + $0x8] sm:$0xff] %vm842_vm3, %v2650_v32  ;;  %3616 = vpow2.f32 %v2356_v29 }
 0xbe6   : > { %2565 = vrot.lane.b32.xlu0 %v2527_v61, %s3655_s2  ;;  %v2531_v61 = vmul.f32 %v4133_v39, %v2439_v50 }
 0xbe7   : > { %v3617_v48 = vpop.eup %3616 }
 0xbe8   : > { %2380 = vst.msk [vmem:[#allocation2 + $0x40] sm:$0xff] %vm842_vm3, %v3617_v48 }
 0xbec   : > { %2567 = vrot.lane.b32.xlu2 %v2528_v38, %s3655_s2  ;;  %v2303_v38 = vpop.f32.mrf.mxu1 }
 0xbed   : > { %v2333_v12 = vmul.f32 %v2303_v38, %v2173_v26  ;;  %v2182_v38 = vpop.f32.mrf.mxu2 }
 0xbef   : > { %v2358_v13 = vmul.f32 1.442695, %v2333_v12 }
 0xbf1   : > { %2495 = vadd.xlane.f32.xlu1 %v2494_v28  ;;  %v2226_v28 = vpop.f32.mrf.mxu0  ;;  %3618 = vpow2.f32 %v2358_v13 }
 0xbf7   : > { %v3619_v52 = vpop.eup %3618 }
 0xbf8   : > { %2381 = vst.msk [vmem:[#allocation2 + $0x48] sm:$0xff] %vm842_vm3, %v3619_v52 }
 0xbfe   : > { %v2475_v19 = vpop.xlane.xlu2 %2474 }
 0xbff   : > { %v2649_v34 = vmul.f32 %v2475_v19, %v2211_v14  ;;  %v4819_v14 = vpop.permute.xlu1 %2557 }
 0xc01   : > { %2665 = vst.msk [vmem:[#allocation3] sm:$0xff] %vm842_vm3, %v2649_v34  ;;  %v2229_v34 = vpop.f32.mrf.mxu0 }
 0xc06   : > { %v2484_v4 = vpop.xlane.xlu2 %2483 }
 0xc07   : > { %v2652_v57 = vmul.f32 %v2484_v4, %v2220_v63  ;;  %v2481_v56 = vpop.xlane.xlu0 %2480  ;;  %v2468_v63 = vmul.f32 %v2442_v55, %v3826_v41 }
 0xc08   : > { %v2651_v62 = vmul.f32 %v2481_v56, %v2217_v46 }
 0xc09   : > { %2668 = vst.msk [vmem:[#allocation3 + $0x18] sm:$0xff] %vm842_vm3, %v2652_v57  ;;  %v2532_v57 = vmul.f32 %v5139_v27, %v2442_v55  ;;  %v2506_v56 = vsel %vm1063_vm15, %v2468_v63, 0.0  ;;  %v2232_v20 = vpop.f32.mrf.mxu0 }
 0xc0a   : > { %2667 = vst.msk [vmem:[#allocation3 + $0x10] sm:$0xff] %vm842_vm3, %v2651_v62  ;;  %2569 = vrot.lane.b32.xlu1 %v2529_v24, %s3655_s2  ;;  %v2445_v24 = vpop.f32.mrf.mxu3 }
 0xc0b   : > { %v2469_v62 = vmul.f32 %v2445_v24, %v3823_v40  ;;  %v2533_v53 = vmul.f32 %v4133_v39, %v2445_v24 }
 0xc0d   : > { %v2509_v5 = vsel %vm1063_vm15, %v2469_v62, 0.0 }
 0xc0e   : > { %v4832_v22 = vpop.permute.xlu2 %2561 }
 0xc10   : > { %2498 = vadd.xlane.f32.xlu0 %v2497_v6  ;;  %v2306_v6 = vpop.f32.mrf.mxu1 }
 0xc11   : > { %v2334_v3 = vmul.f32 %v2306_v6, %v2176_v37  ;;  %v2235_v36 = vpop.f32.mrf.mxu0 }
 0xc15   : > { %2501 = vadd.xlane.f32.xlu2 %v2500_v8  ;;  %v2360_v8 = vmul.f32 1.442695, %v2334_v3 }
 0xc17   : > { %3620 = vpow2.f32 %v2360_v8  ;;  %v2607_v8 = vsel %vm1063_vm15, %v4819_v14, 0.0 }
 0xc18   : > { %v2309_v21 = vpop.f32.mrf.mxu1 }
 0xc19   : > { %v2335_v15 = vmul.f32 %v2309_v21, %v2179_v9 }
 0xc1a   : > { %v4830_v46 = vpop.permute.xlu0 %2559 }
 0xc1b   : > { %v2362_v23 = vmul.f32 1.442695, %v2335_v15 }
 0xc1d   : > { %v3621_v17 = vpop.eup %3620  ;;  %3622 = vpow2.f32 %v2362_v23 }
 0xc1e   : > { %2382 = vst.msk [vmem:[#allocation2 + $0x50] sm:$0xff] %vm842_vm3, %v3621_v17 }
 0xc21   : > { %v2487_v32 = vpop.xlane.xlu1 %2486 }
 0xc22   : > { %v2653_v44 = vmul.f32 %v2487_v32, %v2223_v25  ;;  %v2448_v32 = vpop.f32.mrf.mxu3 }
 0xc23   : > { %v2470_v48 = vmul.f32 %v2448_v32, %v3826_v41 }
 0xc24   : > { %2669 = vst.msk [vmem:[#allocation3 + $0x20] sm:$0xff] %vm842_vm3, %v2653_v44  ;;  %2571 = vrot.lane.b32.xlu0 %v2530_v42, %s3655_s2  ;;  %v3623_v42 = vpop.eup %3622  ;;  %v2534_v44 = vmul.f32 %v5139_v27, %v2448_v32  ;;  %v2601_v32 = vsel %vm1063_vm15, %v4803_v60, 0.0 }
 0xc25   : > { %2383 = vst.msk [vmem:[#allocation2 + $0x58] sm:$0xff] %vm842_vm3, %v3623_v42  ;;  %v2512_v50 = vsel %vm1063_vm15, %v2470_v48, 0.0 }
 0xc2a   : > { %v2451_v52 = vpop.f32.mrf.mxu3 }
 0xc2d   : > { %2573 = vrot.lane.b32.xlu2 %v2531_v61, %s3655_s2 }
 0xc34   : > { %2504 = vadd.xlane.f32.xlu1 %v2503_v54  ;;  %v2312_v54 = vpop.f32.mrf.mxu1 }
 0xc35   : > { %v2336_v12 = vmul.f32 %v2312_v54, %v2182_v38 }
 0xc37   : > { %v2364_v13 = vmul.f32 1.442695, %v2336_v12 }
 0xc39   : > { %v4843_v30 = vpop.permute.xlu1 %2563  ;;  %3624 = vpow2.f32 %v2364_v13 }
 0xc3a   : > { %v2616_v17 = vsel %vm1063_vm15, %v4843_v30, 0.0 }
 0xc3c   : > { %v2315_v62 = vpop.f32.mrf.mxu1 }
 0xc45   : > { %v2490_v19 = vpop.xlane.xlu0 %2489 }
 0xc46   : > { %v2654_v51 = vmul.f32 %v2490_v19, %v2226_v28  ;;  %v2471_v19 = vmul.f32 %v2451_v52, %v3823_v40 }
 0xc47   : > { %v2493_v16 = vpop.xlane.xlu2 %2492 }
 0xc48   : > { %2670 = vst.msk [vmem:[#allocation3 + $0x28] sm:$0xff] %vm842_vm3, %v2654_v51  ;;  %v2655_v4 = vmul.f32 %v2493_v16, %v2229_v34  ;;  %v2238_v34 = vpop.f32.mrf.mxu0  ;;  %v2515_v16 = vsel %vm1063_vm15, %v2471_v19, 0.0  ;;  %v2604_v19 = vsel %vm1063_vm15, %v4807_v1, 0.0 }
 0xc4a   : > { %2671 = vst.msk [vmem:[#allocation3 + $0x30] sm:$0xff] %vm842_vm3, %v2655_v4  ;;  %v3625_v4 = vpop.eup %3624 }
 0xc4b   : > { %2384 = vst.msk [vmem:[#allocation2 + $0x60] sm:$0xff] %vm842_vm3, %v3625_v4 }
 0xc4d   : > { %2575 = vrot.lane.b32.xlu1 %v2532_v57, %s3655_s2  ;;  %v2535_v57 = vmul.f32 %v4133_v39, %v2451_v52 }
 0xc4e   : > { %2507 = vadd.xlane.f32.xlu0 %v2506_v56  ;;  %v2454_v56 = vpop.f32.mrf.mxu3 }
 0xc4f   : > { %v4856_v26 = vpop.permute.xlu2 %2567  ;;  %v2472_v24 = vmul.f32 %v2454_v56, %v3826_v41  ;;  %v2536_v3 = vmul.f32 %v5139_v27, %v2454_v56  ;;  %v2318_v41 = vpop.f32.mrf.mxu1 }
 0xc50   : > { %v2622_v1 = vsel %vm1063_vm15, %v4856_v26, 0.0 }
 0xc51   : > { %v2518_v40 = vsel %vm1063_vm15, %v2472_v24, 0.0 }
 0xc56   : > { %2510 = vadd.xlane.f32.xlu2 %v2509_v5  ;;  %v2185_v5 = vpop.f32.mrf.mxu2 }
 0xc57   : > { %v2337_v37 = vmul.f32 %v2315_v62, %v2185_v5  ;;  %v2321_v12 = vpop.f32.mrf.mxu1  ;;  %v2905_v62 = vrot.slane %v4590_v49, 5 }
 0xc58   : > { %v4854_v61 = vpop.permute.xlu0 %2565 }
 0xc59   : > { %v2366_v6 = vmul.f32 1.442695, %v2337_v37 }
 0xc5b   : > { %3626 = vpow2.f32 %v2366_v6 }
 0xc5e   : > { %v2188_v39 = vpop.f32.mrf.mxu2 }
 0xc5f   : > { %v2338_v15 = vmul.f32 %v2318_v41, %v2188_v39 }
 0xc61   : > { %v3627_v21 = vpop.eup %3626  ;;  %v2368_v27 = vmul.f32 1.442695, %v2338_v15  ;;  %v3462_v15 = vld [vmem:[%s5114_s11 + $0x78] sm:$0xff] }
 0xc62   : > { %2577 = vrot.lane.b32.xlu0 %v2533_v53, %s3655_s2  ;;  %v2241_v53 = vpop.f32.mrf.mxu0  ;;  %2385 = vst.msk [vmem:[#allocation2 + $0x68] sm:$0xff] %vm842_vm3, %v3627_v21  ;;  %2998 = vmatpush.msra.mxu2 %v3462_v15 }
 0xc63   : > { %3628 = vpow2.f32 %v2368_v27 }
 0xc64   : > { %v2496_v25 = vpop.xlane.xlu1 %2495 }
 0xc65   : > { %v2656_v29 = vmul.f32 %v2496_v25, %v2232_v20 }
 0xc66   : > { %v2191_v38 = vpop.f32.mrf.mxu2 }
 0xc67   : > { %2672 = vst.msk [vmem:[#allocation3 + $0x38] sm:$0xff] %vm842_vm3, %v2656_v29 }
 0xc69   : > { %v3629_v25 = vpop.eup %3628 }
 0xc6a   : > { %2386 = vst.msk [vmem:[#allocation2 + $0x70] sm:$0xff] %vm842_vm3, %v3629_v25  ;;  %v2244_v30 = vpop.f32.mrf.mxu0  ;;  %v2697_v25 = vld [vmem:[#allocation2] sm:$0xff] }
 0xc6e   : > { %2579 = vrot.lane.b32.xlu2 %v2534_v44, %s3655_s2  ;;  %v2817_v15 = vld [vmem:[#allocation3 + $0x38] sm:$0xff] }
 0xc72   : > { %v2247_v60 = vpop.f32.mrf.mxu0 }
 0xc77   : > { %2513 = vadd.xlane.f32.xlu1 %v2512_v50 }
 0xc7a   : > { %v2250_v56 = vpop.f32.mrf.mxu0 }
 0xc7c   : > { %v2570_v9 = vpop.permute.xlu1 %2569 }
 0xc7d   : > { %v2625_v14 = vsel %vm1063_vm15, %v2570_v9, 0.0 }
 0xc82   : > { %v2253_v5 = vpop.f32.mrf.mxu0 }
 0xc83   : > { %v2499_v28 = vpop.xlane.xlu0 %2498 }
 0xc84   : > { %v2657_v55 = vmul.f32 %v2499_v28, %v2235_v36  ;;  %v2610_v36 = vsel %vm1063_vm15, %v4830_v46, 0.0  ;;  %v2339_v28 = vmul.f32 %v2321_v12, %v2191_v38 }
 0xc86   : > { %2673 = vst.msk [vmem:[#allocation3 + $0x40] sm:$0xff] %vm842_vm3, %v2657_v55  ;;  %v2370_v13 = vmul.f32 1.442695, %v2339_v28  ;;  %v2619_v55 = vsel %vm1063_vm15, %v4854_v61, 0.0  ;;  %v2747_v28 = vld [vmem:[#allocation2 + $0x18] sm:$0xff] }
 0xc88   : > { %v2502_v51 = vpop.xlane.xlu2 %2501  ;;  %3630 = vpow2.f32 %v2370_v13  ;;  %v2750_v13 = vld [vmem:[#allocation3 + $0x10] sm:$0xff] }
 0xc89   : > { %v2658_v63 = vmul.f32 %v2502_v51, %v2238_v34 }
 0xc8b   : > { %2674 = vst.msk [vmem:[#allocation3 + $0x48] sm:$0xff] %vm842_vm3, %v2658_v63  ;;  %v2613_v63 = vsel %vm1063_vm15, %v4832_v22, 0.0 }
 0xc8c   : > { %2516 = vadd.xlane.f32.xlu0 %v2515_v16 }
 0xc8e   : > { %v3631_v46 = vpop.eup %3630 }
 0xc8f   : > { %2387 = vst.msk [vmem:[#allocation2 + $0x78] sm:$0xff] %vm842_vm3, %v3631_v46  ;;  %v2779_v46 = vld [vmem:[#allocation2 + $0x20] sm:$0xff] }
 0xc90   : > { %2581 = vrot.lane.b32.xlu1 %v2535_v57, %s3655_s2  ;;  %v2574_v48 = vpop.permute.xlu2 %2573 }
 0xc91   : > { %v2631_v4 = vsel %vm1063_vm15, %v2574_v48, 0.0 }
 0xc96   : > { %v2572_v29 = vpop.permute.xlu0 %2571 }
 0xc97   : > { %2519 = vadd.xlane.f32.xlu2 %v2518_v40  ;;  %v2628_v51 = vsel %vm1063_vm15, %v2572_v29, 0.0 }
 0xc9f   : > { %2608 = vadd.xlane.f32.xlu2 %v2607_v8  ;;  %v2256_v8 = vpop.f32.mrf.mxu0 }
 0xca0   : > { %2583 = vrot.lane.b32.xlu0 %v2536_v3, %s3655_s2 }
 0xca7   : > { %v2505_v20 = vpop.xlane.xlu1 %2504  ;;  %2617 = vadd.xlane.f32.xlu2 %v2616_v17 }
 0xca8   : > { %v2659_v23 = vmul.f32 %v2505_v20, %v2241_v53  ;;  %v2971_v20 = vrot.slane %v4590_v49, 7 }
 0xcaa   : > { %2675 = vst.msk [vmem:[#allocation3 + $0x50] sm:$0xff] %vm842_vm3, %v2659_v23  ;;  %v3461_v23 = vld [vmem:[%s5114_s11 + $0x70] sm:$0xff] }
 0xcab   : > { %2999 = vmatpush.msra.mxu2 %v3461_v23 }
 0xcaf   : > { %2626 = vadd.xlane.f32.xlu2 %v2625_v14  ;;  %v2938_v14 = vrot.slane %v4590_v49, 6 }
 0xcba   : > { %2602 = vadd.xlane.f32.xlu1 %v2601_v32  ;;  %v2698_v32 = vld [vmem:[#allocation2 + $0x8] sm:$0xff] }
 0xcbb   : > { %v2700_v48 = vmul.f32 0.0, %v2698_v32 }
 0xcbf   : > { %v2576_v42 = vpop.permute.xlu1 %2575 }
 0xcc0   : > { %v2634_v44 = vsel %vm1063_vm15, %v2576_v42, 0.0  ;;  %v3460_v42 = vld [vmem:[%s5114_s11 + $0x68] sm:$0xff] }
 0xcc1   : > { %v2508_v50 = vpop.xlane.xlu0 %2507  ;;  %2635 = vadd.xlane.f32.xlu2 %v2634_v44  ;;  %v2701_v44 = vld [vmem:[#allocation3] sm:$0xff]  ;;  %3000 = vmatpush.msra.mxu2 %v3460_v42 }
 0xcc2   : > { %v2660_v54 = vmul.f32 %v2508_v50, %v2244_v30  ;;  %2611 = vadd.xlane.f32.xlu1 %v2610_v36  ;;  %v2699_v30 = vmul.f32 0.0, %v2697_v25  ;;  %v2702_v50 = vld [vmem:[#allocation3 + $0x8] sm:$0xff] }
 0xcc3   : > { %v2704_v49 = vadd.f32 %v2702_v50, %v2700_v48  ;;  %v2846_v48 = vld [vmem:[#allocation2 + $0x48] sm:$0xff]  ;;  %v2849_v50 = vld [vmem:[#allocation3 + $0x40] sm:$0xff] }
 0xcc4   : > { %2676 = vst.msk [vmem:[#allocation3 + $0x58] sm:$0xff] %vm842_vm3, %v2660_v54  ;;  %v2703_v36 = vadd.f32 %v2701_v44, %v2699_v30  ;;  %v2746_v54 = vld [vmem:[#allocation2 + $0x10] sm:$0xff] }
 0xcc9   : > { %v2511_v52 = vpop.xlane.xlu2 %2510 }
 0xcca   : > { %v2661_v34 = vmul.f32 %v2511_v52, %v2247_v60  ;;  %2620 = vadd.xlane.f32.xlu1 %v2619_v55  ;;  %2605 = vadd.xlane.f32.xlu0 %v2604_v19  ;;  %v2748_v60 = vmul.f32 %v2746_v54, %v2703_v36  ;;  %v2751_v52 = vld [vmem:[#allocation3 + $0x18] sm:$0xff]  ;;  %v2749_v55 = vmul.f32 %v2747_v28, %v2704_v49 }
 0xccc   : > { %2677 = vst.msk [vmem:[#allocation3 + $0x60] sm:$0xff] %vm842_vm3, %v2661_v34  ;;  %v2752_v19 = vadd.f32 %v2750_v13, %v2748_v60  ;;  %v2850_v13 = vld [vmem:[#allocation3 + $0x48] sm:$0xff] }
 0xcd1   : > { %v2580_v57 = vpop.permute.xlu2 %2579 }
 0xcd2   : > { %2629 = vadd.xlane.f32.xlu1 %v2628_v51  ;;  %2614 = vadd.xlane.f32.xlu0 %v2613_v63  ;;  %v2640_v24 = vsel %vm1063_vm15, %v2580_v57, 0.0  ;;  %v2753_v51 = vadd.f32 %v2751_v52, %v2749_v55  ;;  %v2780_v63 = vld [vmem:[#allocation2 + $0x28] sm:$0xff] }
 0xcd4   : > { %v2578_v16 = vpop.permute.xlu0 %2577 }
 0xcd5   : > { %v2637_v61 = vsel %vm1063_vm15, %v2578_v16, 0.0  ;;  %v2783_v16 = vld [vmem:[#allocation3 + $0x20] sm:$0xff] }
 0xcda   : > { %2638 = vadd.xlane.f32.xlu1 %v2637_v61  ;;  %2623 = vadd.xlane.f32.xlu0 %v2622_v1  ;;  %v2781_v1 = vmul.f32 %v2779_v46, %v2752_v19 }
 0xce2   : > { %2632 = vadd.xlane.f32.xlu0 %v2631_v4 }
 0xcea   : > { %v2514_v40 = vpop.xlane.xlu1 %2513  ;;  %2641 = vadd.xlane.f32.xlu0 %v2640_v24  ;;  %v2784_v24 = vld [vmem:[#allocation3 + $0x28] sm:$0xff] }
 0xceb   : > { %v2662_v22 = vmul.f32 %v2514_v40, %v2250_v56  ;;  %v3459_v40 = vld [vmem:[%s5114_s11 + $0x60] sm:$0xff] }
 0xcec   : > { %3001 = vmatpush.msra.mxu2 %v3459_v40 }
 0xced   : > { %2678 = vst.msk [vmem:[#allocation3 + $0x68] sm:$0xff] %vm842_vm3, %v2662_v22 }
 0xcfe   : > { %2906 = vrot.lane.b32.xlu0 %v2905_v62, %s3654_s28  ;;  %v2782_v62 = vmul.f32 %v2780_v63, %v2753_v51 }
 0xcff   : > { %v2517_v26 = vpop.xlane.xlu0 %2516 }
 0xd00   : > { %v2663_v37 = vmul.f32 %v2517_v26, %v2253_v5  ;;  %v2785_v5 = vadd.f32 %v2783_v16, %v2781_v1  ;;  %v2812_v26 = vld [vmem:[#allocation2 + $0x30] sm:$0xff] }
 0xd02   : > { %2679 = vst.msk [vmem:[#allocation3 + $0x70] sm:$0xff] %vm842_vm3, %v2663_v37  ;;  %v2582_v6 = vpop.permute.xlu1 %2581 }
 0xd03   : > { %v2643_v3 = vsel %vm1063_vm15, %v2582_v6, 0.0 }
 0xd04   : > { %2644 = vadd.xlane.f32.xlu2 %v2643_v3  ;;  %v2786_v3 = vadd.f32 %v2784_v24, %v2782_v62 }
 0xd0a   : > { %v2520_v9 = vpop.xlane.xlu2 %2519 }
 0xd0b   : > { %v2664_v41 = vmul.f32 %v2520_v9, %v2256_v8  ;;  %v2813_v9 = vld [vmem:[#allocation2 + $0x38] sm:$0xff] }
 0xd0d   : > { %2680 = vst.msk [vmem:[#allocation3 + $0x78] sm:$0xff] %vm842_vm3, %v2664_v41  ;;  %v2816_v41 = vld [vmem:[#allocation3 + $0x30] sm:$0xff] }
 0xd12   : > { %v2584_v39 = vpop.permute.xlu0 %2583  ;;  %v2609_v21 = vpop.xlane.xlu2 %2608 }
 0xd13   : > { %2683 = vst.msk [vmem:[#allocation4 + $0x10] sm:$0xff] %vm842_vm3, %v2609_v21  ;;  %v2646_v53 = vsel %vm1063_vm15, %v2584_v39, 0.0  ;;  %v2814_v21 = vmul.f32 %v2812_v26, %v2785_v5 }
 0xd14   : > { %2647 = vadd.xlane.f32.xlu1 %v2646_v53 }
 0xd1a   : > { %v2618_v17 = vpop.xlane.xlu2 %2617  ;;  %v2754_v34 = vld [vmem:[#allocation4 + $0x10] sm:$0xff] }
 0xd1b   : > { %2686 = vst.msk [vmem:[#allocation4 + $0x28] sm:$0xff] %vm842_vm3, %v2618_v17  ;;  %v2756_v61 = vmul.f32 %v2754_v34, %v2752_v19  ;;  %v2815_v17 = vmul.f32 %v2813_v9, %v2786_v3 }
 0xd1c   : > { %2972 = vrot.lane.b32.xlu2 %v2971_v20, %s3654_s28  ;;  %v2818_v20 = vadd.f32 %v2816_v41, %v2814_v21 }
 0xd1d   : > { %v2758_v37 = vsel %vm842_vm3, %v2756_v61, 0.0  ;;  %v2819_v30 = vadd.f32 %v2817_v15, %v2815_v17  ;;  %v4937_v61 = vld [vmem:[%s5113_s10 + $0x1] sm:$0x1] }
 0xd1e   : > { %v2771_v1 = vmul.f32 %v4937_v61, %v4603_v58 }
 0xd1f   : > { %v2848_v55 = vmul.f32 %v2846_v48, %v2819_v30 }
 0xd22   : > { %v2627_v27 = vpop.xlane.xlu2 %2626  ;;  %v2788_v52 = vld [vmem:[#allocation4 + $0x28] sm:$0xff] }
 0xd23   : > { %2689 = vst.msk [vmem:[#allocation4 + $0x40] sm:$0xff] %vm842_vm3, %v2627_v27 }
 0xd2d   : > { %v2603_v29 = vpop.xlane.xlu1 %2602  ;;  %2939 = vrot.lane.b32.xlu1 %v2938_v14, %s3654_s28 }
 0xd2e   : > { %2681 = vst.msk [vmem:[#allocation4] sm:$0xff] %vm842_vm3, %v2603_v29  ;;  %v2845_v29 = vld [vmem:[#allocation2 + $0x40] sm:$0xff] }
 0xd2f   : > { %v2847_v54 = vmul.f32 %v2845_v29, %v2818_v20  ;;  %v3642_v29 = vld [vmem:[#allocation1] sm:$0xff] }
 0xd31   : > { %v2851_v19 = vadd.f32 %v2849_v50, %v2847_v54  ;;  %v2878_v50 = vld [vmem:[#allocation2 + $0x50] sm:$0xff] }
 0xd34   : > { %v2636_v38 = vpop.xlane.xlu2 %2635 }
 0xd35   : > { %2692 = vst.msk [vmem:[#allocation4 + $0x58] sm:$0xff] %vm842_vm3, %v2636_v38  ;;  %v2612_v12 = vpop.xlane.xlu1 %2611  ;;  %v2705_v39 = vld [vmem:[#allocation4] sm:$0xff] }
 0xd36   : > { %2684 = vst.msk [vmem:[#allocation4 + $0x18] sm:$0xff] %vm842_vm3, %v2612_v12  ;;  %v2707_v14 = vmul.f32 %v2705_v39, %v2703_v36  ;;  %v2853_v36 = vld [vmem:[#allocation4 + $0x40] sm:$0xff] }
 0xd37   : > { %v2855_v63 = vmul.f32 %v2853_v36, %v2851_v19 }
 0xd38   : > { %v2709_v38 = vsel %vm842_vm3, %v2707_v14, 0.0 }
 0xd3d   : > { %v2621_v4 = vpop.xlane.xlu1 %2620  ;;  %v2606_v57 = vpop.xlane.xlu0 %2605  ;;  %v2755_v56 = vld [vmem:[#allocation4 + $0x18] sm:$0xff] }
 0xd3e   : > { %2687 = vst.msk [vmem:[#allocation4 + $0x30] sm:$0xff] %vm842_vm3, %v2621_v4  ;;  %v2757_v22 = vmul.f32 %v2755_v56, %v2753_v51  ;;  %v2852_v51 = vadd.f32 %v2850_v13, %v2848_v55  ;;  %v2790_v56 = vmul.f32 %v2788_v52, %v2786_v3  ;;  %v2880_v55 = vmul.f32 %v2878_v50, %v2851_v19  ;;  %v2911_v50 = vld [vmem:[#allocation2 + $0x60] sm:$0xff] }
 0xd3f   : > { %2682 = vst.msk [vmem:[#allocation4 + $0x8] sm:$0xff] %vm842_vm3, %v2606_v57 }
 0xd40   : > { %v2759_v6 = vsel %vm842_vm3, %v2757_v22, 0.0  ;;  %v2792_v3 = vsel %vm842_vm3, %v2790_v56, 0.0 }
 0xd41   : > { %v2760_v8 = vadd.f32 %v2759_v6, %v2758_v37  ;;  %v2857_v6 = vsel %vm842_vm3, %v2855_v63, 0.0 }
 0xd43   : > { %v2761_v53 = vrot.slane %v2760_v8, 4 }
 0xd45   : > { %v2630_v27 = vpop.xlane.xlu1 %2629  ;;  %v2615_v23 = vpop.xlane.xlu0 %2614  ;;  %v2762_v25 = vadd.f32 %v2761_v53, %v2760_v8  ;;  %v2820_v39 = vld [vmem:[#allocation4 + $0x30] sm:$0xff] }
 0xd46   : > { %v2706_v32 = vld [vmem:[#allocation4 + $0x8] sm:$0xff]  ;;  %2690 = vst.msk [vmem:[#allocation4 + $0x48] sm:$0xff] %vm842_vm3, %v2630_v27 }
 0xd47   : > { %2685 = vst.msk [vmem:[#allocation4 + $0x20] sm:$0xff] %vm842_vm3, %v2615_v23  ;;  %v2708_v42 = vmul.f32 %v2706_v32, %v2704_v49  ;;  %v2763_v44 = vrot.slane %v2762_v25, 2  ;;  %v2718_v32 = vmul.f32 %v3642_v29, %v4937_v61  ;;  %v2903_v29 = vmul.f32 %v4937_v61, %v4611_v35 }
 0xd49   : > { %v2710_v12 = vsel %vm842_vm3, %v2708_v42, 0.0  ;;  %v2764_v28 = vadd.f32 %v2763_v44, %v2762_v25  ;;  %v2879_v25 = vld [vmem:[#allocation2 + $0x58] sm:$0xff] }
 0xd4a   : > { %v2711_v60 = vadd.f32 %v2710_v12, %v2709_v38  ;;  %v2883_v12 = vld [vmem:[#allocation3 + $0x58] sm:$0xff]  ;;  %v2881_v36 = vmul.f32 %v2879_v25, %v2852_v51 }
 0xd4b   : > { %v2765_v34 = vrot.slane %v2764_v28, 1 }
 0xd4c   : > { %v2712_v46 = vrot.slane %v2711_v60, 4 }
 0xd4d   : > { %v2639_v49 = vpop.xlane.xlu1 %2638  ;;  %v2624_v16 = vpop.xlane.xlu0 %2623  ;;  %v2854_v4 = vld [vmem:[#allocation4 + $0x48] sm:$0xff]  ;;  %v2766_v57 = vadd.f32 %v2765_v34, %v2764_v28  ;;  %v2882_v34 = vld [vmem:[#allocation3 + $0x50] sm:$0xff] }
 0xd4e   : > { %2693 = vst.msk [vmem:[#allocation4 + $0x60] sm:$0xff] %vm842_vm3, %v2639_v49  ;;  %v2787_v24 = vld [vmem:[#allocation4 + $0x20] sm:$0xff]  ;;  %v2713_v40 = vadd.f32 %v2712_v46, %v2711_v60  ;;  %v2856_v22 = vmul.f32 %v2854_v4, %v2852_v51  ;;  %v2887_v46 = vld [vmem:[#allocation4 + $0x58] sm:$0xff]  ;;  %v2884_v56 = vadd.f32 %v2882_v34, %v2880_v55 }
 0xd4f   : > { %2688 = vst.msk [vmem:[#allocation4 + $0x38] sm:$0xff] %vm842_vm3, %v2624_v16  ;;  %v2772_v62 = vadd.f32 %v2771_v1, %v2766_v57  ;;  %v2789_v26 = vmul.f32 %v2787_v24, %v2785_v5  ;;  %v3458_v5 = vld [vmem:[%s5114_s11 + $0x58] sm:$0xff]  ;;  %v2885_v1 = vadd.f32 %v2883_v12, %v2881_v36 }
 0xd50   : > { %v2714_v37 = vrot.slane %v2713_v40, 2  ;;  %v2858_v8 = vsel %vm842_vm3, %v2856_v22, 0.0  ;;  %3002 = vmatpush.msra.mxu2 %v3458_v5 }
 0xd51   : > { %v2777_v9 = vmul.f32 %v4790_v59, %v2772_v62  ;;  %v2791_v58 = vsel %vm842_vm3, %v2789_v26, 0.0  ;;  %v2859_v41 = vadd.f32 %v2858_v8, %v2857_v6  ;;  %v2822_v59 = vmul.f32 %v2820_v39, %v2818_v20  ;;  %v3457_v8 = vld [vmem:[%s5114_s11 + $0x50] sm:$0xff] }
 0xd52   : > { %v2715_v21 = vadd.f32 %v2714_v37, %v2713_v40  ;;  %v2793_v53 = vadd.f32 %v2792_v3, %v2791_v58  ;;  %v2889_v24 = vmul.f32 %v2887_v46, %v2885_v1  ;;  %v2870_v40 = vmul.f32 %v4937_v61, %v4609_v47  ;;  %3003 = vmatpush.msra.mxu2 %v3457_v8 }
 0xd53   : > { %v2860_v15 = vrot.slane %v2859_v41, 4  ;;  %2778 = vst.msk [vmem:[#allocation5 + $0x1] sm:$0x1] %vm1562_vm1, %v2777_v9  ;;  %v2824_v60 = vsel %vm842_vm3, %v2822_v59, 0.0 }
 0xd54   : > { %v2716_v17 = vrot.slane %v2715_v21, 1  ;;  %v2794_v27 = vrot.slane %v2793_v53, 4  ;;  %v2891_v47 = vsel %vm842_vm3, %v2889_v24, 0.0  ;;  %v2949_v24 = vld [vmem:[#allocation3 + $0x78] sm:$0xff] }
 0xd55   : > { %v2633_v23 = vpop.xlane.xlu0 %2632  ;;  %v2861_v14 = vadd.f32 %v2860_v15, %v2859_v41 }
 0xd56   : > { %2691 = vst.msk [vmem:[#allocation4 + $0x50] sm:$0xff] %vm842_vm3, %v2633_v23  ;;  %v2821_v42 = vld [vmem:[#allocation4 + $0x38] sm:$0xff]  ;;  %v2717_v44 = vadd.f32 %v2716_v17, %v2715_v21  ;;  %v2795_v48 = vadd.f32 %v2794_v27, %v2793_v53  ;;  %v2837_v17 = vmul.f32 %v4937_v61, %v4607_v31 }
 0xd57   : > { %v2823_v54 = vmul.f32 %v2821_v42, %v2819_v30  ;;  %v2862_v38 = vrot.slane %v2861_v14, 2 }
 0xd58   : > { %v2719_v28 = vadd.f32 %v2718_v32, %v2717_v44  ;;  %v2796_v13 = vrot.slane %v2795_v48, 2 }
 0xd59   : > { %v2825_v20 = vsel %vm842_vm3, %v2823_v54, 0.0  ;;  %v2863_v52 = vadd.f32 %v2862_v38, %v2861_v14  ;;  %v2916_v54 = vld [vmem:[#allocation3 + $0x68] sm:$0xff] }
 0xd5a   : > { %v2744_v63 = vmul.f32 %v4797_v33, %v2719_v28  ;;  %v2797_v49 = vadd.f32 %v2796_v13, %v2795_v48  ;;  %v2826_v16 = vadd.f32 %v2825_v20, %v2824_v60  ;;  %v2804_v33 = vmul.f32 %v4937_v61, %v4605_v18  ;;  %v2912_v48 = vld [vmem:[#allocation2 + $0x68] sm:$0xff]  ;;  %v2919_v60 = vld [vmem:[#allocation4 + $0x60] sm:$0xff] }
 0xd5b   : > { %v2864_v4 = vrot.slane %v2863_v52, 1  ;;  %v2914_v12 = vmul.f32 %v2912_v48, %v2885_v1  ;;  %v2913_v13 = vmul.f32 %v2911_v50, %v2884_v56  ;;  %v2944_v1 = vld [vmem:[#allocation2 + $0x70] sm:$0xff] }
 0xd5c   : > { %v2798_v30 = vrot.slane %v2797_v49, 1  ;;  %v2827_v57 = vrot.slane %v2826_v16, 4  ;;  %2745 = vst.msk [vmem:[#allocation5] sm:$0x1] %vm1562_vm1, %v2744_v63  ;;  %v3455_v63 = vld [vmem:[%s5114_s11 + $0x40] sm:$0xff] }
 0xd5d   : > { %v2642_v51 = vpop.xlane.xlu0 %2641  ;;  %v2886_v22 = vld [vmem:[#allocation4 + $0x50] sm:$0xff]  ;;  %v2865_v19 = vadd.f32 %v2864_v4, %v2863_v52  ;;  %v2918_v36 = vadd.f32 %v2916_v54, %v2914_v12  ;;  %v2945_v4 = vld [vmem:[#allocation2 + $0x78] sm:$0xff] }
 0xd5e   : > { %2694 = vst.msk [vmem:[#allocation4 + $0x68] sm:$0xff] %vm842_vm3, %v2642_v51  ;;  %v2799_v62 = vadd.f32 %v2798_v30, %v2797_v49  ;;  %v2828_v26 = vadd.f32 %v2827_v57, %v2826_v16  ;;  %v2888_v37 = vmul.f32 %v2886_v22, %v2884_v56  ;;  %v2948_v30 = vld [vmem:[#allocation3 + $0x70] sm:$0xff] }
 0xd5f   : > { %v2871_v6 = vadd.f32 %v2870_v40, %v2865_v19  ;;  %v2947_v40 = vmul.f32 %v2945_v4, %v2918_v36  ;;  %v3487_v12 = vld [vmem:[%s5119_s16 + $0xf8] sm:$0xff] }
 0xd60   : > { %v2805_v9 = vadd.f32 %v2804_v33, %v2799_v62  ;;  %v2829_v58 = vrot.slane %v2828_v26, 2  ;;  %v2890_v3 = vsel %vm842_vm3, %v2888_v37, 0.0  ;;  %3139 = vmatpush.msrb.mxu1 %v3487_v12 }
 0xd61   : > { %v2876_v41 = vmul.f32 %v4799_v45, %v2871_v6  ;;  %v2892_v39 = vadd.f32 %v2891_v47, %v2890_v3  ;;  %v3456_v45 = vld [vmem:[%s5114_s11 + $0x48] sm:$0xff]  ;;  %v2951_v33 = vadd.f32 %v2949_v24, %v2947_v40  ;;  %v3527_v24 = vld [vmem:[%s5116_s13 + $0x1] ss:$0 sm:$0xff] }
 0xd62   : > { %v2810_v18 = vmul.f32 %v4662_v43, %v2805_v9  ;;  %v2830_v21 = vadd.f32 %v2829_v58, %v2828_v26  ;;  %3004 = vmatpush.msra.mxu2 %v3456_v45 }
 0xd63   : > { %v2893_v53 = vrot.slane %v2892_v39, 4  ;;  %2877 = vst.msk [vmem:[#allocation5 + $0x4] sm:$0x1] %vm1562_vm1, %v2876_v41 }
 0xd64   : > { %v2831_v15 = vrot.slane %v2830_v21, 1  ;;  %2811 = vst.msk [vmem:[#allocation5 + $0x2] sm:$0x1] %vm1562_vm1, %v2810_v18  ;;  %3005 = vmatpush.msra.mxu2 %v3455_v63  ;;  %v3479_v63 = vld [vmem:[%s5119_s16 + $0xb8] sm:$0xff] }
 0xd65   : > { %v2894_v5 = vadd.f32 %v2893_v53, %v2892_v39  ;;  %v2920_v28 = vld [vmem:[#allocation4 + $0x68] sm:$0xff] }
 0xd66   : > { %v2832_v27 = vadd.f32 %v2831_v15, %v2830_v21  ;;  %v2922_v35 = vmul.f32 %v2920_v28, %v2918_v36  ;;  %v2967_v53 = vld [vmem:[#allocation1 + $0x7] ss:$9 sm:$0xff] }
 0xd67   : > { %v2895_v23 = vrot.slane %v2894_v5, 2  ;;  %v3485_v28 = vld [vmem:[%s5119_s16 + $0xe8] sm:$0xff] }
 0xd68   : > { %v2838_v59 = vadd.f32 %v2837_v17, %v2832_v27  ;;  %v2924_v55 = vsel %vm842_vm3, %v2922_v35, 0.0  ;;  %v2969_v17 = vmul.f32 %v4937_v61, %v2967_v53  ;;  %v3469_v61 = vld [vmem:[%s5117_s14 + $0x38] sm:$0xff]  ;;  %v3474_v53 = vld [vmem:[%s5119_s16 + $0x90] sm:$0xff] }
 0xd69   : > { %v2896_v14 = vadd.f32 %v2895_v23, %v2894_v5  ;;  %3069 = vmatpush.msra.mxu0 %v3469_v61  ;;  %v3483_v35 = vld [vmem:[%s5119_s16 + $0xd8] sm:$0xff] }
 0xd6a   : > { %v2843_v43 = vmul.f32 %v4805_v7, %v2838_v59  ;;  %v2915_v7 = vld [vmem:[#allocation3 + $0x60] sm:$0xff] }
 0xd6b   : > { %v2897_v25 = vrot.slane %v2896_v14, 1  ;;  %v2917_v20 = vadd.f32 %v2915_v7, %v2913_v13  ;;  %v3486_v7 = vld [vmem:[%s5119_s16 + $0xf0] sm:$0xff] }
 0xd6c   : > { %2844 = vst.msk [vmem:[#allocation5 + $0x3] sm:$0x1] %vm1562_vm1, %v2843_v43  ;;  %3140 = vmatpush.msrb.mxu1 %v3486_v7 }
 0xd6d   : > { %v2898_v32 = vadd.f32 %v2897_v25, %v2896_v14  ;;  %v2921_v52 = vmul.f32 %v2919_v60, %v2917_v20  ;;  %v2946_v56 = vmul.f32 %v2944_v1, %v2917_v20  ;;  %v3484_v60 = vld [vmem:[%s5119_s16 + $0xe0] sm:$0xff] }
 0xd6e   : > { %3141 = vmatpush.msrb.mxu1 %v3485_v28 }
 0xd6f   : > { %v2904_v42 = vadd.f32 %v2903_v29, %v2898_v32  ;;  %v2923_v34 = vsel %vm842_vm3, %v2921_v52, 0.0  ;;  %v2950_v22 = vadd.f32 %v2948_v30, %v2946_v56  ;;  %v3482_v52 = vld [vmem:[%s5119_s16 + $0xd0] sm:$0xff] }
 0xd70   : > { %v2907_v31 = vpop.permute.xlu0 %2906  ;;  %v2925_v46 = vadd.f32 %v2924_v55, %v2923_v34  ;;  %3142 = vmatpush.msrb.mxu1 %v3484_v60  ;;  %v3481_v55 = vld [vmem:[%s5119_s16 + $0xc8] sm:$0xff]  ;;  %v3480_v34 = vld [vmem:[%s5119_s16 + $0xc0] sm:$0xff] }
 0xd71   : > { %v2909_v44 = vmul.f32 %v2907_v31, %v2904_v42  ;;  %v3468_v42 = vld [vmem:[%s5117_s14 + $0x30] sm:$0xff]  ;;  %v3467_v31 = vld [vmem:[%s5117_s14 + $0x28] sm:$0xff] }
 0xd72   : > { %v2926_v49 = vrot.slane %v2925_v46, 4  ;;  %3070 = vmatpush.msra.mxu0 %v3468_v42  ;;  %3143 = vmatpush.msrb.mxu1 %v3483_v35 }
 0xd73   : > { %2910 = vst.msk [vmem:[#allocation5 + $0x5] sm:$0x1] %vm1562_vm1, %v2909_v44 }
 0xd74   : > { %v2927_v57 = vadd.f32 %v2926_v49, %v2925_v46  ;;  %3071 = vmatpush.msra.mxu0 %v3467_v31  ;;  %3144 = vmatpush.msrb.mxu1 %v3482_v52 }
 0xd76   : > { %v2928_v19 = vrot.slane %v2927_v57, 2  ;;  %3145 = vmatpush.msrb.mxu1 %v3481_v55 }
 0xd77   : > { %v2645_v38 = vpop.xlane.xlu2 %2644 }
 0xd78   : > { %2695 = vst.msk [vmem:[#allocation4 + $0x70] sm:$0xff] %vm842_vm3, %v2645_v38  ;;  %v2929_v6 = vadd.f32 %v2928_v19, %v2927_v57  ;;  %v3466_v38 = vld [vmem:[%s5117_s14 + $0x20] sm:$0xff]  ;;  %3146 = vmatpush.msrb.mxu1 %v3480_v34 }
 0xd79   : > { %3072 = vmatpush.msra.mxu0 %v3466_v38  ;;  %v3526_v57 = vld [vmem:[%s5115_s12 + $0x1] ss:$0 sm:$0xff] }
 0xd7a   : > { %v2930_v47 = vrot.slane %v2929_v6, 1  ;;  %3147 = vmatpush.msrb.mxu1 %v3479_v63  ;;  %v3528_v19 = vld [vmem:[%s5118_s15 + $0x1] ss:$0 sm:$0xff] }
 0xd7c   : > { %v2931_v18 = vadd.f32 %v2930_v47, %v2929_v6  ;;  %v3476_v47 = vld [vmem:[%s5119_s16 + $0xa0] sm:$0xff] }
 0xd7e   : > { %v2937_v5 = vadd.f32 %v4616_v11, %v2931_v18 }
 0xd7f   : > { %v2952_v51 = vld [vmem:[#allocation4 + $0x70] sm:$0xff]  ;;  %v2973_v14 = vpop.permute.xlu2 %2972 }
 0xd80   : > { %v2954_v62 = vmul.f32 %v2952_v51, %v2950_v22 }
 0xd82   : > { %v2956_v8 = vsel %vm842_vm3, %v2954_v62, 0.0 }
 0xd87   : > { %v2648_v16 = vpop.xlane.xlu1 %2647 }
 0xd88   : > { %2696 = vst.msk [vmem:[#allocation4 + $0x78] sm:$0xff] %vm842_vm3, %v2648_v16 }
 0xd8f   : > { %v2953_v26 = vld [vmem:[#allocation4 + $0x78] sm:$0xff] }
 0xd90   : > { %v2955_v37 = vmul.f32 %v2953_v26, %v2951_v33 }
 0xd92   : > { %v2957_v9 = vsel %vm842_vm3, %v2955_v37, 0.0 }
 0xd93   : > { %v2958_v58 = vadd.f32 %v2957_v9, %v2956_v8  ;;  %v3478_v9 = vld [vmem:[%s5119_s16 + $0xb0] sm:$0xff] }
 0xd94   : > { %3148 = vmatpush.msrb.mxu1 %v3478_v9 }
 0xd95   : > { %v2959_v3 = vrot.slane %v2958_v58, 4 }
 0xd97   : > { %v2960_v41 = vadd.f32 %v2959_v3, %v2958_v58  ;;  %v3477_v58 = vld [vmem:[%s5119_s16 + $0xa8] sm:$0xff] }
 0xd98   : > { %3149 = vmatpush.msrb.mxu1 %v3477_v58 }
 0xd99   : > { %v2961_v39 = vrot.slane %v2960_v41, 2 }
 0xd9a   : > { %3150 = vmatpush.msrb.mxu1 %v3476_v47 }
 0xd9b   : > { %v2962_v21 = vadd.f32 %v2961_v39, %v2960_v41  ;;  %v3475_v39 = vld [vmem:[%s5119_s16 + $0x98] sm:$0xff] }
 0xd9c   : > { %3151 = vmatpush.msrb.mxu1 %v3475_v39 }
 0xd9d   : > { %v2963_v15 = vrot.slane %v2962_v21, 1 }
 0xd9e   : > { %3152 = vmatpush.msrb.mxu1 %v3474_v53 }
 0xd9f   : > { %v2940_v27 = vpop.permute.xlu1 %2939  ;;  %v2964_v23 = vadd.f32 %v2963_v15, %v2962_v21 }
 0xda0   : > { %v2942_v59 = vmul.f32 %v2940_v27, %v2937_v5  ;;  %v3472_v27 = vld [vmem:[%s5119_s16 + $0x80] sm:$0xff] }
 0xda1   : > { %v2970_v45 = vadd.f32 %v2969_v17, %v2964_v23  ;;  %v3473_v17 = vld [vmem:[%s5119_s16 + $0x88] sm:$0xff] }
 0xda2   : > { %2943 = vst.msk [vmem:[#allocation5 + $0x6] sm:$0x1] %vm1562_vm1, %v2942_v59  ;;  %3153 = vmatpush.msrb.mxu1 %v3473_v17 }
 0xda3   : > { %v2975_v43 = vmul.f32 %v2973_v14, %v2970_v45 }
 0xda4   : > { %3154 = vmatpush.msrb.mxu1 %v3472_v27 }
 0xda5   : > { %2976 = vst.msk [vmem:[#allocation5 + $0x7] sm:$0x1] %vm1562_vm1, %v2975_v43 }
 0xdac   : > { %v2977_v25 = vld [vmem:[#allocation5] sm:$0xff] }
 0xdad   : > { %3463 = vmatmul.msk.f32.vlgmr.msra.gmra.mxu2 %vm842_vm3, %v2977_v25 }
 0xe30   : > { %v3007_v29 = vpop.f32.mrf.mxu2 }
 0xe31   : > { %v3008_v32 = vadd.f32 %v3007_v29, %v4553_v0 }
 0xe33   : > { %v3014_v11 = vsel %vm630_vm0, %v3008_v32, 0.0 }
 0xe34   : > { %3015 = vadd.xlane.f32.xlu0 %v3014_v11 }
 0xea7   : > { %v3016_v44 = vpop.xlane.xlu0 %3015 }
 0xea8   : > { %v3017_v0 = vmul.f32 %v3016_v44, %v3782_v10 }
 0xeaa   : > { %v3018_v48 = vsub.f32 %v3008_v32, %v3017_v0 }
 0xeac   : > { %v3019_v50 = vmul.f32 %v3018_v48, %v3018_v48 }
 0xeae   : > { %v3020_v54 = vsel %vm630_vm0, %v3019_v50, 0.0 }
 0xeaf   : > { %3021 = vadd.xlane.f32.xlu1 %v3020_v54 }
 0xf22   : > { %v3022_v13 = vpop.xlane.xlu1 %3021 }
 0xf23   : > { %v3023_v36 = vmul.f32 %v3022_v13, %v3782_v10 }
 0xf25   : > { %v3024_v20 = vadd.f32 1e-12, %v3023_v36 }
 0xf27   : > { %3632 = vrsqrt.f32 %v3024_v20  ;;  %vm3031_vm15 = vweird.f32 %v3024_v20 }
 0xf2d   : > { %v3633_v46 = vpop.eup %3632 }
 0xf2e   : > { %v3026_v49 = vmul.f32 %v3633_v46, %v3024_v20  ;;  %vm3032_vm7 = vweird.f32 %v3633_v46  ;;  %v3529_v20 = vld [vmem:[%s5120_s17 + $0x1] ss:$0 sm:$0xff] }
 0xf2f   : > { %vm3033_vm1 = vmor %vm3031_vm15, %vm3032_vm7 }
 0xf30   : > { %v3027_v16 = vmul.f32 %v3633_v46, %v3026_v49 }
 0xf32   : > { %v3028_v1 = vmul.f32 0.5, %v3027_v16 }
 0xf34   : > { %v3029_v4 = vsub.f32 1.5, %v3028_v1 }
 0xf36   : > { %v3030_v30 = vmul.f32 %v3633_v46, %v3029_v4 }
 0xf38   : > { %v3034_v56 = vsel %vm3033_vm1, %v3633_v46, %v3030_v30 }
 0xf39   : > { %v3035_v51 = vmul.f32 %v3034_v56, %v3018_v48 }
 0xf3b   : > { %v3039_v40 = vmul.f32 %v3526_v57, %v3035_v51 }
 0xf3d   : > { %v5046_v22 = vadd.f32 %v3527_v24, %v3039_v40 }
 0xf3f   : > { %3471 = vmatmul.msk.f32.vlgmr.msra.gmra.mxu0 %vm630_vm0, %v5046_v22 }
 0xfbc   : > { %v3074_v33 = vpop.f32.mrf.mxu0 }
 0xfbd   : > { %v3075_v62 = vadd.f32 %v3528_v19, %v3074_v33  ;;  %v3530_v19 = vld [vmem:[%s5121_s18 + $0x1] ss:$0 sm:$0xff] }
 0xfbf   : > { %v3078_v26 = vmul.f32 0.70710677, %v3075_v62  ;;  %v3077_v13 = vmul.f32 0.5, %v3075_v62 }
 0xfc1   : > { %v3081_v37 = vand.u32 2147483647, %v3078_v26  ;;  %vm3079_vm4 = vcmp.ge.f32.partialorder %v3078_v26, 0.0 }
 0xfc2   : > { %v3080_v7 = vsel %vm3079_vm4, 1.0, %v3656_v2 }
 0xfc3   : > { %v3082_v6 = vmul.f32 0.3275911, %v3081_v37  ;;  %v3108_v43 = vsub.f32 0.0, %v3081_v37 }
 0xfc5   : > { %v3083_v8 = vadd.f32 1.0, %v3082_v6  ;;  %v3109_v32 = vmul.f32 %v3108_v43, %v3081_v37 }
 0xfc7   : > { %3634 = vrcp.f32 %v3083_v8  ;;  %v3095_v21 = vand.u32 2147483648, %v3083_v8  ;;  %v3093_v5 = vand.u32 2147483647, %v3083_v8  ;;  %vm3089_vm13 = vweird.f32 %v3083_v8 }
 0xfc8   : > { %v3110_v42 = vmul.f32 1.442695, %v3109_v32 }
 0xfc9   : > { %v3096_v59 = vor.u32 1.1754944e-38, %v3095_v21  ;;  %vm3094_vm2 = vcmp.eq.f32.partialorder %v3093_v5, 8.507059e+37 }
 0xfca   : > { %3636 = vpow2.f32 %v3110_v42 }
 0xfcd   : > { %v3635_v3 = vpop.eup %3634 }
 0xfce   : > { %v3085_v41 = vmul.f32 %v3635_v3, %v3083_v8  ;;  %vm3090_vm12 = vweird.f32 %v3635_v3 }
 0xfcf   : > { %vm3091_vm14 = vmor %vm3089_vm13, %vm3090_vm12 }
 0xfd0   : > { %v3086_v18 = vsub.f32 1.0, %v3085_v41  ;;  %v3637_v54 = vpop.eup %3636 }
 0xfd2   : > { %v3087_v15 = vmul.f32 %v3635_v3, %v3086_v18 }
 0xfd4   : > { %v3088_v23 = vadd.f32 %v3635_v3, %v3087_v15 }
 0xfd6   : > { %v3092_v45 = vsel %vm3091_vm14, %v3635_v3, %v3088_v23 }
 0xfd7   : > { %v3097_v14 = vsel %vm3094_vm2, %v3096_v59, %v3092_v45 }
 0xfd8   : > { %v3099_v25 = vmul.f32 1.0614054, %v3097_v14 }
 0xfda   : > { %v3100_v29 = vadd.f32 -1.4531521, %v3099_v25 }
 0xfdc   : > { %v3101_v11 = vmul.f32 %v3100_v29, %v3097_v14 }
 0xfde   : > { %v3102_v61 = vadd.f32 1.4214138, %v3101_v11 }
 0xfe0   : > { %v3103_v31 = vmul.f32 %v3102_v61, %v3097_v14 }
 0xfe2   : > { %v3104_v44 = vadd.f32 -0.28449672, %v3103_v31 }
 0xfe4   : > { %v3105_v0 = vmul.f32 %v3104_v44, %v3097_v14 }
 0xfe6   : > { %v3106_v48 = vadd.f32 0.2548296, %v3105_v0 }
 0xfe8   : > { %v3107_v50 = vmul.f32 %v3106_v48, %v3097_v14  ;;  %v5140_v14 = vlaneseq }
 0xfea   : > { %v3112_v38 = vmul.f32 %v3637_v54, %v3107_v50  ;;  %vm3236_vm11 = vcmp.lt.s32.totalorder %v5140_v14, 256 }
 0xfec   : > { %v3113_v12 = vsub.f32 1.0, %v3112_v38 }
 0xfee   : > { %v3114_v28 = vmul.f32 %v3113_v12, %v3080_v7 }
 0xff0   : > { %v3115_v36 = vadd.f32 1.0, %v3114_v28 }
 0xff2   : > { %v3116_v60 = vmul.f32 %v3115_v36, %v3077_v13 }
 0xff4   : > { %3155 = vmatmul.f32.vlgmr.msrb.gmra.mxu1 %v3116_v60 }
0x1071   : > { %v3156_v35 = vpop.f32.mrf.mxu1 }
0x1072   : > { %v3157_v52 = vadd.f32 %v3529_v20, %v3156_v35 }
0x1074   : > { %v3159_v55 = vadd.f32 %v3157_v52, %v5046_v22 }
0x1076   : > { %v3164_v34 = vsel %vm630_vm0, %v3159_v55, 0.0 }
0x1077   : > { %3165 = vadd.xlane.f32.xlu2 %v3164_v34 }
0x10ea   : > { %v3166_v46 = vpop.xlane.xlu2 %3165 }
0x10eb   : > { %v3167_v63 = vmul.f32 %v3166_v46, %v3782_v10 }
0x10ed   : > { %v3168_v2 = vsub.f32 %v3159_v55, %v3167_v63 }
0x10ef   : > { %v3169_v49 = vmul.f32 %v3168_v2, %v3168_v2 }
0x10f1   : > { %v3170_v16 = vsel %vm630_vm0, %v3169_v49, 0.0 }
0x10f2   : > { %3171 = vadd.xlane.f32.xlu0 %v3170_v16 }
0x1165   : > { %v3172_v1 = vpop.xlane.xlu0 %3171 }
0x1166   : > { %v3173_v4 = vmul.f32 %v3172_v1, %v3782_v10  ;;  %v3531_v10 = vld [vmem:[%s5122_s19 + $0x1] ss:$0 sm:$0xff] }
0x1168   : > { %v3174_v30 = vadd.f32 1e-12, %v3173_v4 }
0x116a   : > { %3638 = vrsqrt.f32 %v3174_v30  ;;  %vm3181_vm6 = vweird.f32 %v3174_v30 }
0x1170   : > { %v3639_v57 = vpop.eup %3638 }
0x1171   : > { %v3176_v56 = vmul.f32 %v3639_v57, %v3174_v30  ;;  %vm3182_vm5 = vweird.f32 %v3639_v57 }
0x1172   : > { %vm3183_vm8 = vmor %vm3181_vm6, %vm3182_vm5 }
0x1173   : > { %v3177_v24 = vmul.f32 %v3639_v57, %v3176_v56 }
0x1175   : > { %v3178_v51 = vmul.f32 0.5, %v3177_v24 }
0x1177   : > { %v3179_v40 = vsub.f32 1.5, %v3178_v51 }
0x1179   : > { %v3180_v22 = vmul.f32 %v3639_v57, %v3179_v40 }
0x117b   : > { %v3184_v33 = vsel %vm3183_vm8, %v3639_v57, %v3180_v22 }
0x117c   : > { %v3185_v62 = vmul.f32 %v3184_v33, %v3168_v2 }
0x117e   : > { %v3189_v26 = vmul.f32 %v3530_v19, %v3185_v62 }
0x1180   : > { %v3193_v37 = vadd.f32 %v3531_v10, %v3189_v26 }
0x1182   : > { %v3213_v6 = vrot.slane %v3193_v37, 6  ;;  %v3209_v8 = vrot.slane %v3193_v37, 5  ;;  %v3195_v9 = vrot.slane %v3193_v37, 1  ;;  %v3217_v58 = vrot.slane %v3193_v37, 7 }
0x1183   : > { %v3203_v3 = vrot.slane %v3193_v37, 3  ;;  %v3199_v47 = vrot.slane %v3193_v37, 2  ;;  %v3207_v21 = vrot.slane %v3193_v37, 4 }
0x1184   : > { %3214 = vrot.lane.b32.xlu0 %v3213_v6, %s3654_s28  ;;  %3210 = vrot.lane.b32.xlu2 %v3209_v8, %s3657_s24 }
0x1185   : > { %3196 = vrot.lane.b32.xlu1 %v3195_v9, %s3657_s24 }
0x118c   : > { %3218 = vrot.lane.b32.xlu0 %v3217_v58, %s3658_s25  ;;  %3204 = vrot.lane.b32.xlu2 %v3203_v3, %s3658_s25 }
0x118d   : > { %3200 = vrot.lane.b32.xlu1 %v3199_v47, %s3654_s28  ;;  %s624_s28 = scalar_lea.vmem %s5123_s20, %s3298_s3 }
0x11de   : > { %v3211_v41 = vpop.permute.xlu2 %3210 }
0x11df   : > { %v3225_v53 = vsel %vm630_vm0, %v3207_v21, %v3211_v41 }
0x11e6   : > { %v3205_v59 = vpop.permute.xlu2 %3204 }
0x11f6   : > { %v3215_v39 = vpop.permute.xlu0 %3214 }
0x11f7   : > { %v3197_v18 = vpop.permute.xlu1 %3196  ;;  %v3226_v15 = vsel %vm842_vm3, %v3225_v53, %v3215_v39 }
0x11f8   : > { %v3221_v17 = vsel %vm630_vm0, %v3193_v37, %v3197_v18 }
0x11fe   : > { %v3219_v5 = vpop.permute.xlu0 %3218 }
0x11ff   : > { %v3227_v27 = vsel %vm3223_vm9, %v3226_v15, %v3219_v5  ;;  %v3201_v23 = vpop.permute.xlu1 %3200 }
0x1200   : > { %v3230_v45 = vrot.slane %v3227_v27, 7  ;;  %v3222_v43 = vsel %vm842_vm3, %v3221_v17, %v3201_v23 }
0x1201   : > { %v3224_v25 = vsel %vm3223_vm9, %v3222_v43, %v3205_v59 }
0x1202   : > { %v3232_v29 = vsel %vm3231_vm10, %v3224_v25, %v3230_v45 }
0x1203   : > { %3238 = vst.msk [vmem:[%s624_s28] sm:$0x3] %vm3236_vm11, %v3232_v29 }
0x1204 PF: > { %s30_s1 = sadd.s32 1, %s3649_s1  }
0x1205   : > { %p27_p4 = scmp.ge.s32.totalorder %s30_s1, 4  }
0x1207   :  { %29 = sbr.rel (!%p27_p4) target bundleno = 6 (0x6), region = 160 }

</bundles_post_ra>
